<compile_context>
chip_gen: v7x
topology: tpu7x:2x2x1
jax: 0.10.0
libtpu: 0.0.40
codegen_flags: <defaults>
</compile_context>

<pallas_src>
import jax
import jax.numpy as jnp
import numpy as np
from jax.experimental import pallas as pl
from jax.experimental.pallas import tpu as pltpu

EPS = 1e-5


def bn_conv_bn_kernel(x_ref, g1_ref, w_ref, g2_ref, b2_ref, o_ref):
    # x_ref : (Cin, M)   rows = input channels, lanes = spatial positions (N*H*W)
    # g1_ref: (Cin, 1)   gamma1 (beta1 is algebraically cancelled by BN2, not shipped)
    # w_ref : (BC,  Cin) block of the (Cout, Cin) 1x1-conv weight
    # g2_ref: (BC,  1)   gamma2 block
    # b2_ref: (BC,  1)   beta2 block
    # o_ref : (BC,  M)
    x = x_ref[...]
    inv_m = 1.0 / x.shape[-1]

    # --- BatchNorm #1 (scale only): training-mode batch stats per input channel.
    sum1 = jnp.sum(x, axis=-1, keepdims=True)
    sumsq1 = jnp.sum(x * x, axis=-1, keepdims=True)
    mean1 = sum1 * inv_m
    var1 = jnp.maximum(sumsq1 * inv_m - mean1 * mean1, 0.0)   # biased variance, clamped
    scale1 = g1_ref[...] * jax.lax.rsqrt(var1 + EPS)
    # shift1 (= beta1 - mean1*scale1) dropped: its contribution through the 1x1 conv is
    # a per-output-channel constant over spatial, removed exactly by BN2's mean subtraction.
    xn = x * scale1

    # --- Conv2d 1x1 (no bias): (BC, Cin) @ (Cin, M) on the MXU, f32 accumulate.
    y = jnp.dot(w_ref[...], xn, preferred_element_type=jnp.float32)

    # --- BatchNorm #2: training-mode batch stats per output channel (per row).
    sum2 = jnp.sum(y, axis=-1, keepdims=True)
    sumsq2 = jnp.sum(y * y, axis=-1, keepdims=True)
    mean2 = sum2 * inv_m
    var2 = jnp.maximum(sumsq2 * inv_m - mean2 * mean2, 0.0)
    scale2 = g2_ref[...] * jax.lax.rsqrt(var2 + EPS)
    shift2 = b2_ref[...] - mean2 * scale2
    o_ref[...] = y * scale2 + shift2


def m_forward(x_nchw, gamma1, beta1, conv_w, gamma2, beta2, num_cout_blocks=2):
    """x_nchw: (N, Cin, H, W); conv_w: (Cout, Cin, 1, 1) as in PyTorch.

    beta1 is accepted for API parity with the PyTorch module, but it is mathematically
    cancelled by the second BatchNorm (mean subtraction) and therefore never shipped
    to the kernel.
    """
    del beta1  # exactly cancelled by BN2's mean subtraction (no bias/nonlinearity between)

    N, Cin, H, W = x_nchw.shape
    Cout = conv_w.shape[0]
    M = N * H * W

    if N == 1:
        x2d = x_nchw.reshape(Cin, M)                 # free reshape, no transpose
    else:
        # N > 1 cannot be flattened to (C, N*H*W) without a transpose (not the spec case).
        x2d = jnp.transpose(x_nchw, (1, 0, 2, 3)).reshape(Cin, M)

    w2d = conv_w.reshape(Cout, Cin)                  # free: (Cout, Cin, 1, 1) -> (Cout, Cin)
    g1 = gamma1.reshape(Cin, 1)                      # free metadata reshapes, no packing op
    g2 = gamma2.reshape(Cout, 1)
    b2 = beta2.reshape(Cout, 1)

    # Coarse split over Cout (independent rows) for v7x megacore; costs one extra
    # (cheap) grid step on single-TensorCore chips.  Keep bc a multiple of 8 and >= 128
    # so the MXU LHS stays tall and per-step overhead stays amortized.
    nb = num_cout_blocks
    if nb < 1 or Cout % nb != 0 or (Cout // nb) % 8 != 0 or (Cout // nb) < 128:
        nb = 1
    bc = Cout // nb
    # TODO(synk): on single-TC chips (v5e/v6e), sweep num_cout_blocks in {1, 2} if hot.

    cost = pl.CostEstimate(
        flops=2 * Cout * Cin * M,                    # 1x1 conv dominates (~38 MFLOP)
        transcendentals=Cin + Cout,                  # rsqrt per channel
        bytes_accessed=4 * (Cin * M + Cout * Cin + Cout * M + Cin + 2 * Cout),
    )

    out2d = pl.pallas_call(
        bn_conv_bn_kernel,
        out_shape=jax.ShapeDtypeStruct((Cout, M), jnp.float32),
        grid_spec=pltpu.PrefetchScalarGridSpec(
            num_scalar_prefetch=0,
            grid=(nb,),
            in_specs=[
                pl.BlockSpec((Cin, M), lambda j: (0, 0)),   # x: shared across blocks
                pl.BlockSpec((Cin, 1), lambda j: (0, 0)),   # gamma1
                pl.BlockSpec((bc, Cin), lambda j: (j, 0)),  # weight block
                pl.BlockSpec((bc, 1), lambda j: (j, 0)),    # gamma2 block
                pl.BlockSpec((bc, 1), lambda j: (j, 0)),    # beta2 block
            ],
            out_specs=pl.BlockSpec((bc, M), lambda j: (j, 0)),
        ),
        compiler_params=pltpu.CompilerParams(
            dimension_semantics=("parallel",)),
        cost_estimate=cost,
    )(x2d, g1, w2d, g2, b2)

    if N == 1:
        return out2d.reshape(1, Cout, H, W)          # free reshape back to NCHW
    return jnp.transpose(out2d.reshape(Cout, N, H, W), (1, 0, 2, 3))


def m_forward_ref(x_nchw, gamma1, beta1, conv_w, gamma2, beta2):
    """Pure-JAX reference of the same forward pass (two-pass variance, full BN1 shift)."""
    def bn(x, g, b):
        mean = jnp.mean(x, axis=(0, 2, 3), keepdims=True)
        var = jnp.mean((x - mean) ** 2, axis=(0, 2, 3), keepdims=True)
        return (x - mean) * jax.lax.rsqrt(var + EPS) * g.reshape(1, -1, 1, 1) \
               + b.reshape(1, -1, 1, 1)

    x = bn(x_nchw, gamma1, beta1)
    y = jax.lax.conv_general_dilated(
        x, conv_w, window_strides=(1, 1), padding="VALID",
        dimension_numbers=("NCHW", "OIHW", "NCHW"))
    return bn(y, gamma2, beta2)


if __name__ == "__main__":
    key = jax.random.PRNGKey(0)
    k_x, k_w, k_g1, k_b1, k_g2, k_b2 = jax.random.split(key, 6)

    N, Cin, H, W, Cout = 1, 128, 14, 14, 768

    x = jax.random.normal(k_x, (N, Cin, H, W), dtype=jnp.float32)
    conv_w = jax.random.normal(k_w, (Cout, Cin, 1, 1), dtype=jnp.float32) * 0.05
    gamma1 = 1.0 + 0.1 * jax.random.normal(k_g1, (Cin,), dtype=jnp.float32)
    beta1 = 0.1 * jax.random.normal(k_b1, (Cin,), dtype=jnp.float32)
    gamma2 = 1.0 + 0.1 * jax.random.normal(k_g2, (Cout,), dtype=jnp.float32)
    beta2 = 0.1 * jax.random.normal(k_b2, (Cout,), dtype=jnp.float32)

    fwd = jax.jit(m_forward)
    out = jax.block_until_ready(fwd(x, gamma1, beta1, conv_w, gamma2, beta2))

    ref = jax.block_until_ready(
        m_forward_ref(x, gamma1, beta1, conv_w, gamma2, beta2))

    assert out.shape == (N, Cout, H, W), out.shape
    np.testing.assert_allclose(np.asarray(out), np.asarray(ref),
                               rtol=1e-4, atol=1e-4)
    print("KERNEL_OK")
</pallas_src>

<mosaic_0001>
module attributes {stable_mosaic.version = 11 : i64} {
  func.func @bn_conv_bn_kernel(%arg0: i32, %arg1: memref<128x196xf32, #tpu.memory_space<vmem>>, %arg2: memref<128x1xf32, #tpu.memory_space<vmem>>, %arg3: memref<384x128xf32, #tpu.memory_space<vmem>>, %arg4: memref<384x1xf32, #tpu.memory_space<vmem>>, %arg5: memref<384x1xf32, #tpu.memory_space<vmem>>, %arg6: memref<384x196xf32, #tpu.memory_space<vmem>>) attributes {dimension_semantics = [#tpu.dimension_semantics<parallel>], iteration_bounds = array<i64: 2>, scalar_prefetch = 0 : i64, scratch_operands = 0 : i64, tpu.core_type = #tpu.core_type<tc>, window_params = [{pipeline_mode = #tpu.pipeline_mode<synchronous>, transform_indices = @transform_0, window_bounds = array<i64: 128, 196>}, {pipeline_mode = #tpu.pipeline_mode<synchronous>, transform_indices = @transform_1, window_bounds = array<i64: 128, 1>}, {transform_indices = @transform_2, window_bounds = array<i64: 384, 128>}, {transform_indices = @transform_3, window_bounds = array<i64: 384, 1>}, {transform_indices = @transform_4, window_bounds = array<i64: 384, 1>}, {transform_indices = @transform_5, window_bounds = array<i64: 384, 196>}]} {
    %c0 = arith.constant 0 : index
    %c0_0 = arith.constant 0 : index
    %0 = vector.load %arg1[%c0, %c0_0] : memref<128x196xf32, #tpu.memory_space<vmem>>, vector<128x196xf32>
    %cst = arith.constant dense<0.000000e+00> : vector<128xf32>
    %1 = vector.multi_reduction <add>, %0, %cst [1] : vector<128x196xf32> to vector<128xf32>
    %2 = vector.shape_cast %1 : vector<128xf32> to vector<128x1xf32>
    %3 = arith.mulf %0, %0 : vector<128x196xf32>
    %cst_1 = arith.constant dense<0.000000e+00> : vector<128xf32>
    %4 = vector.multi_reduction <add>, %3, %cst_1 [1] : vector<128x196xf32> to vector<128xf32>
    %5 = vector.shape_cast %4 : vector<128xf32> to vector<128x1xf32>
    %cst_2 = arith.constant 0.00510204071 : f32
    %6 = vector.broadcast %cst_2 : f32 to vector<128x1xf32>
    %7 = arith.mulf %2, %6 : vector<128x1xf32>
    %cst_3 = arith.constant 0.00510204071 : f32
    %8 = vector.broadcast %cst_3 : f32 to vector<128x1xf32>
    %9 = arith.mulf %5, %8 : vector<128x1xf32>
    %10 = arith.mulf %7, %7 : vector<128x1xf32>
    %11 = arith.subf %9, %10 : vector<128x1xf32>
    %cst_4 = arith.constant 0.000000e+00 : f32
    %12 = vector.broadcast %cst_4 : f32 to vector<128x1xf32>
    %13 = arith.maximumf %11, %12 : vector<128x1xf32>
    %c0_5 = arith.constant 0 : index
    %c0_6 = arith.constant 0 : index
    %14 = vector.load %arg2[%c0_5, %c0_6] : memref<128x1xf32, #tpu.memory_space<vmem>>, vector<128x1xf32>
    %cst_7 = arith.constant 9.99999974E-6 : f32
    %15 = vector.broadcast %cst_7 : f32 to vector<128x1xf32>
    %16 = arith.addf %13, %15 : vector<128x1xf32>
    %17 = math.rsqrt %16 : vector<128x1xf32>
    %18 = arith.mulf %14, %17 : vector<128x1xf32>
    %19 = vector.broadcast %18 : vector<128x1xf32> to vector<128x196xf32>
    %20 = arith.mulf %0, %19 : vector<128x196xf32>
    %c0_8 = arith.constant 0 : index
    %c0_9 = arith.constant 0 : index
    %21 = vector.load %arg3[%c0_8, %c0_9] : memref<384x128xf32, #tpu.memory_space<vmem>>, vector<384x128xf32>
    %cst_10 = arith.constant dense<0.000000e+00> : vector<384x196xf32>
    %22 = tpu.matmul %21, %20, %cst_10 {dimension_numbers = #tpu.dot_dimension_numbers<[1], [0], [0], [1], [0, 0, 1, 1], [], []>} : vector<384x128xf32>, vector<128x196xf32>, vector<384x196xf32> -> vector<384x196xf32>
    %cst_11 = arith.constant dense<0.000000e+00> : vector<384xf32>
    %23 = vector.multi_reduction <add>, %22, %cst_11 [1] : vector<384x196xf32> to vector<384xf32>
    %24 = vector.shape_cast %23 : vector<384xf32> to vector<384x1xf32>
    %25 = arith.mulf %22, %22 : vector<384x196xf32>
    %cst_12 = arith.constant dense<0.000000e+00> : vector<384xf32>
    %26 = vector.multi_reduction <add>, %25, %cst_12 [1] : vector<384x196xf32> to vector<384xf32>
    %27 = vector.shape_cast %26 : vector<384xf32> to vector<384x1xf32>
    %cst_13 = arith.constant 0.00510204071 : f32
    %28 = vector.broadcast %cst_13 : f32 to vector<384x1xf32>
    %29 = arith.mulf %24, %28 : vector<384x1xf32>
    %cst_14 = arith.constant 0.00510204071 : f32
    %30 = vector.broadcast %cst_14 : f32 to vector<384x1xf32>
    %31 = arith.mulf %27, %30 : vector<384x1xf32>
    %32 = arith.mulf %29, %29 : vector<384x1xf32>
    %33 = arith.subf %31, %32 : vector<384x1xf32>
    %cst_15 = arith.constant 0.000000e+00 : f32
    %34 = vector.broadcast %cst_15 : f32 to vector<384x1xf32>
    %35 = arith.maximumf %33, %34 : vector<384x1xf32>
    %c0_16 = arith.constant 0 : index
    %c0_17 = arith.constant 0 : index
    %36 = vector.load %arg4[%c0_16, %c0_17] : memref<384x1xf32, #tpu.memory_space<vmem>>, vector<384x1xf32>
    %cst_18 = arith.constant 9.99999974E-6 : f32
    %37 = vector.broadcast %cst_18 : f32 to vector<384x1xf32>
    %38 = arith.addf %35, %37 : vector<384x1xf32>
    %39 = math.rsqrt %38 : vector<384x1xf32>
    %40 = arith.mulf %36, %39 : vector<384x1xf32>
    %c0_19 = arith.constant 0 : index
    %c0_20 = arith.constant 0 : index
    %41 = vector.load %arg5[%c0_19, %c0_20] : memref<384x1xf32, #tpu.memory_space<vmem>>, vector<384x1xf32>
    %42 = arith.mulf %29, %40 : vector<384x1xf32>
    %43 = arith.subf %41, %42 : vector<384x1xf32>
    %44 = vector.broadcast %40 : vector<384x1xf32> to vector<384x196xf32>
    %45 = arith.mulf %22, %44 : vector<384x196xf32>
    %46 = vector.broadcast %43 : vector<384x1xf32> to vector<384x196xf32>
    %47 = arith.addf %45, %46 : vector<384x196xf32>
    %c0_21 = arith.constant 0 : index
    %c0_22 = arith.constant 0 : index
    %48 = vector.load %arg6[%c0_21, %c0_22] : memref<384x196xf32, #tpu.memory_space<vmem>>, vector<384x196xf32>
    tpu.vector_store %arg6[%c0_21, %c0_22], %47 {strides = array<i32>} : memref<384x196xf32, #tpu.memory_space<vmem>>, vector<384x196xf32>,
    return
  }
  func.func @transform_0(%arg0: i32) -> (i32, i32) {
    %c0_i32 = arith.constant 0 : i32
    %c0_i32_0 = arith.constant 0 : i32
    %c0_i32_1 = arith.constant 0 : i32
    return %c0_i32, %c0_i32_0 : i32, i32
  }
  func.func @transform_1(%arg0: i32) -> (i32, i32) {
    %c0_i32 = arith.constant 0 : i32
    %c0_i32_0 = arith.constant 0 : i32
    %c0_i32_1 = arith.constant 0 : i32
    return %c0_i32, %c0_i32_0 : i32, i32
  }
  func.func @transform_2(%arg0: i32) -> (i32, i32) {
    %c0_i32 = arith.constant 0 : i32
    %c0_i32_0 = arith.constant 0 : i32
    return %arg0, %c0_i32 : i32, i32
  }
  func.func @transform_3(%arg0: i32) -> (i32, i32) {
    %c0_i32 = arith.constant 0 : i32
    %c0_i32_0 = arith.constant 0 : i32
    return %arg0, %c0_i32 : i32, i32
  }
  func.func @transform_4(%arg0: i32) -> (i32, i32) {
    %c0_i32 = arith.constant 0 : i32
    %c0_i32_0 = arith.constant 0 : i32
    return %arg0, %c0_i32 : i32, i32
  }
  func.func @transform_5(%arg0: i32) -> (i32, i32) {
    %c0_i32 = arith.constant 0 : i32
    %c0_i32_0 = arith.constant 0 : i32
    return %arg0, %c0_i32 : i32, i32
  }
}

</mosaic_0001>

<bundles_post_ra>
// kernel: m_forward.1
= control target key start
LH: loop header
LB: loop body
LE: loop exit
PB: predicated region body
PF: predicated region fallthrough
CT: control target
= control target key end

     0   :  { %s3271_s18 = smov 0   ;;  %s5436_s0 = inlined_call_operand.vmem [shape: f32[128,196], index: 0, kind: input, shape index: {}]   ;;  %s5437_s1 = inlined_call_operand.vmem [shape: f32[128,1], index: 1, kind: input, shape index: {}]   ;;  %s5438_s2 = inlined_call_operand.vmem [shape: f32[768,128], index: 2, kind: input, shape index: {}]   ;;  %s5439_s3 = inlined_call_operand.vmem [shape: f32[768,1], index: 3, kind: input, shape index: {}]   ;;  %s5440_s4 = inlined_call_operand.vmem [shape: f32[768,1], index: 4, kind: input, shape index: {}]   ;;  %s5441_s5 = inlined_call_operand.vmem [shape: f32[768,196], index: 5, kind: output, shape index: {}]  }
   0x1 LB: > { %s3030_s19 = sadd.s32 4294967295, %s3237_s18   ;;  %p3034_p0 = scmp.ge.s32.totalorder %s3237_s18, 1  ;;  %s3237_s18 = sphi %s3271_s18, %s15_s18  }
   0x2   : > { %p210_p1 = scmp.lt.s32.totalorder %s3237_s18, 3 }
   0x4   : > { %p211_p2 = pnand %p3034_p0, %p210_p1 }
   0x6   : > { %214 = sbr.rel (%p211_p2) target bundleno = 1134 (0x46e), region = 40 }
   0xd   : > { %v3282_v0 = vld [vmem:[%s5436_s0 + $0x20] sm:$0xff]  ;;  %v3287_v1 = vld [vmem:[%s5436_s0 + $0x28] sm:$0xff]  ;;  %vm306_vm0 = vcmask 556032   ;;  %v3304_v5 = vld [vmem:[%s5436_s0 + $0x30] sm:$0xff]  ;;  %s249_s24 = smul.u32 48, %s3030_s19 }
   0xe   : > { %v3292_v2 = vld [vmem:[%s5436_s0] sm:$0xff]  ;;  %v315_v3 = vsel %vm306_vm0, %v3287_v1, 0.0  ;;  %v3299_v4 = vld [vmem:[%s5436_s0 + $0x8] sm:$0xff]  ;;  %v3309_v6 = vld [vmem:[%s5436_s0 + $0x38] sm:$0xff] }
   0xf   : > { %v316_v7 = vadd.f32 %v315_v3, %v3282_v0  ;;  %v307_v8 = vsel %vm306_vm0, %v3299_v4, 0.0  ;;  %v319_v9 = vsel %vm306_vm0, %v3309_v6, 0.0  ;;  %v3319_v10 = vld [vmem:[%s5436_s0 + $0x10] sm:$0xff]  ;;  %v3324_v11 = vld [vmem:[%s5436_s0 + $0x18] sm:$0xff]  ;;  %v3337_v15 = vld [vmem:[%s5436_s0 + $0x48] sm:$0xff]  ;;  %v372_v63 = vmul.f32 %v3299_v4, %v3299_v4  ;;  %p250_p3 = scmp.lt.s32.totalorder %s249_s24, 95 }
  0x10   : > { %v308_v12 = vadd.f32 %v307_v8, %v3292_v2  ;;  %v311_v13 = vsel %vm306_vm0, %v3324_v11, 0.0  ;;  %v3332_v14 = vld [vmem:[%s5436_s0 + $0x58] sm:$0xff]  ;;  %v320_v16 = vadd.f32 %v319_v9, %v3304_v5  ;;  %v3344_v18 = vld [vmem:[%s5436_s0 + $0x50] sm:$0xff]  ;;  %v3351_v20 = vld [vmem:[%s5436_s0 + $0x40] sm:$0xff]  ;;  %v323_v21 = vsel %vm306_vm0, %v3337_v15, 0.0 }
  0x11   : > { %317 = vadd.xlane.f32.xlu1 %v316_v7  ;;  %v312_v17 = vadd.f32 %v311_v13, %v3319_v10  ;;  %v327_v19 = vsel %vm306_vm0, %v3332_v14, 0.0  ;;  %v3358_v22 = vld [vmem:[%s5436_s0 + $0x78] sm:$0xff]  ;;  %v3363_v23 = vld [vmem:[%s5436_s0 + $0x68] sm:$0xff]  ;;  %v324_v25 = vadd.f32 %v323_v21, %v3351_v20  ;;  %v3370_v26 = vld [vmem:[%s5436_s0 + $0x70] sm:$0xff]  ;;  %v374_v60 = vmul.f32 %v3324_v11, %v3324_v11  ;;  %s5737_s24 = smov (!%p250_p3, %s249_s24), 95 }
  0x12   : > { %309 = vadd.xlane.f32.xlu0 %v308_v12  ;;  %v328_v24 = vadd.f32 %v327_v19, %v3344_v18  ;;  %v335_v27 = vsel %vm306_vm0, %v3358_v22, 0.0  ;;  %v3377_v28 = vld [vmem:[%s5436_s0 + $0x60] sm:$0xff]  ;;  %v331_v29 = vsel %vm306_vm0, %v3363_v23, 0.0  ;;  %v3384_v30 = vld [vmem:[%s5436_s0 + $0x98] sm:$0xff]  ;;  %v3389_v31 = vld [vmem:[%s5436_s0 + $0x88] sm:$0xff]  ;;  %v373_v7 = vmul.f32 %v3319_v10, %v3319_v10  ;;  %s3669_s19 = sshll.u32 %s5737_s24, 3 }
  0x13   : > { %v336_v32 = vadd.f32 %v335_v27, %v3370_v26  ;;  %v332_v33 = vadd.f32 %v331_v29, %v3377_v28  ;;  %v3396_v34 = vld [vmem:[%s5436_s0 + $0x90] sm:$0xff]  ;;  %v343_v35 = vsel %vm306_vm0, %v3384_v30, 0.0  ;;  %v3403_v36 = vld [vmem:[%s5436_s0 + $0x80] sm:$0xff]  ;;  %v339_v37 = vsel %vm306_vm0, %v3389_v31, 0.0  ;;  %v3410_v38 = vld [vmem:[%s5436_s0 + $0xb8] sm:$0xff]  ;;  %s3678_s27 = scalar_lea.vmem %s5438_s2, %s3669_s19  ;;  %s4650_s30 = scalar_lea.vmem %s5439_s3, %s3669_s19 }
  0x14   : > { %v3415_v39 = vld [vmem:[%s5436_s0 + $0xa8] sm:$0xff]  ;;  %v344_v40 = vadd.f32 %v343_v35, %v3396_v34  ;;  %v340_v41 = vadd.f32 %v339_v37, %v3403_v36  ;;  %v3422_v42 = vld [vmem:[%s5436_s0 + $0xb0] sm:$0xff]  ;;  %v351_v43 = vsel %vm306_vm0, %v3410_v38, 0.0  ;;  %v3429_v44 = vld [vmem:[%s5436_s0 + $0xa0] sm:$0xff]  ;;  %v407_v9 = vsel %vm306_vm0, %v374_v60, 0.0  ;;  %s4679_s8 = scalar_lea.vmem %s5440_s4, %s3669_s19  ;;  %s3042_s9 = sshll.u32 %s5737_s24, 4 }
  0x15   : > { %321 = vadd.xlane.f32.xlu1 %v320_v16  ;;  %v347_v45 = vsel %vm306_vm0, %v3415_v39, 0.0  ;;  %v3436_v46 = vld [vmem:[%s5436_s0 + $0xd8] sm:$0xff]  ;;  %v3441_v47 = vld [vmem:[%s5436_s0 + $0xc8] sm:$0xff]  ;;  %v352_v48 = vadd.f32 %v351_v43, %v3422_v42  ;;  %v3448_v50 = vld [vmem:[%s5436_s0 + $0xd0] sm:$0xff]  ;;  %v371_v12 = vmul.f32 %v3292_v2, %v3292_v2  ;;  %v378_v13 = vmul.f32 %v3309_v6, %v3309_v6  ;;  %s5129_s12 = scalar_lea.vmem %s5441_s5, %s3042_s9 }
  0x16   : > { %313 = vadd.xlane.f32.xlu0 %v312_v17  ;;  %5540 = vst [vmem:[#allocation2_spill] sm:$0xff] %v3441_v47  ;;  %v348_v49 = vadd.f32 %v347_v45, %v3429_v44  ;;  %v359_v51 = vsel %vm306_vm0, %v3436_v46, 0.0  ;;  %v3455_v52 = vld [vmem:[%s5436_s0 + $0xc0] sm:$0xff]  ;;  %v355_v53 = vsel %vm306_vm0, %v3441_v47, 0.0  ;;  %v3462_v54 = vld [vmem:[%s5436_s0 + $0xf8] sm:$0xff]  ;;  %v3467_v55 = vld [vmem:[%s5436_s0 + $0xe8] sm:$0xff]  ;;  %v376_v17 = vmul.f32 %v3287_v1, %v3287_v1 }
  0x17   : > { %5541 = vst [vmem:[#allocation3_spill] sm:$0xff] %v3455_v52  ;;  %5542 = vst [vmem:[#allocation4_spill] sm:$0xff] %v3462_v54  ;;  %v360_v56 = vadd.f32 %v359_v51, %v3448_v50  ;;  %v356_v57 = vadd.f32 %v355_v53, %v3455_v52  ;;  %v3474_v58 = vld [vmem:[%s5436_s0 + $0xf0] sm:$0xff]  ;;  %v367_v59 = vsel %vm306_vm0, %v3462_v54, 0.0  ;;  %v3483_v61 = vld [vmem:[%s5436_s0 + $0xe0] sm:$0xff]  ;;  %v363_v62 = vsel %vm306_vm0, %v3467_v55, 0.0 }
  0x18   : > { %5543 = vst [vmem:[#allocation5_spill] sm:$0xff] %v3467_v55  ;;  %5544 = vst [vmem:[#allocation6_spill] sm:$0xff] %v3474_v58  ;;  %v368_v3 = vadd.f32 %v367_v59, %v3474_v58  ;;  %v364_v8 = vadd.f32 %v363_v62, %v3483_v61  ;;  %v403_v16 = vsel %vm306_vm0, %v372_v63, 0.0  ;;  %v408_v19 = vadd.f32 %v407_v9, %v373_v7 }
  0x19   : > { %329 = vadd.xlane.f32.xlu1 %v328_v24  ;;  %5545 = vst [vmem:[#allocation7_spill] sm:$0xff] %v3483_v61  ;;  %v377_v21 = vmul.f32 %v3304_v5, %v3304_v5  ;;  %v404_v24 = vadd.f32 %v403_v16, %v371_v12  ;;  %v375_v27 = vmul.f32 %v3282_v0, %v3282_v0 }
  0x1a   : > { %325 = vadd.xlane.f32.xlu0 %v324_v25  ;;  %v415_v25 = vsel %vm306_vm0, %v378_v13, 0.0  ;;  %v382_v29 = vmul.f32 %v3332_v14, %v3332_v14  ;;  %v381_v37 = vmul.f32 %v3344_v18, %v3344_v18  ;;  %v379_v43 = vmul.f32 %v3351_v20, %v3351_v20 }
  0x1b   : > { %v416_v35 = vadd.f32 %v415_v25, %v377_v21  ;;  %v386_v45 = vmul.f32 %v3358_v22, %v3358_v22  ;;  %v385_v53 = vmul.f32 %v3370_v26, %v3370_v26  ;;  %v383_v59 = vmul.f32 %v3377_v28, %v3377_v28 }
  0x1c   : > { %v390_v60 = vmul.f32 %v3384_v30, %v3384_v30  ;;  %v388_v63 = vmul.f32 %v3389_v31, %v3389_v31  ;;  %v389_v7 = vmul.f32 %v3396_v34, %v3396_v34  ;;  %v387_v12 = vmul.f32 %v3403_v36, %v3403_v36 }
  0x1d   : > { %337 = vadd.xlane.f32.xlu1 %v336_v32  ;;  %v411_v32 = vsel %vm306_vm0, %v376_v17, 0.0  ;;  %v394_v13 = vmul.f32 %v3410_v38, %v3410_v38  ;;  %v392_v17 = vmul.f32 %v3415_v39, %v3415_v39  ;;  %v393_v21 = vmul.f32 %v3422_v42, %v3422_v42 }
  0x1e   : > { %333 = vadd.xlane.f32.xlu0 %v332_v33  ;;  %v380_v33 = vmul.f32 %v3337_v15, %v3337_v15  ;;  %v439_v9 = vsel %vm306_vm0, %v390_v60, 0.0  ;;  %v435_v16 = vsel %vm306_vm0, %v388_v63, 0.0 }
  0x1f   : > { %v447_v25 = vsel %vm306_vm0, %v394_v13, 0.0 }
  0x21   : > { %345 = vadd.xlane.f32.xlu1 %v344_v40  ;;  %v412_v40 = vadd.f32 %v411_v32, %v375_v27  ;;  %v391_v27 = vmul.f32 %v3429_v44, %v3429_v44  ;;  %v443_v32 = vsel %vm306_vm0, %v392_v17, 0.0 }
  0x22   : > { %341 = vadd.xlane.f32.xlu0 %v340_v41  ;;  %v423_v41 = vsel %vm306_vm0, %v382_v29, 0.0  ;;  %v398_v29 = vmul.f32 %v3436_v46, %v3436_v46 }
  0x23   : > { %v424_v51 = vadd.f32 %v423_v41, %v381_v37  ;;  %v397_v37 = vmul.f32 %v3448_v50, %v3448_v50 }
  0x24   : > { %v455_v41 = vsel %vm306_vm0, %v398_v29, 0.0 }
  0x25   : > { %353 = vadd.xlane.f32.xlu1 %v352_v48  ;;  %v419_v48 = vsel %vm306_vm0, %v380_v33, 0.0  ;;  %v396_v33 = vmul.f32 %v3441_v47, %v3441_v47 }
  0x26   : > { %349 = vadd.xlane.f32.xlu0 %v348_v49  ;;  %v384_v49 = vmul.f32 %v3363_v23, %v3363_v23 }
  0x28   : > { %v427_v62 = vsel %vm306_vm0, %v384_v49, 0.0  ;;  %v400_v49 = vmul.f32 %v3467_v55, %v3467_v55 }
  0x29   : > { %361 = vadd.xlane.f32.xlu1 %v360_v56  ;;  %v420_v56 = vadd.f32 %v419_v48, %v379_v43  ;;  %v395_v43 = vmul.f32 %v3455_v52, %v3455_v52  ;;  %v451_v48 = vsel %vm306_vm0, %v396_v33, 0.0 }
  0x2a   : > { %357 = vadd.xlane.f32.xlu0 %v356_v57  ;;  %v431_v57 = vsel %vm306_vm0, %v386_v45, 0.0  ;;  %v402_v45 = vmul.f32 %v3462_v54, %v3462_v54  ;;  %v459_v60 = vsel %vm306_vm0, %v400_v49, 0.0 }
  0x2d   : > { %369 = vadd.xlane.f32.xlu1 %v368_v3  ;;  %v432_v3 = vadd.f32 %v431_v57, %v385_v53  ;;  %v401_v53 = vmul.f32 %v3474_v58, %v3474_v58  ;;  %v463_v57 = vsel %vm306_vm0, %v402_v45, 0.0 }
  0x2e   : > { %365 = vadd.xlane.f32.xlu0 %v364_v8  ;;  %v428_v8 = vadd.f32 %v427_v62, %v383_v59  ;;  %v399_v59 = vmul.f32 %v3483_v61, %v3483_v61 }
  0x2f   : > { %v464_v62 = vadd.f32 %v463_v57, %v401_v53 }
  0x30   : > { %v460_v63 = vadd.f32 %v459_v60, %v399_v59 }
  0x31   : > { %409 = vadd.xlane.f32.xlu1 %v408_v19  ;;  %v440_v19 = vadd.f32 %v439_v9, %v389_v7 }
  0x32   : > { %405 = vadd.xlane.f32.xlu0 %v404_v24  ;;  %v436_v24 = vadd.f32 %v435_v16, %v387_v12 }
  0x35   : > { %417 = vadd.xlane.f32.xlu1 %v416_v35  ;;  %v448_v35 = vadd.f32 %v447_v25, %v393_v21 }
  0x36   : > { %413 = vadd.xlane.f32.xlu0 %v412_v40  ;;  %v444_v40 = vadd.f32 %v443_v32, %v391_v27 }
  0x39   : > { %425 = vadd.xlane.f32.xlu1 %v424_v51  ;;  %v456_v51 = vadd.f32 %v455_v41, %v397_v37 }
  0x3a   : > { %421 = vadd.xlane.f32.xlu0 %v420_v56  ;;  %v452_v56 = vadd.f32 %v451_v48, %v395_v43 }
  0x3d   : > { %433 = vadd.xlane.f32.xlu1 %v432_v3  ;;  %v3239_v3 = vmov 0  }
  0x3e   : > { %429 = vadd.xlane.f32.xlu0 %v428_v8  ;;  %3102 = vset.pattern.permute.xlu1 %v3239_v3 }
  0x3f   : > { %3101 = vset.pattern.permute.xlu0 %v3239_v3 }
  0x41   : > { %441 = vadd.xlane.f32.xlu1 %v440_v19 }
  0x42   : > { %437 = vadd.xlane.f32.xlu0 %v436_v24 }
  0x45   : > { %449 = vadd.xlane.f32.xlu1 %v448_v35 }
  0x46   : > { %445 = vadd.xlane.f32.xlu0 %v444_v40 }
  0x49   : > { %457 = vadd.xlane.f32.xlu1 %v456_v51 }
  0x4a   : > { %453 = vadd.xlane.f32.xlu0 %v452_v56 }
  0x4d   : > { %465 = vadd.xlane.f32.xlu1 %v464_v62 }
  0x4e   : > { %461 = vadd.xlane.f32.xlu0 %v460_v63 }
  0x9e   : > { %v318_v7 = vpop.xlane.xlu1 %317 }
  0x9f   : > { %v310_v8 = vpop.xlane.xlu0 %309  ;;  %v469_v51 = vmul.f32 0.0051020407, %v318_v7 }
  0xa0   : > { %v467_v40 = vmul.f32 0.0051020407, %v310_v8 }
  0xa1   : > { %v501_v54 = vmul.f32 %v469_v51, %v469_v51 }
  0xa2   : > { %v322_v9 = vpop.xlane.xlu1 %321  ;;  %v499_v53 = vmul.f32 %v467_v40, %v467_v40 }
  0xa3   : > { %v314_v12 = vpop.xlane.xlu0 %313  ;;  %v470_v43 = vmul.f32 0.0051020407, %v322_v9 }
  0xa4   : > { %v468_v35 = vmul.f32 0.0051020407, %v314_v12 }
  0xa5   : > { %v502_v63 = vmul.f32 %v470_v43, %v470_v43 }
  0xa6   : > { %v330_v13 = vpop.xlane.xlu1 %329  ;;  %v500_v45 = vmul.f32 %v468_v35, %v468_v35 }
  0xa7   : > { %v326_v16 = vpop.xlane.xlu0 %325  ;;  %v472_v59 = vmul.f32 0.0051020407, %v330_v13 }
  0xa8   : > { %v471_v3 = vmul.f32 0.0051020407, %v326_v16 }
  0xa9   : > { %v504_v35 = vmul.f32 %v472_v59, %v472_v59 }
  0xaa   : > { %v338_v17 = vpop.xlane.xlu1 %337  ;;  %v503_v40 = vmul.f32 %v471_v3, %v471_v3 }
  0xab   : > { %v334_v19 = vpop.xlane.xlu0 %333 }
  0xae   : > { %v346_v21 = vpop.xlane.xlu1 %345 }
  0xaf   : > { %v342_v24 = vpop.xlane.xlu0 %341 }
  0xb2   : > { %v3567_v25 = vpop.xlane.xlu1 %353 }
  0xb3   : > { %v3569_v27 = vpop.xlane.xlu0 %349 }
  0xb6   : > { %v3571_v29 = vpop.xlane.xlu1 %361 }
  0xb7   : > { %v3573_v32 = vpop.xlane.xlu0 %357 }
  0xba   : > { %v3575_v33 = vpop.xlane.xlu1 %369 }
  0xbb   : > { %v3577_v37 = vpop.xlane.xlu0 %365 }
  0xbe   : > { %v410_v41 = vpop.xlane.xlu1 %409 }
  0xbf   : > { %v484_v48 = vmul.f32 0.0051020407, %v410_v41  ;;  %v406_v49 = vpop.xlane.xlu0 %405 }
  0xc0   : > { %v483_v56 = vmul.f32 0.0051020407, %v406_v49  ;;  %v473_v49 = vmul.f32 0.0051020407, %v334_v19 }
  0xc1   : > { %v516_v57 = vsub.f32 %v484_v48, %v500_v45 }
  0xc2   : > { %v515_v60 = vsub.f32 %v483_v56, %v499_v53  ;;  %v418_v62 = vpop.xlane.xlu1 %417 }
  0xc3   : > { %v532_v55 = vmax.f32 %v516_v57, 0.0  ;;  %v486_v61 = vmul.f32 0.0051020407, %v418_v62  ;;  %v414_v12 = vpop.xlane.xlu0 %413 }
  0xc4   : > { %v531_v58 = vmax.f32 %v515_v60, 0.0  ;;  %v485_v8 = vmul.f32 0.0051020407, %v414_v12 }
  0xc5   : > { %v564_v47 = vadd.f32 1e-05, %v532_v55  ;;  %v518_v9 = vsub.f32 %v486_v61, %v502_v63  ;;  %v474_v55 = vmul.f32 0.0051020407, %v338_v17  ;;  %v476_v61 = vmul.f32 0.0051020407, %v346_v21 }
  0xc6   : > { %v563_v41 = vadd.f32 1e-05, %v531_v58  ;;  %v517_v52 = vsub.f32 %v485_v8, %v501_v54  ;;  %v426_v7 = vpop.xlane.xlu1 %425  ;;  %v505_v58 = vmul.f32 %v473_v49, %v473_v49  ;;  %v548_v17 = vld [vmem:[%s5437_s1 + $0x8] sm:$0xff] }
  0xc7   : > { %3103 = vrsqrt.f32 %v564_v47  ;;  %v534_v45 = vmax.f32 %v518_v9, 0.0  ;;  %v488_v13 = vmul.f32 0.0051020407, %v426_v7  ;;  %v422_v48 = vpop.xlane.xlu0 %421  ;;  %v475_v47 = vmul.f32 0.0051020407, %v342_v24  ;;  %v547_v24 = vld [vmem:[%s5437_s1] sm:$0xff] }
  0xc8   : > { %3105 = vrsqrt.f32 %v563_v41  ;;  %v533_v16 = vmax.f32 %v517_v52, 0.0  ;;  %v487_v43 = vmul.f32 0.0051020407, %v422_v48  ;;  %v508_v8 = vmul.f32 %v476_v61, %v476_v61 }
  0xc9   : > { %v520_v53 = vsub.f32 %v488_v13, %v504_v35  ;;  %v566_v56 = vadd.f32 1e-05, %v534_v45  ;;  %v478_v9 = vmul.f32 0.0051020407, %v3567_v25  ;;  %v506_v21 = vmul.f32 %v474_v55, %v474_v55 }
  0xca   : > { %v565_v51 = vadd.f32 1e-05, %v533_v16  ;;  %v519_v57 = vsub.f32 %v487_v43, %v503_v40  ;;  %v434_v60 = vpop.xlane.xlu1 %433  ;;  %v480_v7 = vmul.f32 0.0051020407, %v3571_v29  ;;  %v507_v45 = vmul.f32 %v475_v47, %v475_v47 }
  0xcb   : > { %v430_v59 = vpop.xlane.xlu0 %429  ;;  %v536_v63 = vmax.f32 %v520_v53, 0.0  ;;  %v490_v19 = vmul.f32 0.0051020407, %v434_v60  ;;  %v477_v61 = vmul.f32 0.0051020407, %v3569_v27 }
  0xcc   : > { %3107 = vrsqrt.f32 %v565_v51  ;;  %v535_v54 = vmax.f32 %v519_v57, 0.0  ;;  %v489_v62 = vmul.f32 0.0051020407, %v430_v59  ;;  %v510_v51 = vmul.f32 %v478_v9, %v478_v9 }
  0xcd   : > { %3109 = vrsqrt.f32 %v566_v56  ;;  %v568_v13 = vadd.f32 1e-05, %v536_v63  ;;  %v522_v25 = vsub.f32 %v490_v19, %v506_v21  ;;  %v512_v59 = vmul.f32 %v480_v7, %v480_v7 }
  0xce   : > { %v567_v3 = vadd.f32 1e-05, %v535_v54  ;;  %v521_v12 = vsub.f32 %v489_v62, %v505_v58  ;;  %v442_v52 = vpop.xlane.xlu1 %441  ;;  %v549_v58 = vld [vmem:[%s5437_s1 + $0x10] sm:$0xff]  ;;  %v482_v54 = vmul.f32 0.0051020407, %v3575_v33  ;;  %v509_v21 = vmul.f32 %v477_v61, %v477_v61  ;;  %v550_v33 = vld [vmem:[%s5437_s1 + $0x18] sm:$0xff] }
  0xcf   : > { %v492_v35 = vmul.f32 0.0051020407, %v442_v52  ;;  %v438_v41 = vpop.xlane.xlu0 %437  ;;  %v538_v19 = vmax.f32 %v522_v25, 0.0  ;;  %v479_v7 = vmul.f32 0.0051020407, %v3573_v32 }
  0xd0   : > { %v491_v49 = vmul.f32 0.0051020407, %v438_v41  ;;  %3111 = vrsqrt.f32 %v567_v3  ;;  %v537_v43 = vmax.f32 %v521_v12, 0.0 }
  0xd1   : > { %v3104_v40 = vpop.eup %3103  ;;  %v524_v48 = vsub.f32 %v492_v35, %v508_v8  ;;  %3113 = vrsqrt.f32 %v568_v13 }
  0xd2   : > { %v3106_v16 = vpop.eup %3105  ;;  %v450_v53 = vpop.xlane.xlu1 %449  ;;  %v596_v56 = vmul.f32 %v3104_v40, %v548_v17  ;;  %v523_v47 = vsub.f32 %v491_v49, %v507_v45  ;;  %v569_v12 = vadd.f32 1e-05, %v537_v43 }
  0xd3   : > { %v540_v57 = vmax.f32 %v524_v48, 0.0  ;;  %v494_v60 = vmul.f32 0.0051020407, %v450_v53  ;;  %v446_v55 = vpop.xlane.xlu0 %445  ;;  %v595_v29 = vmul.f32 %v3106_v16, %v547_v24  ;;  %v514_v24 = vmul.f32 %v482_v54, %v482_v54 }
  0xd4   : > { %618 = vperm.xlu1 %3102, %v596_v56   ;;  %v493_v52 = vmul.f32 0.0051020407, %v446_v55  ;;  %v539_v40 = vmax.f32 %v523_v47, 0.0  ;;  %v570_v48 = vadd.f32 1e-05, %v538_v19  ;;  %v551_v55 = vld [vmem:[%s5437_s1 + $0x20] sm:$0xff] }
  0xd5   : > { %v572_v62 = vadd.f32 1e-05, %v540_v57  ;;  %v526_v63 = vsub.f32 %v494_v60, %v510_v51  ;;  %613 = vperm.xlu0 %3101, %v595_v29   ;;  %v511_v57 = vmul.f32 %v479_v7, %v479_v7  ;;  %v481_v60 = vmul.f32 0.0051020407, %v3577_v37 }
  0xd6   : > { %v3108_v3 = vpop.eup %3107  ;;  %v458_v8 = vpop.xlane.xlu1 %457  ;;  %v525_v49 = vsub.f32 %v493_v52, %v509_v21  ;;  %v571_v29 = vadd.f32 1e-05, %v539_v40  ;;  %v558_v21 = vld [vmem:[%s5437_s1 + $0x58] sm:$0xff] }
  0xd7   : > { %3115 = vrsqrt.f32 %v572_v62  ;;  %v542_v27 = vmax.f32 %v526_v63, 0.0  ;;  %v496_v9 = vmul.f32 0.0051020407, %v458_v8  ;;  %v454_v35 = vpop.xlane.xlu0 %453  ;;  %v597_v41 = vmul.f32 %v3108_v3, %v549_v58  ;;  %v3110_v17 = vpop.eup %3109  ;;  %v556_v3 = vld [vmem:[%s5437_s1 + $0x48] sm:$0xff] }
  0xd8   : > { %3117 = vrsqrt.f32 %v569_v12  ;;  %v495_v16 = vmul.f32 0.0051020407, %v454_v35  ;;  %v598_v51 = vmul.f32 %v3110_v17, %v550_v33  ;;  %v541_v58 = vmax.f32 %v525_v49, 0.0  ;;  %v552_v12 = vld [vmem:[%s5437_s1 + $0x28] sm:$0xff]  ;;  %v553_v33 = vld [vmem:[%s5437_s1 + $0x30] sm:$0xff] }
  0xd9   : > { %v574_v45 = vadd.f32 1e-05, %v542_v27  ;;  %v528_v13 = vsub.f32 %v496_v9, %v512_v59  ;;  %623 = vperm.xlu1 %3102, %v597_v41   ;;  %v513_v19 = vmul.f32 %v481_v60, %v481_v60  ;;  %v560_v49 = vld [vmem:[%s5437_s1 + $0x68] sm:$0xff]  ;;  %v555_v60 = vld [vmem:[%s5437_s1 + $0x40] sm:$0xff] }
  0xda   : > { %v466_v25 = vpop.xlane.xlu1 %465  ;;  %v3112_v32 = vpop.eup %3111  ;;  %v527_v54 = vsub.f32 %v495_v16, %v511_v57  ;;  %v573_v27 = vadd.f32 1e-05, %v541_v58  ;;  %v562_v57 = vld [vmem:[%s5437_s1 + $0x78] sm:$0xff]  ;;  %v557_v58 = vld [vmem:[%s5437_s1 + $0x50] sm:$0xff] }
  0xdb   : > { %3119 = vrsqrt.f32 %v574_v45  ;;  %v544_v43 = vmax.f32 %v528_v13, 0.0  ;;  %v498_v53 = vmul.f32 0.0051020407, %v466_v25  ;;  %v462_v56 = vpop.xlane.xlu0 %461  ;;  %v599_v63 = vmul.f32 %v3112_v32, %v551_v55  ;;  %v3114_v37 = vpop.eup %3113  ;;  %v554_v25 = vld [vmem:[%s5437_s1 + $0x38] sm:$0xff] }
  0xdc   : > { %3121 = vrsqrt.f32 %v570_v48  ;;  %v497_v62 = vmul.f32 0.0051020407, %v462_v56  ;;  %v543_v9 = vmax.f32 %v527_v54, 0.0  ;;  %v600_v17 = vmul.f32 %v3114_v37, %v552_v12  ;;  %v561_v37 = vld [vmem:[%s5437_s1 + $0x70] sm:$0xff] }
  0xdd   : > { %v576_v61 = vadd.f32 1e-05, %v544_v43  ;;  %v530_v59 = vsub.f32 %v498_v53, %v514_v24  ;;  %628 = vperm.xlu1 %3102, %v598_v51   ;;  %v3240_v12 = vmov 0.0  }
  0xde   : > { %v529_v35 = vsub.f32 %v497_v62, %v513_v19  ;;  %v575_v40 = vadd.f32 1e-05, %v543_v9  ;;  %835 = vmatprep.mubr.f32.mxu0 %v3240_v12  ;;  %979 = vmatprep.mubr.f32.mxu1 %v3240_v12 }
  0xdf   : > { %3123 = vrsqrt.f32 %v576_v61  ;;  %v546_v47 = vmax.f32 %v530_v59, 0.0 }
  0xe0   : > { %3125 = vrsqrt.f32 %v571_v29  ;;  %v545_v45 = vmax.f32 %v529_v35, 0.0 }
  0xe1   : > { %v3116_v52 = vpop.eup %3115  ;;  %v578_v8 = vadd.f32 1e-05, %v546_v47  ;;  %633 = vperm.xlu1 %3102, %v599_v63   ;;  %v559_v47 = vld [vmem:[%s5437_s1 + $0x60] sm:$0xff] }
  0xe2   : > { %v604_v41 = vmul.f32 %v3116_v52, %v556_v3  ;;  %v3118_v7 = vpop.eup %3117  ;;  %v577_v53 = vadd.f32 1e-05, %v545_v45 }
  0xe3   : > { %3127 = vrsqrt.f32 %v578_v8  ;;  %v601_v48 = vmul.f32 %v3118_v7, %v553_v33 }
  0xe4   : > { %658 = vperm.xlu0 %3101, %v604_v41   ;;  %3129 = vrsqrt.f32 %v573_v27 }
  0xe5   : > { %v3120_v24 = vpop.eup %3119  ;;  %638 = vperm.xlu1 %3102, %v600_v17   ;;  %3131 = vrsqrt.f32 %v575_v40 }
  0xe6   : > { %v606_v13 = vmul.f32 %v3120_v24, %v558_v21  ;;  %v3122_v16 = vpop.eup %3121  ;;  %3133 = vrsqrt.f32 %v577_v53 }
  0xe7   : > { %v602_v32 = vmul.f32 %v3122_v16, %v554_v25 }
  0xe8   : > { %668 = vperm.xlu0 %3101, %v606_v13  }
  0xe9   : > { %v3124_v43 = vpop.eup %3123  ;;  %643 = vperm.xlu1 %3102, %v601_v48  }
  0xea   : > { %v608_v56 = vmul.f32 %v3124_v43, %v560_v49  ;;  %v3126_v51 = vpop.eup %3125 }
  0xeb   : > { %v603_v61 = vmul.f32 %v3126_v51, %v555_v60 }
  0xec   : > { %678 = vperm.xlu0 %3101, %v608_v56  }
  0xed   : > { %v3128_v55 = vpop.eup %3127  ;;  %648 = vperm.xlu1 %3102, %v602_v32  }
  0xee   : > { %v610_v29 = vmul.f32 %v3128_v55, %v562_v57  ;;  %v3130_v59 = vpop.eup %3129 }
  0xef   : > { %v605_v54 = vmul.f32 %v3130_v59, %v557_v58  ;;  %v3132_v62 = vpop.eup %3131 }
  0xf0   : > { %688 = vperm.xlu0 %3101, %v610_v29   ;;  %v607_v63 = vmul.f32 %v3132_v62, %v559_v47  ;;  %v3134_v3 = vpop.eup %3133 }
  0xf1   : > { %653 = vperm.xlu1 %3102, %v603_v61   ;;  %v609_v19 = vmul.f32 %v3134_v3, %v561_v37  ;;  %v5548_v37 = vld [vmem:[#allocation6_spill] sm:$0xff] }
  0xf5   : > { %663 = vperm.xlu1 %3102, %v605_v54  }
  0xf9   : > { %673 = vperm.xlu1 %3102, %v607_v63  }
  0xfd   : > { %683 = vperm.xlu1 %3102, %v609_v19  }
 0x153   : > { %v619_v52 = vpop.permute.xlu1 %618 }
 0x154   : > { %v614_v8 = vpop.permute.xlu0 %613  ;;  %v694_v27 = vmul.f32 %v619_v52, %v3324_v11  ;;  %v693_v9 = vmul.f32 %v619_v52, %v3319_v10  ;;  %v5549_v52 = vld [vmem:[#allocation4_spill] sm:$0xff] }
 0x155   : > { %v692_v35 = vmul.f32 %v614_v8, %v3299_v4  ;;  %v691_v41 = vmul.f32 %v614_v8, %v3292_v2 }
 0x157   : > { %v3043_v17 = vpack.c.bf16 %v694_v27, %v692_v35  ;;  %v3045_v21 = vpack.c.bf16 %v693_v9, %v691_v41  ;;  %v5551_v9 = vld [vmem:[#allocation5_spill] sm:$0xff] }
 0x158   : > { %v624_v7 = vpop.permute.xlu1 %623 }
 0x159   : > { %3044 = vmatprep.subr.bf16.mxu0 %v3043_v17  ;;  %3075 = vmatprep.subr.bf16.mxu1 %v3043_v17  ;;  %v695_v24 = vmul.f32 %v624_v7, %v3282_v0  ;;  %v696_v40 = vmul.f32 %v624_v7, %v3287_v1  ;;  %v747_v7 = vld [vmem:[%s3678_s27 + $0xc0] sm:$0xff] }
 0x15a   : > { %3046 = vmatpush1.bf16.msra.mxu0 %v3045_v21  ;;  %3083 = vmatpush1.bf16.msra.mxu1 %v3045_v21  ;;  %v723_v21 = vld [vmem:[%s3678_s27] sm:$0xff] }
 0x15c   : > { %v629_v33 = vpop.permute.xlu1 %628 }
 0x15d   : > { %v697_v11 = vmul.f32 %v629_v33, %v3304_v5  ;;  %v698_v10 = vmul.f32 %v629_v33, %v3309_v6  ;;  %v748_v33 = vld [vmem:[%s3678_s27 + $0xc8] sm:$0xff] }
 0x15f   : > { %v3047_v45 = vpack.c.bf16 %v698_v10, %v696_v40  ;;  %v3049_v4 = vpack.c.bf16 %v697_v11, %v695_v24  ;;  %v724_v24 = vld [vmem:[%s3678_s27 + $0x8] sm:$0xff]  ;;  %v725_v40 = vld [vmem:[%s3678_s27 + $0x10] sm:$0xff]  ;;  %v726_v10 = vld [vmem:[%s3678_s27 + $0x18] sm:$0xff] }
 0x160   : > { %v634_v13 = vpop.permute.xlu1 %633  ;;  %v749_v11 = vld [vmem:[%s3678_s27 + $0xd0] sm:$0xff] }
 0x161   : > { %3048 = vmatprep.subr.bf16.mxu0 %v3047_v45  ;;  %3076 = vmatprep.subr.bf16.mxu1 %v3047_v45  ;;  %v699_v48 = vmul.f32 %v634_v13, %v3351_v20  ;;  %v700_v49 = vmul.f32 %v634_v13, %v3337_v15  ;;  %v750_v45 = vld [vmem:[%s3678_s27 + $0xd8] sm:$0xff]  ;;  %v751_v13 = vld [vmem:[%s3678_s27 + $0xe0] sm:$0xff] }
 0x162   : > { %3050 = vmatpush1.bf16.msra.mxu0 %v3049_v4  ;;  %3084 = vmatpush1.bf16.msra.mxu1 %v3049_v4  ;;  %v727_v4 = vld [vmem:[%s3678_s27 + $0x20] sm:$0xff] }
 0x163   : > { %v659_v16 = vpop.permute.xlu0 %658 }
 0x164   : > { %v639_v2 = vpop.permute.xlu1 %638  ;;  %v709_v32 = vmul.f32 %v659_v16, %v3396_v34  ;;  %v710_v60 = vmul.f32 %v659_v16, %v3384_v30  ;;  %v754_v16 = vld [vmem:[%s3678_s27 + $0xf8] sm:$0xff] }
 0x165   : > { %v701_v0 = vmul.f32 %v639_v2, %v3344_v18  ;;  %v702_v1 = vmul.f32 %v639_v2, %v3332_v14  ;;  %v728_v2 = vld [vmem:[%s3678_s27 + $0x28] sm:$0xff] }
 0x167   : > { %v3051_v5 = vpack.c.bf16 %v702_v1, %v700_v49  ;;  %v3053_v25 = vpack.c.bf16 %v701_v0, %v699_v48  ;;  %v669_v56 = vpop.permute.xlu0 %668  ;;  %v752_v48 = vld [vmem:[%s3678_s27 + $0xe8] sm:$0xff]  ;;  %v729_v49 = vld [vmem:[%s3678_s27 + $0x30] sm:$0xff]  ;;  %v730_v1 = vld [vmem:[%s3678_s27 + $0x38] sm:$0xff] }
 0x168   : > { %v644_v6 = vpop.permute.xlu1 %643  ;;  %v713_v29 = vmul.f32 %v669_v56, %v3422_v42  ;;  %v714_v34 = vmul.f32 %v669_v56, %v3410_v38  ;;  %v5546_v38 = vld [vmem:[#allocation3_spill] sm:$0xff]  ;;  %v753_v0 = vld [vmem:[%s3678_s27 + $0xf0] sm:$0xff]  ;;  %v734_v56 = vld [vmem:[%s3678_s27 + $0x58] sm:$0xff] }
 0x169   : > { %3052 = vmatprep.subr.bf16.mxu0 %v3051_v5  ;;  %3077 = vmatprep.subr.bf16.mxu1 %v3051_v5  ;;  %v703_v53 = vmul.f32 %v644_v6, %v3377_v28  ;;  %v704_v20 = vmul.f32 %v644_v6, %v3363_v23  ;;  %v731_v5 = vld [vmem:[%s3678_s27 + $0x40] sm:$0xff]  ;;  %v732_v6 = vld [vmem:[%s3678_s27 + $0x48] sm:$0xff] }
 0x16a   : > { %3054 = vmatpush1.bf16.msra.mxu0 %v3053_v25  ;;  %3085 = vmatpush1.bf16.msra.mxu1 %v3053_v25  ;;  %v755_v25 = vld [vmem:[%s3678_s27 + $0x100] sm:$0xff] }
 0x16b   : > { %v679_v23 = vpop.permute.xlu0 %678 }
 0x16c   : > { %v649_v43 = vpop.permute.xlu1 %648  ;;  %v717_v58 = vmul.f32 %v679_v23, %v3448_v50  ;;  %v718_v42 = vmul.f32 %v679_v23, %v3436_v46  ;;  %v5550_v46 = vld [vmem:[#allocation7_spill] sm:$0xff]  ;;  %v739_v23 = vld [vmem:[%s3678_s27 + $0x80] sm:$0xff] }
 0x16d   : > { %v705_v15 = vmul.f32 %v649_v43, %v3370_v26  ;;  %v706_v18 = vmul.f32 %v649_v43, %v3358_v22  ;;  %v756_v43 = vld [vmem:[%s3678_s27 + $0x108] sm:$0xff] }
 0x16f   : > { %v3055_v14 = vpack.c.bf16 %v706_v18, %v704_v20  ;;  %v3057_v51 = vpack.c.bf16 %v705_v15, %v703_v53  ;;  %v689_v62 = vpop.permute.xlu0 %688  ;;  %v733_v53 = vld [vmem:[%s3678_s27 + $0x50] sm:$0xff]  ;;  %v758_v15 = vld [vmem:[%s3678_s27 + $0x118] sm:$0xff]  ;;  %v735_v18 = vld [vmem:[%s3678_s27 + $0x60] sm:$0xff] }
 0x170   : > { %v654_v57 = vpop.permute.xlu1 %653  ;;  %v721_v19 = vmul.f32 %v689_v62, %v5548_v37  ;;  %v722_v8 = vmul.f32 %v689_v62, %v5549_v52  ;;  %v757_v20 = vld [vmem:[%s3678_s27 + $0x110] sm:$0xff] }
 0x171   : > { %v707_v55 = vmul.f32 %v654_v57, %v3403_v36  ;;  %v708_v28 = vmul.f32 %v654_v57, %v3389_v31  ;;  %3056 = vmatprep.subr.bf16.mxu0 %v3055_v14  ;;  %3078 = vmatprep.subr.bf16.mxu1 %v3055_v14  ;;  %v759_v14 = vld [vmem:[%s3678_s27 + $0x120] sm:$0xff]  ;;  %v737_v57 = vld [vmem:[%s3678_s27 + $0x70] sm:$0xff] }
 0x172   : > { %3058 = vmatpush1.bf16.msra.mxu0 %v3057_v51  ;;  %3086 = vmatpush1.bf16.msra.mxu1 %v3057_v51  ;;  %v736_v51 = vld [vmem:[%s3678_s27 + $0x68] sm:$0xff]  ;;  %v769_v62 = vld [vmem:[%s3678_s27 + $0x170] sm:$0xff] }
 0x173   : > { %v3059_v26 = vpack.c.bf16 %v710_v60, %v708_v28  ;;  %v3061_v22 = vpack.c.bf16 %v709_v32, %v707_v55  ;;  %v760_v32 = vld [vmem:[%s3678_s27 + $0x128] sm:$0xff]  ;;  %v761_v60 = vld [vmem:[%s3678_s27 + $0x130] sm:$0xff]  ;;  %v738_v55 = vld [vmem:[%s3678_s27 + $0x78] sm:$0xff] }
 0x174   : > { %v664_v61 = vpop.permute.xlu1 %663  ;;  %v762_v28 = vld [vmem:[%s3678_s27 + $0x138] sm:$0xff] }
 0x175   : > { %v711_v59 = vmul.f32 %v664_v61, %v3429_v44  ;;  %v712_v30 = vmul.f32 %v664_v61, %v3415_v39  ;;  %3060 = vmatprep.subr.bf16.mxu0 %v3059_v26  ;;  %3079 = vmatprep.subr.bf16.mxu1 %v3059_v26  ;;  %v5547_v44 = vld [vmem:[#allocation2_spill] sm:$0xff]  ;;  %v741_v61 = vld [vmem:[%s3678_s27 + $0x90] sm:$0xff] }
 0x176   : > { %3062 = vmatpush1.bf16.msra.mxu0 %v3061_v22  ;;  %3087 = vmatpush1.bf16.msra.mxu1 %v3061_v22  ;;  %v763_v26 = vld [vmem:[%s3678_s27 + $0x140] sm:$0xff]  ;;  %v740_v22 = vld [vmem:[%s3678_s27 + $0x88] sm:$0xff] }
 0x177   : > { %v3063_v31 = vpack.c.bf16 %v714_v34, %v712_v30  ;;  %v3065_v36 = vpack.c.bf16 %v713_v29, %v711_v59  ;;  %v764_v29 = vld [vmem:[%s3678_s27 + $0x148] sm:$0xff]  ;;  %v765_v34 = vld [vmem:[%s3678_s27 + $0x150] sm:$0xff]  ;;  %v742_v59 = vld [vmem:[%s3678_s27 + $0x98] sm:$0xff] }
 0x178   : > { %v674_v54 = vpop.permute.xlu1 %673  ;;  %v766_v30 = vld [vmem:[%s3678_s27 + $0x158] sm:$0xff] }
 0x179   : > { %v715_v47 = vmul.f32 %v674_v54, %v5546_v38  ;;  %v716_v63 = vmul.f32 %v674_v54, %v5547_v44  ;;  %3064 = vmatprep.subr.bf16.mxu0 %v3063_v31  ;;  %3080 = vmatprep.subr.bf16.mxu1 %v3063_v31  ;;  %v743_v31 = vld [vmem:[%s3678_s27 + $0xa0] sm:$0xff]  ;;  %v768_v54 = vld [vmem:[%s3678_s27 + $0x168] sm:$0xff]  ;;  %v746_v38 = vld [vmem:[%s3678_s27 + $0xb8] sm:$0xff] }
 0x17a   : > { %3066 = vmatpush1.bf16.msra.mxu0 %v3065_v36  ;;  %3088 = vmatpush1.bf16.msra.mxu1 %v3065_v36  ;;  %v767_v36 = vld [vmem:[%s3678_s27 + $0x160] sm:$0xff] }
 0x17b   : > { %v3067_v39 = vpack.c.bf16 %v718_v42, %v716_v63  ;;  %v3069_v3 = vpack.c.bf16 %v717_v58, %v715_v47  ;;  %v744_v58 = vld [vmem:[%s3678_s27 + $0xa8] sm:$0xff]  ;;  %v745_v42 = vld [vmem:[%s3678_s27 + $0xb0] sm:$0xff]  ;;  %v770_v47 = vld [vmem:[%s3678_s27 + $0x178] sm:$0xff] }
 0x17c   : > { %v684_v50 = vpop.permute.xlu1 %683 }
 0x17d   : > { %v719_v27 = vmul.f32 %v684_v50, %v5550_v46  ;;  %v720_v35 = vmul.f32 %v684_v50, %v5551_v9  ;;  %3068 = vmatprep.subr.bf16.mxu0 %v3067_v39  ;;  %3081 = vmatprep.subr.bf16.mxu1 %v3067_v39 }
 0x17e   : > { %3070 = vmatpush1.bf16.msra.mxu0 %v3069_v3  ;;  %3089 = vmatpush1.bf16.msra.mxu1 %v3069_v3 }
 0x17f   : > { %v3071_v41 = vpack.c.bf16 %v722_v8, %v720_v35  ;;  %v3073_v17 = vpack.c.bf16 %v721_v19, %v719_v27 }
 0x181   : > { %3072 = vmatprep.subr.bf16.mxu0 %v3071_v41  ;;  %3082 = vmatprep.subr.bf16.mxu1 %v3071_v41 }
 0x182   : > { %3074 = vmatpush1.bf16.msra.mxu0 %v3073_v17  ;;  %3090 = vmatpush1.bf16.msra.mxu1 %v3073_v17 }
 0x185   : > { %836 = vmatmul.mubr.f32.vlgmr.msra.gmra.mrb[0].mxu0 %v723_v21  ;;  %980 = vmatmul.mubr.f32.vlgmr.msra.gmra.mrb[0].mxu1 %v747_v7 }
 0x186   : > { %985 = vmatprep.mubr.f32.mxu1 %v3240_v12  ;;  %841 = vmatprep.mubr.f32.mxu0 %v3240_v12 }
 0x189   : > { %986 = vmatmul.mubr.f32.gmra.mrb[2].mxu1 %v748_v33  ;;  %842 = vmatmul.mubr.f32.gmra.mrb[2].mxu0 %v724_v24 }
 0x18a   : > { %847 = vmatprep.mubr.f32.mxu0 %v3240_v12  ;;  %991 = vmatprep.mubr.f32.mxu1 %v3240_v12 }
 0x18d   : > { %848 = vmatmul.mubr.f32.gmra.mrb[4].mxu0 %v725_v40  ;;  %992 = vmatmul.mubr.f32.gmra.mrb[4].mxu1 %v749_v11 }
 0x18e   : > { %853 = vmatprep.mubr.f32.mxu0 %v3240_v12  ;;  %997 = vmatprep.mubr.f32.mxu1 %v3240_v12 }
 0x191   : > { %854 = vmatmul.mubr.f32.gmra.mrb[6].mxu0 %v726_v10  ;;  %998 = vmatmul.mubr.f32.gmra.mrb[6].mxu1 %v750_v45 }
 0x192   : > { %859 = vmatprep.mubr.f32.mxu0 %v3240_v12  ;;  %1003 = vmatprep.mubr.f32.mxu1 %v3240_v12 }
 0x195   : > { %860 = vmatmul.mubr.f32.gmra.mrb[8].mxu0 %v727_v4  ;;  %1004 = vmatmul.mubr.f32.gmra.mrb[8].mxu1 %v751_v13 }
 0x196   : > { %865 = vmatprep.mubr.f32.mxu0 %v3240_v12  ;;  %1009 = vmatprep.mubr.f32.mxu1 %v3240_v12 }
 0x199   : > { %866 = vmatmul.mubr.f32.gmra.mrb[10].mxu0 %v728_v2  ;;  %1010 = vmatmul.mubr.f32.gmra.mrb[10].mxu1 %v752_v48 }
 0x19a   : > { %871 = vmatprep.mubr.f32.mxu0 %v3240_v12  ;;  %1015 = vmatprep.mubr.f32.mxu1 %v3240_v12 }
 0x19d   : > { %872 = vmatmul.mubr.f32.gmra.mrb[12].mxu0 %v729_v49  ;;  %1016 = vmatmul.mubr.f32.gmra.mrb[12].mxu1 %v753_v0 }
 0x19e   : > { %877 = vmatprep.mubr.f32.mxu0 %v3240_v12  ;;  %1021 = vmatprep.mubr.f32.mxu1 %v3240_v12 }
 0x1a1   : > { %878 = vmatmul.mubr.f32.gmra.mrb[14].mxu0 %v730_v1  ;;  %1022 = vmatmul.mubr.f32.gmra.mrb[14].mxu1 %v754_v16 }
 0x1a2   : > { %883 = vmatprep.mubr.f32.mxu0 %v3240_v12  ;;  %1027 = vmatprep.mubr.f32.mxu1 %v3240_v12 }
 0x1a5   : > { %884 = vmatmul.mubr.f32.gmra.mrb[16].mxu0 %v731_v5  ;;  %1028 = vmatmul.mubr.f32.gmra.mrb[16].mxu1 %v755_v25 }
 0x1a6   : > { %889 = vmatprep.mubr.f32.mxu0 %v3240_v12  ;;  %1033 = vmatprep.mubr.f32.mxu1 %v3240_v12 }
 0x1a9   : > { %890 = vmatmul.mubr.f32.gmra.mrb[18].mxu0 %v732_v6  ;;  %1034 = vmatmul.mubr.f32.gmra.mrb[18].mxu1 %v756_v43 }
 0x1aa   : > { %895 = vmatprep.mubr.f32.mxu0 %v3240_v12  ;;  %1039 = vmatprep.mubr.f32.mxu1 %v3240_v12 }
 0x1ad   : > { %896 = vmatmul.mubr.f32.gmra.mrb[20].mxu0 %v733_v53  ;;  %1040 = vmatmul.mubr.f32.gmra.mrb[20].mxu1 %v757_v20 }
 0x1ae   : > { %901 = vmatprep.mubr.f32.mxu0 %v3240_v12  ;;  %1045 = vmatprep.mubr.f32.mxu1 %v3240_v12 }
 0x1b1   : > { %902 = vmatmul.mubr.f32.gmra.mrb[22].mxu0 %v734_v56  ;;  %1046 = vmatmul.mubr.f32.gmra.mrb[22].mxu1 %v758_v15 }
 0x1b2   : > { %907 = vmatprep.mubr.f32.mxu0 %v3240_v12  ;;  %1051 = vmatprep.mubr.f32.mxu1 %v3240_v12 }
 0x1b5   : > { %908 = vmatmul.mubr.f32.gmra.mrb[24].mxu0 %v735_v18  ;;  %1052 = vmatmul.mubr.f32.gmra.mrb[24].mxu1 %v759_v14 }
 0x1b6   : > { %913 = vmatprep.mubr.f32.mxu0 %v3240_v12  ;;  %1057 = vmatprep.mubr.f32.mxu1 %v3240_v12 }
 0x1b9   : > { %914 = vmatmul.mubr.f32.gmra.mrb[26].mxu0 %v736_v51  ;;  %1058 = vmatmul.mubr.f32.gmra.mrb[26].mxu1 %v760_v32 }
 0x1ba   : > { %919 = vmatprep.mubr.f32.mxu0 %v3240_v12  ;;  %1063 = vmatprep.mubr.f32.mxu1 %v3240_v12 }
 0x1bd   : > { %920 = vmatmul.mubr.f32.gmra.mrb[28].mxu0 %v737_v57  ;;  %1064 = vmatmul.mubr.f32.gmra.mrb[28].mxu1 %v761_v60 }
 0x1be   : > { %925 = vmatprep.mubr.f32.mxu0 %v3240_v12  ;;  %1069 = vmatprep.mubr.f32.mxu1 %v3240_v12 }
 0x1c1   : > { %926 = vmatmul.mubr.f32.gmra.mrb[30].mxu0 %v738_v55  ;;  %1070 = vmatmul.mubr.f32.gmra.mrb[30].mxu1 %v762_v28 }
 0x1c2   : > { %931 = vmatprep.mubr.f32.mxu0 %v3240_v12  ;;  %1075 = vmatprep.mubr.f32.mxu1 %v3240_v12 }
 0x1c5   : > { %932 = vmatmul.mubr.f32.gmra.mrb[32].mxu0 %v739_v23  ;;  %1076 = vmatmul.mubr.f32.gmra.mrb[32].mxu1 %v763_v26 }
 0x1c6   : > { %937 = vmatprep.mubr.f32.mxu0 %v3240_v12  ;;  %1081 = vmatprep.mubr.f32.mxu1 %v3240_v12 }
 0x1c9   : > { %938 = vmatmul.mubr.f32.gmra.mrb[34].mxu0 %v740_v22  ;;  %1082 = vmatmul.mubr.f32.gmra.mrb[34].mxu1 %v764_v29 }
 0x1ca   : > { %943 = vmatprep.mubr.f32.mxu0 %v3240_v12  ;;  %1087 = vmatprep.mubr.f32.mxu1 %v3240_v12 }
 0x1cd   : > { %944 = vmatmul.mubr.f32.gmra.mrb[36].mxu0 %v741_v61  ;;  %1088 = vmatmul.mubr.f32.gmra.mrb[36].mxu1 %v765_v34 }
 0x1ce   : > { %949 = vmatprep.mubr.f32.mxu0 %v3240_v12  ;;  %1093 = vmatprep.mubr.f32.mxu1 %v3240_v12 }
 0x1d1   : > { %950 = vmatmul.mubr.f32.gmra.mrb[38].mxu0 %v742_v59  ;;  %1094 = vmatmul.mubr.f32.gmra.mrb[38].mxu1 %v766_v30 }
 0x1d2   : > { %955 = vmatprep.mubr.f32.mxu0 %v3240_v12  ;;  %1099 = vmatprep.mubr.f32.mxu1 %v3240_v12 }
 0x1d5   : > { %956 = vmatmul.mubr.f32.gmra.mrb[40].mxu0 %v743_v31  ;;  %1100 = vmatmul.mubr.f32.gmra.mrb[40].mxu1 %v767_v36 }
 0x1d6   : > { %961 = vmatprep.mubr.f32.mxu0 %v3240_v12  ;;  %1105 = vmatprep.mubr.f32.mxu1 %v3240_v12 }
 0x1d9   : > { %962 = vmatmul.mubr.f32.gmra.mrb[42].mxu0 %v744_v58  ;;  %1106 = vmatmul.mubr.f32.gmra.mrb[42].mxu1 %v768_v54 }
 0x1da   : > { %967 = vmatprep.mubr.f32.mxu0 %v3240_v12  ;;  %1111 = vmatprep.mubr.f32.mxu1 %v3240_v12 }
 0x1dd   : > { %968 = vmatmul.mubr.f32.gmra.mrb[44].mxu0 %v745_v42  ;;  %1112 = vmatmul.mubr.f32.gmra.mrb[44].mxu1 %v769_v62 }
 0x1de   : > { %973 = vmatprep.mubr.f32.mxu0 %v3240_v12  ;;  %1117 = vmatprep.mubr.f32.mxu1 %v3240_v12 }
 0x1e1   : > { %974 = vmatmul.mubr.f32.gmra.mrb[46].mxu0 %v746_v38  ;;  %1118 = vmatmul.mubr.f32.gmra.mrb[46].mxu1 %v770_v47 }
 0x258   : > { %v3774_v44 = vpop.f32.mrb[0].mxu0  ;;  %v3776_v63 = vpop.f32.mrb[0].mxu1 }
 0x259   : > { %5552 = vst [vmem:[#allocation3_spill] sm:$0xff] %v3776_v63  ;;  %v3778_v39 = vpop.f32.mrb[1].mxu0  ;;  %v3780_v3 = vpop.f32.mrb[1].mxu1  ;;  %v1316_v37 = vmul.f32 %v3774_v44, %v3774_v44  ;;  %v1364_v27 = vmul.f32 %v3776_v63, %v3776_v63 }
 0x25a   : > { %5553 = vst [vmem:[#allocation2_spill] sm:$0xff] %v3778_v39  ;;  %5554 = vst [vmem:[#allocation6_spill] sm:$0xff] %v3780_v3  ;;  %v1317_v19 = vmul.f32 %v3778_v39, %v3778_v39  ;;  %v1365_v12 = vmul.f32 %v3780_v3, %v3780_v3  ;;  %v1220_v50 = vsel %vm306_vm0, %v3780_v3, 0.0  ;;  %v1124_v52 = vsel %vm306_vm0, %v3778_v39, 0.0 }
 0x25b   : > { %v1221_v8 = vadd.f32 %v1220_v50, %v3776_v63  ;;  %v1125_v46 = vadd.f32 %v1124_v52, %v3774_v44 }
 0x25c   : > { %v3796_v9 = vpop.f32.mrb[2].mxu1  ;;  %v3798_v35 = vpop.f32.mrb[2].mxu0  ;;  %v1412_v41 = vsel %vm306_vm0, %v1317_v19, 0.0  ;;  %v1508_v17 = vsel %vm306_vm0, %v1365_v12, 0.0 }
 0x25d   : > { %5555 = vst [vmem:[#allocation4_spill] sm:$0xff] %v3796_v9  ;;  %5556 = vst [vmem:[#allocation7_spill] sm:$0xff] %v3798_v35  ;;  %1222 = vadd.xlane.f32.xlu0 %v1221_v8  ;;  %v3802_v21 = vpop.f32.mrb[3].mxu1  ;;  %1126 = vadd.xlane.f32.xlu1 %v1125_v46  ;;  %v3804_v7 = vpop.f32.mrb[3].mxu0  ;;  %v1413_v33 = vadd.f32 %v1412_v41, %v1316_v37  ;;  %v1509_v24 = vadd.f32 %v1508_v17, %v1364_v27 }
 0x25e   : > { %5557 = vst [vmem:[#allocation5_spill] sm:$0xff] %v3802_v21  ;;  %5558 = vst [vmem:[#allocation8_spill] sm:$0xff] %v3804_v7  ;;  %v1318_v40 = vmul.f32 %v3798_v35, %v3798_v35  ;;  %v1367_v11 = vmul.f32 %v3802_v21, %v3802_v21  ;;  %v1319_v10 = vmul.f32 %v3804_v7, %v3804_v7  ;;  %v1224_v45 = vsel %vm306_vm0, %v3802_v21, 0.0 }
 0x25f   : > { %v1366_v4 = vmul.f32 %v3796_v9, %v3796_v9  ;;  %v1225_v13 = vadd.f32 %v1224_v45, %v3796_v9  ;;  %v1128_v2 = vsel %vm306_vm0, %v3804_v7, 0.0 }
 0x260   : > { %v1416_v48 = vsel %vm306_vm0, %v1319_v10, 0.0  ;;  %v3820_v49 = vpop.f32.mrb[4].mxu0  ;;  %v1512_v0 = vsel %vm306_vm0, %v1367_v11, 0.0  ;;  %v1129_v1 = vadd.f32 %v1128_v2, %v3798_v35  ;;  %v3824_v16 = vpop.f32.mrb[4].mxu1 }
 0x261   : > { %5559 = vst [vmem:[#allocation9_spill] sm:$0xff] %v3820_v49  ;;  %5560 = vst [vmem:[#allocation10_spill] sm:$0xff] %v3824_v16  ;;  %1414 = vadd.xlane.f32.xlu0 %v1413_v33  ;;  %1226 = vadd.xlane.f32.xlu1 %v1225_v13  ;;  %v1417_v5 = vadd.f32 %v1416_v48, %v1318_v40  ;;  %v3826_v25 = vpop.f32.mrb[5].mxu0  ;;  %v1513_v6 = vadd.f32 %v1512_v0, %v1366_v4  ;;  %v3828_v43 = vpop.f32.mrb[5].mxu1 }
 0x262   : > { %5561 = vst [vmem:[#allocation11_spill] sm:$0xff] %v3826_v25  ;;  %5562 = vst [vmem:[#allocation12_spill] sm:$0xff] %v3828_v43  ;;  %v1320_v53 = vmul.f32 %v3820_v49, %v3820_v49  ;;  %v1321_v20 = vmul.f32 %v3826_v25, %v3826_v25  ;;  %v1369_v56 = vmul.f32 %v3828_v43, %v3828_v43  ;;  %v1132_v15 = vsel %vm306_vm0, %v3826_v25, 0.0 }
 0x263   : > { %v1228_v18 = vsel %vm306_vm0, %v3828_v43, 0.0  ;;  %v1133_v14 = vadd.f32 %v1132_v15, %v3820_v49  ;;  %v1368_v32 = vmul.f32 %v3824_v16, %v3824_v16 }
 0x264   : > { %v1229_v51 = vadd.f32 %v1228_v18, %v3824_v16  ;;  %v3844_v57 = vpop.f32.mrb[6].mxu0  ;;  %v3846_v60 = vpop.f32.mrb[6].mxu1  ;;  %v1420_v55 = vsel %vm306_vm0, %v1321_v20, 0.0  ;;  %v1516_v28 = vsel %vm306_vm0, %v1369_v56, 0.0 }
 0x265   : > { %5563 = vst [vmem:[#allocation13_spill] sm:$0xff] %v3844_v57  ;;  %5564 = vst [vmem:[#allocation14_spill] sm:$0xff] %v3846_v60  ;;  %1510 = vadd.xlane.f32.xlu0 %v1509_v24  ;;  %1418 = vadd.xlane.f32.xlu1 %v1417_v5  ;;  %v3850_v23 = vpop.f32.mrb[7].mxu0  ;;  %v3852_v26 = vpop.f32.mrb[7].mxu1  ;;  %v3854_v22 = vadd.f32 %v1420_v55, %v1320_v53  ;;  %v1322_v29 = vmul.f32 %v3844_v57, %v3844_v57 }
 0x266   : > { %5565 = vst [vmem:[#allocation15_spill] sm:$0xff] %v3850_v23  ;;  %5566 = vst [vmem:[#allocation16_spill] sm:$0xff] %v3852_v26  ;;  %v3858_v61 = vadd.f32 %v1516_v28, %v1368_v32  ;;  %v1323_v34 = vmul.f32 %v3850_v23, %v3850_v23  ;;  %v1371_v59 = vmul.f32 %v3852_v26, %v3852_v26  ;;  %v1136_v30 = vsel %vm306_vm0, %v3850_v23, 0.0 }
 0x267   : > { %v1232_v31 = vsel %vm306_vm0, %v3852_v26, 0.0  ;;  %v1137_v36 = vadd.f32 %v1136_v30, %v3844_v57  ;;  %v1370_v54 = vmul.f32 %v3846_v60, %v3846_v60 }
 0x268   : > { %v1233_v58 = vadd.f32 %v1232_v31, %v3846_v60  ;;  %v1424_v42 = vsel %vm306_vm0, %v1323_v34, 0.0  ;;  %v3873_v62 = vpop.f32.mrb[8].mxu0  ;;  %v1520_v38 = vsel %vm306_vm0, %v1371_v59, 0.0  ;;  %v3876_v47 = vpop.f32.mrb[8].mxu1 }
 0x269   : > { %5567 = vst [vmem:[#allocation17_spill] sm:$0xff] %v3873_v62  ;;  %5568 = vst [vmem:[#allocation18_spill] sm:$0xff] %v3876_v47  ;;  %1514 = vadd.xlane.f32.xlu1 %v1513_v6  ;;  %1130 = vadd.xlane.f32.xlu0 %v1129_v1  ;;  %v1425_v37 = vadd.f32 %v1424_v42, %v1322_v29  ;;  %v3878_v19 = vpop.f32.mrb[9].mxu0  ;;  %v3880_v12 = vadd.f32 %v1520_v38, %v1370_v54  ;;  %v3882_v50 = vpop.f32.mrb[9].mxu1 }
 0x26a   : > { %5569 = vst [vmem:[#allocation19_spill] sm:$0xff] %v3878_v19  ;;  %5570 = vst [vmem:[#allocation20_spill] sm:$0xff] %v3882_v50  ;;  %v1324_v52 = vmul.f32 %v3873_v62, %v3873_v62  ;;  %v1325_v8 = vmul.f32 %v3878_v19, %v3878_v19  ;;  %v1373_v46 = vmul.f32 %v3882_v50, %v3882_v50  ;;  %v1140_v27 = vsel %vm306_vm0, %v3878_v19, 0.0 }
 0x26b   : > { %v1236_v41 = vsel %vm306_vm0, %v3882_v50, 0.0  ;;  %v3895_v17 = vadd.f32 %v1140_v27, %v3873_v62  ;;  %v1372_v24 = vmul.f32 %v3876_v47, %v3876_v47 }
 0x26c   : > { %v3898_v33 = vadd.f32 %v1236_v41, %v3876_v47  ;;  %v3902_v40 = vpop.f32.mrb[10].mxu0  ;;  %v3904_v11 = vpop.f32.mrb[10].mxu1  ;;  %v1428_v10 = vsel %vm306_vm0, %v1325_v8, 0.0  ;;  %v1524_v45 = vsel %vm306_vm0, %v1373_v46, 0.0 }
 0x26d   : > { %5571 = vst [vmem:[#allocation21_spill] sm:$0xff] %v3902_v40  ;;  %5572 = vst [vmem:[#allocation22_spill] sm:$0xff] %v3904_v11  ;;  %1134 = vadd.xlane.f32.xlu0 %v1133_v14  ;;  %1138 = vadd.xlane.f32.xlu1 %v1137_v36  ;;  %v3908_v4 = vpop.f32.mrb[11].mxu0  ;;  %v3910_v13 = vpop.f32.mrb[11].mxu1  ;;  %v3912_v2 = vadd.f32 %v1428_v10, %v1324_v52  ;;  %v1326_v48 = vmul.f32 %v3902_v40, %v3902_v40 }
 0x26e   : > { %5573 = vst [vmem:[#allocation23_spill] sm:$0xff] %v3908_v4  ;;  %5574 = vst [vmem:[#allocation24_spill] sm:$0xff] %v3910_v13  ;;  %v3916_v0 = vadd.f32 %v1524_v45, %v1372_v24  ;;  %v1327_v1 = vmul.f32 %v3908_v4, %v3908_v4  ;;  %v1375_v5 = vmul.f32 %v3910_v13, %v3910_v13  ;;  %v1144_v6 = vsel %vm306_vm0, %v3908_v4, 0.0 }
 0x26f   : > { %v1240_v53 = vsel %vm306_vm0, %v3910_v13, 0.0  ;;  %v1145_v20 = vadd.f32 %v1144_v6, %v3902_v40  ;;  %v1374_v15 = vmul.f32 %v3904_v11, %v3904_v11 }
 0x270   : > { %v3928_v56 = vadd.f32 %v1240_v53, %v3904_v11  ;;  %v1432_v18 = vsel %vm306_vm0, %v1327_v1, 0.0  ;;  %v3933_v14 = vpop.f32.mrb[12].mxu0  ;;  %v1528_v32 = vsel %vm306_vm0, %v1375_v5, 0.0  ;;  %v3936_v55 = vpop.f32.mrb[12].mxu1 }
 0x271   : > { %5575 = vst [vmem:[#allocation25_spill] sm:$0xff] %v3933_v14  ;;  %5576 = vst [vmem:[#allocation26_spill] sm:$0xff] %v3936_v55  ;;  %1230 = vadd.xlane.f32.xlu0 %v1229_v51  ;;  %1234 = vadd.xlane.f32.xlu1 %v1233_v58  ;;  %v3938_v28 = vadd.f32 %v1432_v18, %v1326_v48  ;;  %v3940_v29 = vpop.f32.mrb[13].mxu0  ;;  %v3942_v34 = vadd.f32 %v1528_v32, %v1374_v15  ;;  %v3944_v59 = vpop.f32.mrb[13].mxu1 }
 0x272   : > { %5577 = vst [vmem:[#allocation27_spill] sm:$0xff] %v3940_v29  ;;  %5578 = vst [vmem:[#allocation28_spill] sm:$0xff] %v3944_v59  ;;  %v1328_v30 = vmul.f32 %v3933_v14, %v3933_v14  ;;  %v1329_v31 = vmul.f32 %v3940_v29, %v3940_v29  ;;  %v1377_v36 = vmul.f32 %v3944_v59, %v3944_v59  ;;  %v1148_v51 = vsel %vm306_vm0, %v3940_v29, 0.0 }
 0x273   : > { %v1244_v58 = vsel %vm306_vm0, %v3944_v59, 0.0  ;;  %v3957_v54 = vadd.f32 %v1148_v51, %v3933_v14  ;;  %v1376_v38 = vmul.f32 %v3936_v55, %v3936_v55 }
 0x274   : > { %v3960_v42 = vadd.f32 %v1244_v58, %v3936_v55  ;;  %v3964_v52 = vpop.f32.mrb[14].mxu0  ;;  %v3966_v8 = vpop.f32.mrb[14].mxu1  ;;  %v1436_v46 = vsel %vm306_vm0, %v1329_v31, 0.0  ;;  %v1532_v27 = vsel %vm306_vm0, %v1377_v36, 0.0 }
 0x275   : > { %5579 = vst [vmem:[#allocation29_spill] sm:$0xff] %v3964_v52  ;;  %5580 = vst [vmem:[#allocation30_spill] sm:$0xff] %v3966_v8  ;;  %1422 = vadd.xlane.f32.xlu0 %v3854_v22  ;;  %1426 = vadd.xlane.f32.xlu1 %v1425_v37  ;;  %v3971_v41 = vpop.f32.mrb[15].mxu0  ;;  %v3973_v24 = vpop.f32.mrb[15].mxu1  ;;  %v3975_v10 = vadd.f32 %v1436_v46, %v1328_v30  ;;  %v1330_v45 = vmul.f32 %v3964_v52, %v3964_v52 }
 0x276   : > { %5581 = vst [vmem:[#allocation31_spill] sm:$0xff] %v3971_v41  ;;  %5582 = vst [vmem:[#allocation32_spill] sm:$0xff] %v3973_v24  ;;  %v3979_v48 = vadd.f32 %v1532_v27, %v1376_v38  ;;  %v1331_v1 = vmul.f32 %v3971_v41, %v3971_v41  ;;  %v1379_v5 = vmul.f32 %v3973_v24, %v3973_v24  ;;  %v1152_v22 = vsel %vm306_vm0, %v3971_v41, 0.0 }
 0x277   : > { %v1248_v37 = vsel %vm306_vm0, %v3973_v24, 0.0  ;;  %v3990_v6 = vadd.f32 %v1152_v22, %v3964_v52  ;;  %v1378_v15 = vmul.f32 %v3966_v8, %v3966_v8 }
 0x278   : > { %v3993_v53 = vadd.f32 %v1248_v37, %v3966_v8  ;;  %v1440_v18 = vsel %vm306_vm0, %v1331_v1, 0.0  ;;  %v3998_v32 = vpop.f32.mrb[16].mxu0  ;;  %v1536_v30 = vsel %vm306_vm0, %v1379_v5, 0.0  ;;  %v4001_v31 = vpop.f32.mrb[16].mxu1 }
 0x279   : > { %5583 = vst [vmem:[#allocation33_spill] sm:$0xff] %v3998_v32  ;;  %5584 = vst [vmem:[#allocation34_spill] sm:$0xff] %v4001_v31  ;;  %1518 = vadd.xlane.f32.xlu0 %v3858_v61  ;;  %1522 = vadd.xlane.f32.xlu1 %v3880_v12  ;;  %v4005_v36 = vadd.f32 %v1440_v18, %v1330_v45  ;;  %v4007_v51 = vpop.f32.mrb[17].mxu0  ;;  %v4009_v58 = vadd.f32 %v1536_v30, %v1378_v15  ;;  %v4011_v38 = vpop.f32.mrb[17].mxu1 }
 0x27a   : > { %5585 = vst [vmem:[#allocation35_spill] sm:$0xff] %v4007_v51  ;;  %5586 = vst [vmem:[#allocation36_spill] sm:$0xff] %v4011_v38  ;;  %v1332_v46 = vmul.f32 %v3998_v32, %v3998_v32  ;;  %v1333_v27 = vmul.f32 %v4007_v51, %v4007_v51  ;;  %v1381_v1 = vmul.f32 %v4011_v38, %v4011_v38  ;;  %v1156_v61 = vsel %vm306_vm0, %v4007_v51, 0.0 }
 0x27b   : > { %v1252_v12 = vsel %vm306_vm0, %v4011_v38, 0.0  ;;  %v4024_v45 = vadd.f32 %v1156_v61, %v3998_v32  ;;  %v1380_v22 = vmul.f32 %v4001_v31, %v4001_v31 }
 0x27c   : > { %v4027_v5 = vadd.f32 %v1252_v12, %v4001_v31  ;;  %v4031_v37 = vpop.f32.mrb[18].mxu0  ;;  %v4033_v15 = vpop.f32.mrb[18].mxu1  ;;  %v1444_v18 = vsel %vm306_vm0, %v1333_v27, 0.0  ;;  %v1540_v30 = vsel %vm306_vm0, %v1381_v1, 0.0 }
 0x27d   : > { %5587 = vst [vmem:[#allocation37_spill] sm:$0xff] %v4031_v37  ;;  %5588 = vst [vmem:[#allocation38_spill] sm:$0xff] %v4033_v15  ;;  %1142 = vadd.xlane.f32.xlu0 %v3895_v17  ;;  %1146 = vadd.xlane.f32.xlu1 %v1145_v20  ;;  %v4038_v38 = vpop.f32.mrb[19].mxu0  ;;  %v4040_v61 = vpop.f32.mrb[19].mxu1  ;;  %v4042_v12 = vadd.f32 %v1444_v18, %v1332_v46  ;;  %v1334_v31 = vmul.f32 %v4031_v37, %v4031_v37 }
 0x27e   : > { %5589 = vst [vmem:[#allocation39_spill] sm:$0xff] %v4038_v38  ;;  %5590 = vst [vmem:[#allocation40_spill] sm:$0xff] %v4040_v61  ;;  %v4046_v51 = vadd.f32 %v1540_v30, %v1380_v22  ;;  %v1335_v32 = vmul.f32 %v4038_v38, %v4038_v38  ;;  %v1383_v27 = vmul.f32 %v4040_v61, %v4040_v61  ;;  %v1160_v17 = vsel %vm306_vm0, %v4038_v38, 0.0 }
 0x27f   : > { %v1256_v20 = vsel %vm306_vm0, %v4040_v61, 0.0  ;;  %v4057_v46 = vadd.f32 %v1160_v17, %v4031_v37  ;;  %v1382_v22 = vmul.f32 %v4033_v15, %v4033_v15 }
 0x280   : > { %v4060_v1 = vadd.f32 %v1256_v20, %v4033_v15  ;;  %v1448_v18 = vsel %vm306_vm0, %v1335_v32, 0.0  ;;  %v4065_v30 = vpop.f32.mrb[20].mxu0  ;;  %v1544_v24 = vsel %vm306_vm0, %v1383_v27, 0.0  ;;  %v4068_v8 = vpop.f32.mrb[20].mxu1 }
 0x281   : > { %5591 = vst [vmem:[#allocation41_spill] sm:$0xff] %v4065_v30  ;;  %5592 = vst [vmem:[#allocation42_spill] sm:$0xff] %v4068_v8  ;;  %1238 = vadd.xlane.f32.xlu0 %v3898_v33  ;;  %1242 = vadd.xlane.f32.xlu1 %v3928_v56  ;;  %v4072_v17 = vadd.f32 %v1448_v18, %v1334_v31  ;;  %v4074_v61 = vpop.f32.mrb[21].mxu0  ;;  %v4076_v20 = vadd.f32 %v1544_v24, %v1382_v22  ;;  %v4078_v38 = vpop.f32.mrb[21].mxu1 }
 0x282   : > { %5593 = vst [vmem:[#allocation43_spill] sm:$0xff] %v4074_v61  ;;  %5594 = vst [vmem:[#allocation44_spill] sm:$0xff] %v4078_v38  ;;  %v1336_v32 = vmul.f32 %v4065_v30, %v4065_v30  ;;  %v1337_v27 = vmul.f32 %v4074_v61, %v4074_v61  ;;  %v1385_v15 = vmul.f32 %v4078_v38, %v4078_v38  ;;  %v1164_v33 = vsel %vm306_vm0, %v4074_v61, 0.0 }
 0x283   : > { %v1260_v56 = vsel %vm306_vm0, %v4078_v38, 0.0  ;;  %v4091_v24 = vadd.f32 %v1164_v33, %v4065_v30  ;;  %v1384_v22 = vmul.f32 %v4068_v8, %v4068_v8 }
 0x284   : > { %v4094_v31 = vadd.f32 %v1260_v56, %v4068_v8  ;;  %v4098_v18 = vpop.f32.mrb[22].mxu0  ;;  %v4100_v37 = vpop.f32.mrb[22].mxu1  ;;  %v1452_v59 = vsel %vm306_vm0, %v1337_v27, 0.0  ;;  %v1548_v61 = vsel %vm306_vm0, %v1385_v15, 0.0 }
 0x285   : > { %5595 = vst [vmem:[#allocation45_spill] sm:$0xff] %v4098_v18  ;;  %5596 = vst [vmem:[#allocation46_spill] sm:$0xff] %v4100_v37  ;;  %1430 = vadd.xlane.f32.xlu0 %v3912_v2  ;;  %1434 = vadd.xlane.f32.xlu1 %v3938_v28  ;;  %v1338_v33 = vmul.f32 %v4098_v18, %v4098_v18  ;;  %v4108_v56 = vpop.f32.mrb[23].mxu0  ;;  %v1386_v38 = vmul.f32 %v4100_v37, %v4100_v37  ;;  %v4112_v8 = vpop.f32.mrb[23].mxu1 }
 0x286   : > { %5597 = vst [vmem:[#allocation47_spill] sm:$0xff] %v4108_v56  ;;  %5598 = vst [vmem:[#allocation48_spill] sm:$0xff] %v4112_v8  ;;  %v4114_v30 = vadd.f32 %v1452_v59, %v1336_v32  ;;  %v1339_v27 = vmul.f32 %v4108_v56, %v4108_v56  ;;  %v1387_v2 = vmul.f32 %v4112_v8, %v4112_v8  ;;  %v1168_v28 = vsel %vm306_vm0, %v4108_v56, 0.0 }
 0x287   : > { %v1264_v15 = vsel %vm306_vm0, %v4112_v8, 0.0  ;;  %v4125_v55 = vadd.f32 %v1168_v28, %v4098_v18  ;;  %v4130_v59 = vadd.f32 %v1548_v61, %v1384_v22 }
 0x288   : > { %v4128_v41 = vadd.f32 %v1264_v15, %v4100_v37  ;;  %v1456_v32 = vsel %vm306_vm0, %v1339_v27, 0.0  ;;  %v4133_v52 = vpop.f32.mrb[24].mxu0  ;;  %v1552_v29 = vsel %vm306_vm0, %v1387_v2, 0.0  ;;  %v4136_v14 = vpop.f32.mrb[24].mxu1 }
 0x289   : > { %5599 = vst [vmem:[#allocation49_spill] sm:$0xff] %v4133_v52  ;;  %5600 = vst [vmem:[#allocation50_spill] sm:$0xff] %v4136_v14  ;;  %1526 = vadd.xlane.f32.xlu0 %v3916_v0  ;;  %1530 = vadd.xlane.f32.xlu1 %v3942_v34  ;;  %v4140_v8 = vadd.f32 %v1456_v32, %v1338_v33  ;;  %v4142_v28 = vpop.f32.mrb[25].mxu0  ;;  %v4144_v15 = vadd.f32 %v1552_v29, %v1386_v38  ;;  %v4146_v61 = vpop.f32.mrb[25].mxu1 }
 0x28a   : > { %5601 = vst [vmem:[#allocation51_spill] sm:$0xff] %v4142_v28  ;;  %5602 = vst [vmem:[#allocation52_spill] sm:$0xff] %v4146_v61  ;;  %v1340_v22 = vmul.f32 %v4133_v52, %v4133_v52  ;;  %v1341_v27 = vmul.f32 %v4142_v28, %v4142_v28  ;;  %v1389_v2 = vmul.f32 %v4146_v61, %v4146_v61  ;;  %v1172_v0 = vsel %vm306_vm0, %v4142_v28, 0.0 }
 0x28b   : > { %v1268_v34 = vsel %vm306_vm0, %v4146_v61, 0.0  ;;  %v4159_v29 = vadd.f32 %v1172_v0, %v4133_v52  ;;  %v1388_v33 = vmul.f32 %v4136_v14, %v4136_v14 }
 0x28c   : > { %v4162_v38 = vadd.f32 %v1268_v34, %v4136_v14  ;;  %v4166_v32 = vpop.f32.mrb[26].mxu0  ;;  %v4168_v37 = vpop.f32.mrb[26].mxu1  ;;  %v1460_v56 = vsel %vm306_vm0, %v1341_v27, 0.0  ;;  %v1556_v28 = vsel %vm306_vm0, %v1389_v2, 0.0 }
 0x28d   : > { %5603 = vst [vmem:[#allocation53_spill] sm:$0xff] %v4166_v32  ;;  %5604 = vst [vmem:[#allocation54_spill] sm:$0xff] %v4168_v37  ;;  %1150 = vadd.xlane.f32.xlu0 %v3957_v54  ;;  %1154 = vadd.xlane.f32.xlu1 %v3990_v6  ;;  %v1342_v0 = vmul.f32 %v4166_v32, %v4166_v32  ;;  %v4176_v34 = vpop.f32.mrb[27].mxu0  ;;  %v1390_v61 = vmul.f32 %v4168_v37, %v4168_v37  ;;  %v4180_v14 = vpop.f32.mrb[27].mxu1 }
 0x28e   : > { %5605 = vst [vmem:[#allocation55_spill] sm:$0xff] %v4176_v34  ;;  %5606 = vst [vmem:[#allocation56_spill] sm:$0xff] %v4180_v14  ;;  %v4182_v52 = vadd.f32 %v1460_v56, %v1340_v22  ;;  %v1176_v27 = vsel %vm306_vm0, %v4176_v34, 0.0  ;;  %v1343_v54 = vmul.f32 %v4176_v34, %v4176_v34  ;;  %v1272_v6 = vsel %vm306_vm0, %v4180_v14, 0.0 }
 0x28f   : > { %v1391_v2 = vmul.f32 %v4180_v14, %v4180_v14  ;;  %v4193_v18 = vadd.f32 %v1176_v27, %v4166_v32  ;;  %v4196_v13 = vadd.f32 %v1272_v6, %v4168_v37  ;;  %v4198_v56 = vadd.f32 %v1556_v28, %v1388_v33 }
 0x290   : > { %v1464_v22 = vsel %vm306_vm0, %v1343_v54, 0.0  ;;  %v4201_v11 = vpop.f32.mrb[28].mxu0  ;;  %v4204_v50 = vpop.f32.mrb[28].mxu1 }
 0x291   : > { %5607 = vst [vmem:[#allocation57_spill] sm:$0xff] %v4201_v11  ;;  %v1560_v34 = vsel %vm306_vm0, %v1391_v2, 0.0  ;;  %5608 = vst [vmem:[#allocation58_spill] sm:$0xff] %v4204_v50  ;;  %1246 = vadd.xlane.f32.xlu0 %v3960_v42  ;;  %1250 = vadd.xlane.f32.xlu1 %v3993_v53  ;;  %v4208_v14 = vadd.f32 %v1464_v22, %v1342_v0  ;;  %v1344_v27 = vmul.f32 %v4201_v11, %v4201_v11  ;;  %v4212_v6 = vpop.f32.mrb[29].mxu0  ;;  %v4216_v33 = vpop.f32.mrb[29].mxu1 }
 0x292   : > { %5609 = vst [vmem:[#allocation59_spill] sm:$0xff] %v4212_v6  ;;  %v4214_v28 = vadd.f32 %v1560_v34, %v1390_v61  ;;  %5610 = vst [vmem:[#allocation60_spill] sm:$0xff] %v4216_v33  ;;  %v1180_v54 = vsel %vm306_vm0, %v4212_v6, 0.0  ;;  %v1345_v2 = vmul.f32 %v4212_v6, %v4212_v6  ;;  %v1276_v42 = vsel %vm306_vm0, %v4216_v33, 0.0 }
 0x293   : > { %v1392_v53 = vmul.f32 %v4204_v50, %v4204_v50  ;;  %v1393_v0 = vmul.f32 %v4216_v33, %v4216_v33  ;;  %v4229_v61 = vadd.f32 %v1180_v54, %v4201_v11  ;;  %v4232_v34 = vadd.f32 %v1276_v42, %v4204_v50 }
 0x294   : > { %v4234_v22 = vpop.f32.mrb[30].mxu0  ;;  %v4236_v37 = vpop.f32.mrb[30].mxu1  ;;  %v1468_v6 = vsel %vm306_vm0, %v1345_v2, 0.0 }
 0x295   : > { %5611 = vst [vmem:[#allocation61_spill] sm:$0xff] %v4234_v22  ;;  %5612 = vst [vmem:[#allocation62_spill] sm:$0xff] %v4236_v37  ;;  %1438 = vadd.xlane.f32.xlu0 %v3975_v10  ;;  %1442 = vadd.xlane.f32.xlu1 %v4005_v36  ;;  %v1346_v32 = vmul.f32 %v4234_v22, %v4234_v22  ;;  %v4243_v33 = vpop.f32.mrb[31].mxu0  ;;  %v1394_v54 = vmul.f32 %v4236_v37, %v4236_v37  ;;  %v4247_v42 = vpop.f32.mrb[31].mxu1  ;;  %v1564_v11 = vsel %vm306_vm0, %v1393_v0, 0.0 }
 0x296   : > { %5613 = vst [vmem:[#allocation63_spill] sm:$0xff] %v4243_v33  ;;  %5614 = vst [vmem:[#allocation64_spill] sm:$0xff] %v4247_v42  ;;  %v4249_v50 = vadd.f32 %v1468_v6, %v1344_v27  ;;  %v1184_v2 = vsel %vm306_vm0, %v4243_v33, 0.0  ;;  %v1347_v10 = vmul.f32 %v4243_v33, %v4243_v33  ;;  %v1280_v36 = vsel %vm306_vm0, %v4247_v42, 0.0 }
 0x297   : > { %v1395_v47 = vmul.f32 %v4247_v42, %v4247_v42  ;;  %v4261_v4 = vadd.f32 %v1184_v2, %v4234_v22  ;;  %v4264_v27 = vadd.f32 %v1280_v36, %v4236_v37  ;;  %v4266_v6 = vadd.f32 %v1564_v11, %v1392_v53 }
 0x298   : > { %v1472_v0 = vsel %vm306_vm0, %v1347_v10, 0.0  ;;  %v4269_v40 = vpop.f32.mrb[32].mxu0  ;;  %v4272_v19 = vpop.f32.mrb[32].mxu1 }
 0x299   : > { %5615 = vst [vmem:[#allocation65_spill] sm:$0xff] %v4269_v40  ;;  %v1568_v33 = vsel %vm306_vm0, %v1395_v47, 0.0  ;;  %5616 = vst [vmem:[#allocation66_spill] sm:$0xff] %v4272_v19  ;;  %1534 = vadd.xlane.f32.xlu0 %v3979_v48  ;;  %1538 = vadd.xlane.f32.xlu1 %v4009_v58  ;;  %v4276_v42 = vadd.f32 %v1472_v0, %v1346_v32  ;;  %v1348_v2 = vmul.f32 %v4269_v40, %v4269_v40  ;;  %v4280_v36 = vpop.f32.mrb[33].mxu0  ;;  %v4284_v53 = vpop.f32.mrb[33].mxu1 }
 0x29a   : > { %5617 = vst [vmem:[#allocation67_spill] sm:$0xff] %v4280_v36  ;;  %v4282_v11 = vadd.f32 %v1568_v33, %v1394_v54  ;;  %5618 = vst [vmem:[#allocation68_spill] sm:$0xff] %v4284_v53  ;;  %v1188_v47 = vsel %vm306_vm0, %v4280_v36, 0.0  ;;  %v1349_v10 = vmul.f32 %v4280_v36, %v4280_v36  ;;  %v1284_v48 = vsel %vm306_vm0, %v4284_v53, 0.0 }
 0x29b   : > { %v1396_v58 = vmul.f32 %v4272_v19, %v4272_v19  ;;  %v1397_v32 = vmul.f32 %v4284_v53, %v4284_v53  ;;  %v4297_v33 = vadd.f32 %v1188_v47, %v4269_v40  ;;  %v4300_v54 = vadd.f32 %v1284_v48, %v4272_v19 }
 0x29c   : > { %v4302_v0 = vpop.f32.mrb[34].mxu0  ;;  %v4304_v37 = vpop.f32.mrb[34].mxu1  ;;  %v1476_v36 = vsel %vm306_vm0, %v1349_v10, 0.0 }
 0x29d   : > { %5619 = vst [vmem:[#allocation69_spill] sm:$0xff] %v4302_v0  ;;  %5620 = vst [vmem:[#allocation70_spill] sm:$0xff] %v4304_v37  ;;  %1158 = vadd.xlane.f32.xlu0 %v4024_v45  ;;  %1162 = vadd.xlane.f32.xlu1 %v4057_v46  ;;  %v1350_v22 = vmul.f32 %v4302_v0, %v4302_v0  ;;  %v4311_v53 = vpop.f32.mrb[35].mxu0  ;;  %v1398_v47 = vmul.f32 %v4304_v37, %v4304_v37  ;;  %v4315_v48 = vpop.f32.mrb[35].mxu1  ;;  %v1572_v40 = vsel %vm306_vm0, %v1397_v32, 0.0 }
 0x29e   : > { %5621 = vst [vmem:[#allocation71_spill] sm:$0xff] %v4311_v53  ;;  %5622 = vst [vmem:[#allocation72_spill] sm:$0xff] %v4315_v48  ;;  %v4317_v19 = vadd.f32 %v1476_v36, %v1348_v2  ;;  %v1192_v10 = vsel %vm306_vm0, %v4311_v53, 0.0  ;;  %v1351_v45 = vmul.f32 %v4311_v53, %v4311_v53  ;;  %v1288_v46 = vsel %vm306_vm0, %v4315_v48, 0.0 }
 0x29f   : > { %v1399_v62 = vmul.f32 %v4315_v48, %v4315_v48  ;;  %v4329_v26 = vadd.f32 %v1192_v10, %v4302_v0  ;;  %v4332_v2 = vadd.f32 %v1288_v46, %v4304_v37  ;;  %v4334_v36 = vadd.f32 %v1572_v40, %v1396_v58 }
 0x2a0   : > { %v1480_v32 = vsel %vm306_vm0, %v1351_v45, 0.0  ;;  %v4337_v60 = vpop.f32.mrb[36].mxu0  ;;  %v4340_v43 = vpop.f32.mrb[36].mxu1 }
 0x2a1   : > { %5623 = vst [vmem:[#allocation73_spill] sm:$0xff] %v4337_v60  ;;  %v1576_v53 = vsel %vm306_vm0, %v1399_v62, 0.0  ;;  %5624 = vst [vmem:[#allocation74_spill] sm:$0xff] %v4340_v43  ;;  %1254 = vadd.xlane.f32.xlu0 %v4027_v5  ;;  %1258 = vadd.xlane.f32.xlu1 %v4060_v1  ;;  %v4344_v48 = vadd.f32 %v1480_v32, %v1350_v22  ;;  %v1352_v10 = vmul.f32 %v4337_v60, %v4337_v60  ;;  %v4348_v46 = vpop.f32.mrb[37].mxu0  ;;  %v4352_v58 = vpop.f32.mrb[37].mxu1 }
 0x2a2   : > { %5625 = vst [vmem:[#allocation75_spill] sm:$0xff] %v4348_v46  ;;  %v4350_v40 = vadd.f32 %v1576_v53, %v1398_v47  ;;  %5626 = vst [vmem:[#allocation76_spill] sm:$0xff] %v4352_v58  ;;  %v1196_v62 = vsel %vm306_vm0, %v4348_v46, 0.0  ;;  %v1353_v45 = vmul.f32 %v4348_v46, %v4348_v46  ;;  %v1292_v5 = vsel %vm306_vm0, %v4352_v58, 0.0 }
 0x2a3   : > { %v1400_v1 = vmul.f32 %v4340_v43, %v4340_v43  ;;  %v1401_v22 = vmul.f32 %v4352_v58, %v4352_v58  ;;  %v4365_v53 = vadd.f32 %v1196_v62, %v4337_v60  ;;  %v4368_v47 = vadd.f32 %v1292_v5, %v4340_v43 }
 0x2a4   : > { %v4370_v32 = vpop.f32.mrb[38].mxu0  ;;  %v4372_v37 = vpop.f32.mrb[38].mxu1  ;;  %v1484_v46 = vsel %vm306_vm0, %v1353_v45, 0.0 }
 0x2a5   : > { %5627 = vst [vmem:[#allocation77_spill] sm:$0xff] %v4370_v32  ;;  %5628 = vst [vmem:[#allocation78_spill] sm:$0xff] %v4372_v37  ;;  %1446 = vadd.xlane.f32.xlu0 %v4042_v12  ;;  %1450 = vadd.xlane.f32.xlu1 %v4072_v17  ;;  %v1354_v0 = vmul.f32 %v4370_v32, %v4370_v32  ;;  %v4379_v58 = vpop.f32.mrb[39].mxu0  ;;  %v1402_v62 = vmul.f32 %v4372_v37, %v4372_v37  ;;  %v4383_v5 = vpop.f32.mrb[39].mxu1  ;;  %v1580_v60 = vsel %vm306_vm0, %v1401_v22, 0.0 }
 0x2a6   : > { %5629 = vst [vmem:[#allocation79_spill] sm:$0xff] %v4379_v58  ;;  %5630 = vst [vmem:[#allocation80_spill] sm:$0xff] %v4383_v5  ;;  %v4385_v43 = vadd.f32 %v1484_v46, %v1352_v10  ;;  %v1200_v45 = vsel %vm306_vm0, %v4379_v58, 0.0  ;;  %v1355_v12 = vmul.f32 %v4379_v58, %v4379_v58  ;;  %v1296_v17 = vsel %vm306_vm0, %v4383_v5, 0.0 }
 0x2a7   : > { %v1403_v16 = vmul.f32 %v4383_v5, %v4383_v5  ;;  %v4397_v23 = vadd.f32 %v1200_v45, %v4370_v32  ;;  %v4400_v10 = vadd.f32 %v1296_v17, %v4372_v37  ;;  %v4402_v46 = vadd.f32 %v1580_v60, %v1400_v1 }
 0x2a8   : > { %v1488_v22 = vsel %vm306_vm0, %v1355_v12, 0.0  ;;  %v4405_v57 = vpop.f32.mrb[40].mxu0  ;;  %v4408_v25 = vpop.f32.mrb[40].mxu1 }
 0x2a9   : > { %5631 = vst [vmem:[#allocation81_spill] sm:$0xff] %v4405_v57  ;;  %v1584_v58 = vsel %vm306_vm0, %v1403_v16, 0.0  ;;  %5632 = vst [vmem:[#allocation82_spill] sm:$0xff] %v4408_v25  ;;  %1542 = vadd.xlane.f32.xlu0 %v4046_v51  ;;  %1546 = vadd.xlane.f32.xlu1 %v4076_v20  ;;  %v4412_v5 = vadd.f32 %v1488_v22, %v1354_v0  ;;  %v1356_v45 = vmul.f32 %v4405_v57, %v4405_v57  ;;  %v4416_v17 = vpop.f32.mrb[41].mxu0  ;;  %v4420_v1 = vpop.f32.mrb[41].mxu1 }
 0x2aa   : > { %5633 = vst [vmem:[#allocation83_spill] sm:$0xff] %v4416_v17  ;;  %v4418_v60 = vadd.f32 %v1584_v58, %v1402_v62  ;;  %5634 = vst [vmem:[#allocation84_spill] sm:$0xff] %v4420_v1  ;;  %v1204_v16 = vsel %vm306_vm0, %v4416_v17, 0.0  ;;  %v1357_v12 = vmul.f32 %v4416_v17, %v4416_v17  ;;  %v1300_v51 = vsel %vm306_vm0, %v4420_v1, 0.0 }
 0x2ab   : > { %v1404_v20 = vmul.f32 %v4408_v25, %v4408_v25  ;;  %v1405_v0 = vmul.f32 %v4420_v1, %v4420_v1  ;;  %v4433_v58 = vadd.f32 %v1204_v16, %v4405_v57  ;;  %v4436_v62 = vadd.f32 %v1300_v51, %v4408_v25 }
 0x2ac   : > { %v4438_v22 = vpop.f32.mrb[42].mxu0  ;;  %v4440_v37 = vpop.f32.mrb[42].mxu1  ;;  %v1492_v17 = vsel %vm306_vm0, %v1357_v12, 0.0 }
 0x2ad   : > { %5635 = vst [vmem:[#allocation85_spill] sm:$0xff] %v4438_v22  ;;  %5636 = vst [vmem:[#allocation86_spill] sm:$0xff] %v4440_v37  ;;  %1166 = vadd.xlane.f32.xlu0 %v4091_v24  ;;  %1170 = vadd.xlane.f32.xlu1 %v4125_v55  ;;  %v1358_v32 = vmul.f32 %v4438_v22, %v4438_v22  ;;  %v4447_v1 = vpop.f32.mrb[43].mxu0  ;;  %v1406_v16 = vmul.f32 %v4440_v37, %v4440_v37  ;;  %v4451_v51 = vpop.f32.mrb[43].mxu1  ;;  %v1588_v57 = vsel %vm306_vm0, %v1405_v0, 0.0 }
 0x2ae   : > { %5637 = vst [vmem:[#allocation87_spill] sm:$0xff] %v4447_v1  ;;  %5638 = vst [vmem:[#allocation88_spill] sm:$0xff] %v4451_v51  ;;  %v4453_v25 = vadd.f32 %v1492_v17, %v1356_v45  ;;  %v1208_v12 = vsel %vm306_vm0, %v4447_v1, 0.0  ;;  %v1359_v55 = vmul.f32 %v4447_v1, %v4447_v1  ;;  %v1304_v24 = vsel %vm306_vm0, %v4451_v51, 0.0 }
 0x2af   : > { %v1407_v49 = vmul.f32 %v4451_v51, %v4451_v51  ;;  %v4465_v21 = vadd.f32 %v1208_v12, %v4438_v22  ;;  %v4468_v45 = vadd.f32 %v1304_v24, %v4440_v37  ;;  %v4470_v17 = vadd.f32 %v1588_v57, %v1404_v20 }
 0x2b0   : > { %v1496_v0 = vsel %vm306_vm0, %v1359_v55, 0.0  ;;  %v4473_v9 = vpop.f32.mrb[44].mxu0  ;;  %v4476_v7 = vpop.f32.mrb[44].mxu1 }
 0x2b1   : > { %5639 = vst [vmem:[#allocation89_spill] sm:$0xff] %v4473_v9  ;;  %v1592_v1 = vsel %vm306_vm0, %v1407_v49, 0.0  ;;  %5640 = vst [vmem:[#allocation90_spill] sm:$0xff] %v4476_v7  ;;  %1262 = vadd.xlane.f32.xlu0 %v4094_v31  ;;  %1266 = vadd.xlane.f32.xlu1 %v4128_v41  ;;  %v4480_v51 = vadd.f32 %v1496_v0, %v1358_v32  ;;  %v1360_v12 = vmul.f32 %v4473_v9, %v4473_v9  ;;  %v4484_v24 = vpop.f32.mrb[45].mxu0  ;;  %v4488_v20 = vpop.f32.mrb[45].mxu1 }
 0x2b2   : > { %5641 = vst [vmem:[#allocation91_spill] sm:$0xff] %v4484_v24  ;;  %v4486_v57 = vadd.f32 %v1592_v1, %v1406_v16  ;;  %5642 = vst [vmem:[#allocation92_spill] sm:$0xff] %v4488_v20  ;;  %v1212_v49 = vsel %vm306_vm0, %v4484_v24, 0.0  ;;  %v1361_v55 = vmul.f32 %v4484_v24, %v4484_v24  ;;  %v1308_v41 = vsel %vm306_vm0, %v4488_v20, 0.0 }
 0x2b3   : > { %v1408_v31 = vmul.f32 %v4476_v7, %v4476_v7  ;;  %v1409_v32 = vmul.f32 %v4488_v20, %v4488_v20  ;;  %v4501_v1 = vadd.f32 %v1212_v49, %v4473_v9  ;;  %v4504_v16 = vadd.f32 %v1308_v41, %v4476_v7 }
 0x2b4   : > { %v4506_v0 = vpop.f32.mrb[46].mxu0  ;;  %v4508_v37 = vpop.f32.mrb[46].mxu1  ;;  %v1500_v24 = vsel %vm306_vm0, %v1361_v55, 0.0 }
 0x2b5   : > { %1454 = vadd.xlane.f32.xlu0 %v4114_v30  ;;  %1458 = vadd.xlane.f32.xlu1 %v4140_v8  ;;  %v1362_v22 = vmul.f32 %v4506_v0, %v4506_v0  ;;  %v4515_v20 = vpop.f32.mrb[47].mxu0  ;;  %v1410_v49 = vmul.f32 %v4508_v37, %v4508_v37  ;;  %v4519_v41 = vpop.f32.mrb[47].mxu1  ;;  %v4521_v7 = vadd.f32 %v1500_v24, %v1360_v12  ;;  %v1596_v9 = vsel %vm306_vm0, %v1409_v32, 0.0 }
 0x2b6   : > { %5643 = vst [vmem:[#allocation93_spill] sm:$0xff] %v4515_v20  ;;  %v1216_v55 = vsel %vm306_vm0, %v4515_v20, 0.0  ;;  %v1363_v8 = vmul.f32 %v4515_v20, %v4515_v20  ;;  %v1312_v30 = vsel %vm306_vm0, %v4519_v41, 0.0  ;;  %v1411_v35 = vmul.f32 %v4519_v41, %v4519_v41 }
 0x2b7   : > { %v4533_v3 = vadd.f32 %v1216_v55, %v4506_v0  ;;  %v4536_v12 = vadd.f32 %v1312_v30, %v4508_v37  ;;  %v4538_v24 = vadd.f32 %v1596_v9, %v1408_v31 }
 0x2b8   : > { %v1504_v32 = vsel %vm306_vm0, %v1363_v8, 0.0  ;;  %v1600_v63 = vsel %vm306_vm0, %v1411_v35, 0.0 }
 0x2b9   : > { %1550 = vadd.xlane.f32.xlu0 %v4130_v59  ;;  %1554 = vadd.xlane.f32.xlu1 %v4144_v15  ;;  %v4544_v20 = vadd.f32 %v1504_v32, %v1362_v22  ;;  %v4546_v39 = vadd.f32 %v1600_v63, %v1410_v49 }
 0x2bd   : > { %1174 = vadd.xlane.f32.xlu0 %v4159_v29  ;;  %1178 = vadd.xlane.f32.xlu1 %v4193_v18 }
 0x2c1   : > { %1270 = vadd.xlane.f32.xlu0 %v4162_v38  ;;  %1274 = vadd.xlane.f32.xlu1 %v4196_v13 }
 0x2c5   : > { %1462 = vadd.xlane.f32.xlu0 %v4182_v52  ;;  %1466 = vadd.xlane.f32.xlu1 %v4208_v14 }
 0x2c9   : > { %1558 = vadd.xlane.f32.xlu0 %v4198_v56  ;;  %1562 = vadd.xlane.f32.xlu1 %v4214_v28 }
 0x2cd   : > { %1182 = vadd.xlane.f32.xlu0 %v4229_v61  ;;  %1186 = vadd.xlane.f32.xlu1 %v4261_v4 }
 0x2d1   : > { %1278 = vadd.xlane.f32.xlu0 %v4232_v34  ;;  %1282 = vadd.xlane.f32.xlu1 %v4264_v27 }
 0x2d5   : > { %1470 = vadd.xlane.f32.xlu0 %v4249_v50  ;;  %1474 = vadd.xlane.f32.xlu1 %v4276_v42 }
 0x2d9   : > { %1566 = vadd.xlane.f32.xlu0 %v4266_v6  ;;  %1570 = vadd.xlane.f32.xlu1 %v4282_v11 }
 0x2dd   : > { %1190 = vadd.xlane.f32.xlu0 %v4297_v33  ;;  %1194 = vadd.xlane.f32.xlu1 %v4329_v26 }
 0x2e1   : > { %1286 = vadd.xlane.f32.xlu0 %v4300_v54  ;;  %1290 = vadd.xlane.f32.xlu1 %v4332_v2 }
 0x2e5   : > { %1478 = vadd.xlane.f32.xlu0 %v4317_v19  ;;  %1482 = vadd.xlane.f32.xlu1 %v4344_v48 }
 0x2e9   : > { %1574 = vadd.xlane.f32.xlu0 %v4334_v36  ;;  %1578 = vadd.xlane.f32.xlu1 %v4350_v40 }
 0x2ea   : > { %v1223_v63 = vpop.xlane.xlu0 %1222  ;;  %v1127_v9 = vpop.xlane.xlu1 %1126 }
 0x2eb   : > { %v4590_v38 = vmul.f32 0.0051020407, %v1127_v9  ;;  %v4592_v56 = vmul.f32 0.0051020407, %v1223_v63 }
 0x2ed   : > { %1198 = vadd.xlane.f32.xlu0 %v4365_v53  ;;  %1202 = vadd.xlane.f32.xlu1 %v4397_v23  ;;  %v1700_v42 = vmul.f32 %v4590_v38, %v4590_v38  ;;  %v1724_v27 = vmul.f32 %v4592_v56, %v4592_v56 }
 0x2ee   : > { %v1415_v35 = vpop.xlane.xlu0 %1414  ;;  %v1227_v26 = vpop.xlane.xlu1 %1226 }
 0x2ef   : > { %v4616_v40 = vmul.f32 0.0051020407, %v1227_v26 }
 0x2f1   : > { %1294 = vadd.xlane.f32.xlu0 %v4368_v47  ;;  %1298 = vadd.xlane.f32.xlu1 %v4400_v10 }
 0x2f2   : > { %v1511_v50 = vpop.xlane.xlu0 %1510  ;;  %v1419_v19 = vpop.xlane.xlu1 %1418 }
 0x2f3   : > { %v1676_v34 = vmul.f32 0.0051020407, %v1511_v50  ;;  %v1653_v2 = vmul.f32 0.0051020407, %v1419_v19 }
 0x2f5   : > { %1486 = vadd.xlane.f32.xlu0 %v4385_v43  ;;  %1490 = vadd.xlane.f32.xlu1 %v4412_v5  ;;  %v1772_v54 = vsub.f32 %v1676_v34, %v1724_v27 }
 0x2f6   : > { %v1515_v4 = vpop.xlane.xlu1 %1514  ;;  %v1131_v13 = vpop.xlane.xlu0 %1130 }
 0x2f7   : > { %v1677_v10 = vmul.f32 0.0051020407, %v1515_v4 }
 0x2f9   : > { %1582 = vadd.xlane.f32.xlu0 %v4402_v46  ;;  %1586 = vadd.xlane.f32.xlu1 %v4418_v60  ;;  %v1725_v60 = vmul.f32 %v4616_v40, %v4616_v40 }
 0x2fa   : > { %v1135_v14 = vpop.xlane.xlu0 %1134  ;;  %v1139_v23 = vpop.xlane.xlu1 %1138 }
 0x2fb   : > { %v4640_v55 = vmul.f32 0.0051020407, %v1139_v23 }
 0x2fd   : > { %1206 = vadd.xlane.f32.xlu0 %v4433_v58  ;;  %1210 = vadd.xlane.f32.xlu1 %v4465_v21  ;;  %v1652_v21 = vmul.f32 0.0051020407, %v1415_v35  ;;  %v1703_v9 = vmul.f32 %v4640_v55, %v4640_v55 }
 0x2fe   : > { %v1231_v52 = vpop.xlane.xlu0 %1230  ;;  %v4582_v18 = vpop.xlane.xlu1 %1234 }
 0x2ff   : > { %v1748_v6 = vsub.f32 %v1652_v21, %v1700_v42  ;;  %v4638_v49 = vmul.f32 0.0051020407, %v1231_v52  ;;  %v4657_v35 = vmul.f32 0.0051020407, %v4582_v18  ;;  %v1844_v52 = vld [vmem:[%s4650_s30] sm:$0xff] }
 0x301   : > { %1302 = vadd.xlane.f32.xlu0 %v4436_v62  ;;  %1306 = vadd.xlane.f32.xlu1 %v4468_v45  ;;  %v1796_v36 = vmax.f32 %v1748_v6, 0.0  ;;  %v1773_v45 = vsub.f32 %v1677_v10, %v1725_v60  ;;  %v1726_v63 = vmul.f32 %v4638_v49, %v4638_v49  ;;  %v1727_v18 = vmul.f32 %v4657_v35, %v4657_v35 }
 0x302   : > { %v1423_v43 = vpop.xlane.xlu0 %1422  ;;  %v1427_v59 = vpop.xlane.xlu1 %1426 }
 0x303   : > { %v1892_v46 = vadd.f32 1e-05, %v1796_v36  ;;  %v1655_v32 = vmul.f32 0.0051020407, %v1427_v59  ;;  %v1868_v59 = vld [vmem:[%s4650_s30 + $0xc0] sm:$0xff]  ;;  %v1845_v36 = vld [vmem:[%s4650_s30 + $0x8] sm:$0xff] }
 0x305   : > { %1494 = vadd.xlane.f32.xlu0 %v4453_v25  ;;  %1498 = vadd.xlane.f32.xlu1 %v4480_v51  ;;  %v4600_v25 = vmul.f32 0.0051020407, %v1131_v13  ;;  %3135 = vrsqrt.f32 %v1892_v46 }
 0x306   : > { %v1519_v15 = vpop.xlane.xlu0 %1518  ;;  %v4588_v29 = vpop.xlane.xlu1 %1522 }
 0x307   : > { %v1701_v48 = vmul.f32 %v4600_v25, %v4600_v25  ;;  %v1679_v23 = vmul.f32 0.0051020407, %v4588_v29 }
 0x309   : > { %1590 = vadd.xlane.f32.xlu0 %v4470_v17  ;;  %1594 = vadd.xlane.f32.xlu1 %v4486_v57  ;;  %v1749_v5 = vsub.f32 %v1653_v2, %v1701_v48  ;;  %v4628_v17 = vmul.f32 0.0051020407, %v1135_v14  ;;  %v1751_v14 = vsub.f32 %v1655_v32, %v1703_v9 }
 0x30a   : > { %v4596_v28 = vpop.xlane.xlu0 %1142  ;;  %v4598_v61 = vpop.xlane.xlu1 %1146 }
 0x30b   : > { %v1797_v51 = vmax.f32 %v1749_v5, 0.0  ;;  %v1799_v6 = vmax.f32 %v1751_v14, 0.0  ;;  %v4673_v48 = vmul.f32 0.0051020407, %v4596_v28  ;;  %v2037_v14 = vld [vmem:[%s4679_s8 + $0x8] sm:$0xff] }
 0x30d   : > { %1214 = vadd.xlane.f32.xlu0 %v4501_v1  ;;  %1218 = vadd.xlane.f32.xlu1 %v4533_v3  ;;  %v1820_v3 = vmax.f32 %v1772_v54, 0.0  ;;  %v1893_v31 = vadd.f32 1e-05, %v1797_v51  ;;  %v1821_v1 = vmax.f32 %v1773_v45, 0.0  ;;  %v1775_v54 = vsub.f32 %v1679_v23, %v1727_v18 }
 0x30e   : > { %v4608_v11 = vpop.xlane.xlu0 %1238  ;;  %v4610_v33 = vpop.xlane.xlu1 %1242  ;;  %v1704_v45 = vmul.f32 %v4673_v48, %v4673_v48 }
 0x30f   : > { %v1916_v22 = vadd.f32 1e-05, %v1820_v3  ;;  %v3136_v13 = vpop.eup %3135  ;;  %v1823_v51 = vmax.f32 %v1775_v54, 0.0  ;;  %v4712_v23 = vmul.f32 0.0051020407, %v4610_v33 }
 0x310   : > { %v1988_v27 = vmul.f32 %v3136_v13, %v1844_v52  ;;  %v2060_v13 = vld [vmem:[%s4679_s8 + $0xc0] sm:$0xff] }
 0x311   : > { %1310 = vadd.xlane.f32.xlu0 %v4504_v16  ;;  %1314 = vadd.xlane.f32.xlu1 %v4536_v12  ;;  %3137 = vrsqrt.f32 %v1916_v22  ;;  %v1702_v16 = vmul.f32 %v4628_v17, %v4628_v17  ;;  %v1678_v12 = vmul.f32 0.0051020407, %v1519_v15  ;;  %v1895_v22 = vadd.f32 1e-05, %v1799_v6 }
 0x312   : > { %v1431_v53 = vpop.xlane.xlu0 %1430  ;;  %v4618_v47 = vpop.xlane.xlu1 %1434  ;;  %3139 = vrsqrt.f32 %v1893_v31  ;;  %v2084_v28 = vmul.f32 %v1988_v27, %v4590_v38  ;;  %v4691_v31 = vmul.f32 0.0051020407, %v4608_v11  ;;  %v1919_v11 = vadd.f32 1e-05, %v1823_v51  ;;  %v1870_v51 = vld [vmem:[%s4650_s30 + $0xd0] sm:$0xff] }
 0x313   : > { %v1774_v4 = vsub.f32 %v1678_v12, %v1726_v63  ;;  %v1656_v3 = vmul.f32 0.0051020407, %v1431_v53  ;;  %v1869_v12 = vld [vmem:[%s4650_s30 + $0xc8] sm:$0xff]  ;;  %v1657_v63 = vmul.f32 0.0051020407, %v4618_v47  ;;  %v1729_v6 = vmul.f32 %v4712_v23, %v4712_v23 }
 0x315   : > { %1502 = vadd.xlane.f32.xlu0 %v4521_v7  ;;  %1506 = vadd.xlane.f32.xlu1 %v4544_v20  ;;  %v1654_v7 = vmul.f32 0.0051020407, %v1423_v43  ;;  %v1822_v42 = vmax.f32 %v1774_v4, 0.0 }
 0x316   : > { %v4624_v58 = vpop.xlane.xlu0 %1526  ;;  %v4626_v62 = vpop.xlane.xlu1 %1530 }
 0x317   : > { %v1750_v8 = vsub.f32 %v1654_v7, %v1702_v16  ;;  %v1918_v46 = vadd.f32 1e-05, %v1822_v42  ;;  %v2036_v7 = vld [vmem:[%s4679_s8] sm:$0xff]  ;;  %v1752_v16 = vsub.f32 %v1656_v3, %v1704_v45  ;;  %v1681_v18 = vmul.f32 0.0051020407, %v4626_v62  ;;  %v1846_v42 = vld [vmem:[%s4650_s30 + $0x10] sm:$0xff] }
 0x318   : > { %v2132_v32 = vsub.f32 %v2036_v7, %v2084_v28 }
 0x319   : > { %1598 = vadd.xlane.f32.xlu0 %v4538_v24  ;;  %1602 = vadd.xlane.f32.xlu1 %v4546_v39  ;;  %v1917_v24 = vadd.f32 1e-05, %v1821_v1  ;;  %v1798_v26 = vmax.f32 %v1750_v8, 0.0  ;;  %v4694_v1 = vmul.f32 0.0051020407, %v4598_v61  ;;  %v1800_v52 = vmax.f32 %v1752_v16, 0.0 }
 0x31a   : > { %v4632_v57 = vpop.xlane.xlu0 %1150  ;;  %v4634_v20 = vpop.xlane.xlu1 %1154  ;;  %v1777_v28 = vsub.f32 %v1681_v18, %v1729_v6 }
 0x31b   : > { %3141 = vrsqrt.f32 %v1917_v24  ;;  %v3138_v43 = vpop.eup %3137  ;;  %v1894_v15 = vadd.f32 1e-05, %v1798_v26  ;;  %v1680_v24 = vmul.f32 0.0051020407, %v4624_v58  ;;  %v1728_v26 = vmul.f32 %v4691_v31, %v4691_v31 }
 0x31c   : > { %v2012_v29 = vmul.f32 %v3138_v43, %v1868_v59  ;;  %v3140_v2 = vpop.eup %3139  ;;  %v1705_v58 = vmul.f32 %v4694_v1, %v4694_v1  ;;  %v1896_v54 = vadd.f32 1e-05, %v1800_v52  ;;  %v1871_v52 = vld [vmem:[%s4650_s30 + $0xd8] sm:$0xff] }
 0x31d   : > { %3143 = vrsqrt.f32 %v1894_v15  ;;  %v1989_v60 = vmul.f32 %v3140_v2, %v1845_v36  ;;  %v2061_v36 = vld [vmem:[%s4679_s8 + $0xc8] sm:$0xff] }
 0x31e   : > { %v4642_v30 = vpop.xlane.xlu0 %1246  ;;  %v4644_v39 = vpop.xlane.xlu1 %1250  ;;  %3145 = vrsqrt.f32 %v1918_v46  ;;  %v2108_v61 = vmul.f32 %v2012_v29, %v4592_v56  ;;  %v1776_v56 = vsub.f32 %v1680_v24, %v1728_v26  ;;  %v1753_v59 = vsub.f32 %v1657_v63, %v1705_v58 }
 0x31f   : > { %3147 = vrsqrt.f32 %v1895_v22  ;;  %v2085_v9 = vmul.f32 %v1989_v60, %v4600_v25 }
 0x320   : > { %3149 = vrsqrt.f32 %v1919_v11  ;;  %v2156_v15 = vsub.f32 %v2060_v13, %v2108_v61  ;;  %v1824_v3 = vmax.f32 %v1776_v56, 0.0  ;;  %v1801_v46 = vmax.f32 %v1753_v59, 0.0 }
 0x321   : > { %3151 = vrsqrt.f32 %v1896_v54  ;;  %v1825_v11 = vmax.f32 %v1777_v28, 0.0  ;;  %v4746_v13 = vmul.f32 0.0051020407, %v4634_v20  ;;  %v1848_v28 = vld [vmem:[%s4650_s30 + $0x20] sm:$0xff] }
 0x322   : > { %v4659_v50 = vpop.xlane.xlu0 %1438  ;;  %v4661_v19 = vpop.xlane.xlu1 %1442  ;;  %v1920_v24 = vadd.f32 1e-05, %v1824_v3 }
 0x323   : > { %v1658_v7 = vmul.f32 0.0051020407, %v4659_v50  ;;  %v4743_v50 = vmul.f32 0.0051020407, %v4642_v30  ;;  %v1659_v59 = vmul.f32 0.0051020407, %v4661_v19 }
 0x324   : > { %3153 = vrsqrt.f32 %v1920_v24 }
 0x325   : > { %v3142_v53 = vpop.eup %3141  ;;  %v1730_v18 = vmul.f32 %v4743_v50, %v4743_v50 }
 0x326   : > { %v4668_v21 = vpop.xlane.xlu0 %1534  ;;  %v4670_v34 = vpop.xlane.xlu1 %1538  ;;  %v2013_v4 = vmul.f32 %v3142_v53, %v1869_v12  ;;  %v1847_v12 = vld [vmem:[%s4650_s30 + $0x18] sm:$0xff] }
 0x327   : > { %v3144_v25 = vpop.eup %3143  ;;  %v1682_v56 = vmul.f32 0.0051020407, %v4668_v21  ;;  %v1707_v21 = vmul.f32 %v4746_v13, %v4746_v13 }
 0x328   : > { %v2109_v33 = vmul.f32 %v2013_v4, %v4616_v40  ;;  %v1990_v62 = vmul.f32 %v3144_v25, %v1846_v42  ;;  %v3146_v40 = vpop.eup %3145  ;;  %v1921_v25 = vadd.f32 1e-05, %v1825_v11  ;;  %v2062_v42 = vld [vmem:[%s4679_s8 + $0xd0] sm:$0xff] }
 0x329   : > { %v3148_v45 = vpop.eup %3147  ;;  %v2014_v61 = vmul.f32 %v3146_v40, %v1870_v51 }
 0x32a   : > { %v4682_v5 = vpop.xlane.xlu0 %1158  ;;  %v4684_v10 = vpop.xlane.xlu1 %1162  ;;  %2302 = vperm.xlu1 %3102, %v2012_v29   ;;  %v2157_v22 = vsub.f32 %v2061_v36, %v2109_v33  ;;  %v1991_v26 = vmul.f32 %v3148_v45, %v1847_v12  ;;  %v4763_v33 = vmul.f32 0.0051020407, %v4644_v39  ;;  %v1778_v36 = vsub.f32 %v1682_v56, %v1730_v18  ;;  %v2063_v12 = vld [vmem:[%s4679_s8 + $0xd8] sm:$0xff]  ;;  %v2040_v18 = vld [vmem:[%s4679_s8 + $0x20] sm:$0xff] }
 0x32b   : > { %v2110_v20 = vmul.f32 %v2014_v61, %v4638_v49  ;;  %v2039_v49 = vld [vmem:[%s4679_s8 + $0x18] sm:$0xff]  ;;  %v4781_v11 = vmul.f32 0.0051020407, %v4682_v5 }
 0x32c   : > { %v1826_v24 = vmax.f32 %v1778_v36, 0.0 }
 0x32e   : > { %v4696_v8 = vpop.xlane.xlu0 %1254  ;;  %v4698_v38 = vpop.xlane.xlu1 %1258  ;;  %2187 = vperm.xlu1 %3102, %v1989_v60   ;;  %v4729_v60 = vmul.f32 0.0051020407, %v4632_v57  ;;  %v2086_v57 = vmul.f32 %v1990_v62, %v4628_v17  ;;  %v1922_v56 = vadd.f32 1e-05, %v1826_v24 }
 0x32f   : > { %2182 = vperm.xlu0 %3101, %v1988_v27   ;;  %v2133_v27 = vsub.f32 %v2037_v14, %v2085_v9  ;;  %v2038_v9 = vld [vmem:[%s4679_s8 + $0x10] sm:$0xff] }
 0x330   : > { %v1706_v63 = vmul.f32 %v4729_v60, %v4729_v60  ;;  %v2134_v30 = vsub.f32 %v2038_v9, %v2086_v57 }
 0x332   : > { %v4714_v43 = vpop.xlane.xlu0 %1446  ;;  %v4716_v47 = vpop.xlane.xlu1 %1450  ;;  %2518 = vperm.xlu1 %3102, %v2132_v32   ;;  %v1897_v32 = vadd.f32 1e-05, %v1801_v46  ;;  %v1754_v14 = vsub.f32 %v1658_v7, %v1706_v63  ;;  %v2158_v46 = vsub.f32 %v2062_v42, %v2110_v20 }
 0x333   : > { %2307 = vperm.xlu0 %3101, %v2013_v4   ;;  %v3150_v4 = vpop.eup %3149 }
 0x334   : > { %3155 = vrsqrt.f32 %v1897_v32  ;;  %v1802_v6 = vmax.f32 %v1754_v14, 0.0  ;;  %v3152_v3 = vpop.eup %3151 }
 0x335   : > { %3157 = vrsqrt.f32 %v1921_v25 }
 0x336   : > { %v4723_v29 = vpop.xlane.xlu0 %1542  ;;  %v4725_v2 = vpop.xlane.xlu1 %1546  ;;  %2638 = vperm.xlu1 %3102, %v2156_v15   ;;  %v2015_v15 = vmul.f32 %v3150_v4, %v1871_v52  ;;  %v1898_v51 = vadd.f32 1e-05, %v1802_v6  ;;  %v1849_v52 = vld [vmem:[%s4650_s30 + $0x28] sm:$0xff] }
 0x337   : > { %2523 = vperm.xlu0 %3101, %v2133_v27   ;;  %v2087_v27 = vmul.f32 %v1991_v26, %v4640_v55  ;;  %v1683_v55 = vmul.f32 0.0051020407, %v4670_v34  ;;  %v1992_v34 = vmul.f32 %v3152_v3, %v1848_v28  ;;  %v1684_v36 = vmul.f32 0.0051020407, %v4723_v29  ;;  %v2064_v28 = vld [vmem:[%s4679_s8 + $0xe0] sm:$0xff] }
 0x338   : > { %v2111_v39 = vmul.f32 %v2015_v15, %v4657_v35  ;;  %v3154_v35 = vpop.eup %3153  ;;  %3159 = vrsqrt.f32 %v1898_v51 }
 0x339   : > { %v2135_v40 = vsub.f32 %v2039_v49, %v2087_v27  ;;  %v2088_v5 = vmul.f32 %v1992_v34, %v4673_v48  ;;  %v4798_v27 = vmul.f32 0.0051020407, %v4684_v10  ;;  %v1873_v49 = vld [vmem:[%s4650_s30 + $0xe8] sm:$0xff]  ;;  %3161 = vrsqrt.f32 %v1922_v56 }
 0x33a   : > { %v4733_v53 = vpop.xlane.xlu0 %1166  ;;  %v4735_v16 = vpop.xlane.xlu1 %1170  ;;  %2192 = vperm.xlu1 %3102, %v1990_v62   ;;  %v1755_v62 = vsub.f32 %v1659_v59, %v1707_v21  ;;  %v2159_v63 = vsub.f32 %v2063_v12, %v2111_v39  ;;  %v1708_v59 = vmul.f32 %v4781_v11, %v4781_v11  ;;  %v4815_v39 = vmul.f32 0.0051020407, %v4698_v38 }
 0x33b   : > { %2643 = vperm.xlu0 %3101, %v2157_v22   ;;  %v1731_v22 = vmul.f32 %v4763_v33, %v4763_v33  ;;  %v1709_v29 = vmul.f32 %v4798_v27, %v4798_v27 }
 0x33c   : > { %v1803_v57 = vmax.f32 %v1755_v62, 0.0  ;;  %v1661_v62 = vmul.f32 0.0051020407, %v4716_v47 }
 0x33d   : > { %v1779_v32 = vsub.f32 %v1683_v55, %v1731_v22 }
 0x33e   : > { %v4748_v58 = vpop.xlane.xlu0 %1262  ;;  %v4750_v17 = vpop.xlane.xlu1 %1266  ;;  %2312 = vperm.xlu1 %3102, %v2014_v61   ;;  %v1872_v61 = vld [vmem:[%s4650_s30 + $0xe0] sm:$0xff] }
 0x33f   : > { %2197 = vperm.xlu0 %3101, %v1991_v26   ;;  %v3156_v9 = vpop.eup %3155  ;;  %v1660_v26 = vmul.f32 0.0051020407, %v4714_v43  ;;  %v1827_v25 = vmax.f32 %v1779_v32, 0.0  ;;  %v2016_v20 = vmul.f32 %v3154_v35, %v1872_v61  ;;  %v4795_v43 = vmul.f32 0.0051020407, %v4696_v8  ;;  %v1850_v32 = vld [vmem:[%s4650_s30 + $0x30] sm:$0xff] }
 0x340   : > { %v3158_v42 = vpop.eup %3157  ;;  %v2136_v8 = vsub.f32 %v2040_v18, %v2088_v5 }
 0x341   : > { %v1756_v21 = vsub.f32 %v1660_v26, %v1708_v59  ;;  %v1923_v3 = vadd.f32 1e-05, %v1827_v25  ;;  %v2112_v10 = vmul.f32 %v2016_v20, %v4691_v31  ;;  %v1732_v55 = vmul.f32 %v4795_v43, %v4795_v43  ;;  %v2041_v31 = vld [vmem:[%s4679_s8 + $0x28] sm:$0xff] }
 0x342   : > { %v4765_v54 = vpop.xlane.xlu0 %1454  ;;  %v4767_v19 = vpop.xlane.xlu1 %1458  ;;  %2528 = vperm.xlu1 %3102, %v2134_v30   ;;  %v1899_v30 = vadd.f32 1e-05, %v1803_v57  ;;  %v4833_v25 = vmul.f32 0.0051020407, %v4733_v53 }
 0x343   : > { %2317 = vperm.xlu0 %3101, %v2015_v15   ;;  %v1993_v15 = vmul.f32 %v3156_v9, %v1849_v52  ;;  %v1804_v22 = vmax.f32 %v1756_v21, 0.0  ;;  %v1780_v12 = vsub.f32 %v1684_v36, %v1732_v55  ;;  %v3160_v24 = vpop.eup %3159  ;;  %v2160_v57 = vsub.f32 %v2064_v28, %v2112_v10  ;;  %v2065_v52 = vld [vmem:[%s4679_s8 + $0xe8] sm:$0xff]  ;;  %v2042_v55 = vld [vmem:[%s4679_s8 + $0x30] sm:$0xff] }
 0x344   : > { %3163 = vrsqrt.f32 %v1899_v30 }
 0x345   : > { %3165 = vrsqrt.f32 %v1923_v3  ;;  %v1900_v61 = vadd.f32 1e-05, %v1804_v22  ;;  %v1828_v56 = vmax.f32 %v1780_v12, 0.0 }
 0x346   : > { %v4775_v45 = vpop.xlane.xlu0 %1550  ;;  %v4777_v7 = vpop.xlane.xlu1 %1554  ;;  %2648 = vperm.xlu1 %3102, %v2158_v46   ;;  %v2017_v46 = vmul.f32 %v3158_v42, %v1873_v49  ;;  %v1851_v49 = vld [vmem:[%s4650_s30 + $0x38] sm:$0xff] }
 0x347   : > { %2533 = vperm.xlu0 %3101, %v2135_v40   ;;  %v2089_v40 = vmul.f32 %v1993_v15, %v4694_v1  ;;  %v1685_v1 = vmul.f32 0.0051020407, %v4725_v2  ;;  %v1994_v2 = vmul.f32 %v3160_v24, %v1850_v32  ;;  %3167 = vrsqrt.f32 %v1900_v61  ;;  %v2066_v32 = vld [vmem:[%s4679_s8 + $0xf0] sm:$0xff] }
 0x348   : > { %v2113_v38 = vmul.f32 %v2017_v46, %v4712_v23  ;;  %v3162_v23 = vpop.eup %3161  ;;  %v1924_v36 = vadd.f32 1e-05, %v1828_v56  ;;  %v1686_v12 = vmul.f32 0.0051020407, %v4775_v45 }
 0x349   : > { %v2137_v35 = vsub.f32 %v2041_v31, %v2089_v40  ;;  %v2090_v53 = vmul.f32 %v1994_v2, %v4729_v60  ;;  %v4850_v40 = vmul.f32 0.0051020407, %v4735_v16  ;;  %v1875_v31 = vld [vmem:[%s4650_s30 + $0xf8] sm:$0xff] }
 0x34a   : > { %v4785_v4 = vpop.xlane.xlu0 %1174  ;;  %v4787_v14 = vpop.xlane.xlu1 %1178  ;;  %2202 = vperm.xlu1 %3102, %v1992_v34   ;;  %v1757_v34 = vsub.f32 %v1661_v62, %v1709_v29  ;;  %v2161_v59 = vsub.f32 %v2065_v52, %v2113_v38  ;;  %v1710_v62 = vmul.f32 %v4833_v25, %v4833_v25  ;;  %3169 = vrsqrt.f32 %v1924_v36 }
 0x34b   : > { %2653 = vperm.xlu0 %3101, %v2159_v63   ;;  %v1733_v63 = vmul.f32 %v4815_v39, %v4815_v39  ;;  %v1711_v45 = vmul.f32 %v4850_v40, %v4850_v40  ;;  %v4867_v38 = vmul.f32 0.0051020407, %v4750_v17 }
 0x34c   : > { %v1805_v5 = vmax.f32 %v1757_v34, 0.0  ;;  %v1663_v34 = vmul.f32 0.0051020407, %v4767_v19 }
 0x34d   : > { %v1781_v30 = vsub.f32 %v1685_v1, %v1733_v63 }
 0x34e   : > { %v4800_v6 = vpop.xlane.xlu0 %1270  ;;  %v4802_v48 = vpop.xlane.xlu1 %1274  ;;  %2322 = vperm.xlu1 %3102, %v2016_v20   ;;  %v1874_v20 = vld [vmem:[%s4650_s30 + $0xf0] sm:$0xff] }
 0x34f   : > { %2207 = vperm.xlu0 %3101, %v1993_v15   ;;  %v3164_v18 = vpop.eup %3163  ;;  %v1662_v15 = vmul.f32 0.0051020407, %v4765_v54  ;;  %v1829_v3 = vmax.f32 %v1781_v30, 0.0  ;;  %v2018_v10 = vmul.f32 %v3162_v23, %v1874_v20  ;;  %v4847_v54 = vmul.f32 0.0051020407, %v4748_v58  ;;  %v1852_v30 = vld [vmem:[%s4650_s30 + $0x40] sm:$0xff] }
 0x350   : > { %v3166_v28 = vpop.eup %3165  ;;  %v2138_v58 = vsub.f32 %v2042_v55, %v2090_v53 }
 0x351   : > { %v1758_v29 = vsub.f32 %v1662_v15, %v1710_v62  ;;  %v1925_v24 = vadd.f32 1e-05, %v1829_v3  ;;  %v2114_v16 = vmul.f32 %v2018_v10, %v4743_v50  ;;  %v1734_v1 = vmul.f32 %v4847_v54, %v4847_v54  ;;  %v2043_v50 = vld [vmem:[%s4679_s8 + $0x38] sm:$0xff]  ;;  %v3168_v56 = vpop.eup %3167 }
 0x352   : > { %v4817_v51 = vpop.xlane.xlu0 %1462  ;;  %v4819_v47 = vpop.xlane.xlu1 %1466  ;;  %2538 = vperm.xlu1 %3102, %v2136_v8   ;;  %v1901_v8 = vadd.f32 1e-05, %v1805_v5  ;;  %v4885_v3 = vmul.f32 0.0051020407, %v4785_v4 }
 0x353   : > { %2327 = vperm.xlu0 %3101, %v2017_v46   ;;  %v1995_v46 = vmul.f32 %v3164_v18, %v1851_v49  ;;  %v1806_v63 = vmax.f32 %v1758_v29, 0.0  ;;  %v1782_v52 = vsub.f32 %v1686_v12, %v1734_v1  ;;  %v2162_v5 = vsub.f32 %v2066_v32, %v2114_v16  ;;  %v2067_v49 = vld [vmem:[%s4679_s8 + $0xf8] sm:$0xff]  ;;  %v2044_v1 = vld [vmem:[%s4679_s8 + $0x40] sm:$0xff] }
 0x354   : > { %3171 = vrsqrt.f32 %v1901_v8 }
 0x355   : > { %3173 = vrsqrt.f32 %v1925_v24  ;;  %v1902_v20 = vadd.f32 1e-05, %v1806_v63  ;;  %v1830_v36 = vmax.f32 %v1782_v52, 0.0 }
 0x356   : > { %v4827_v9 = vpop.xlane.xlu0 %1558  ;;  %v4829_v26 = vpop.xlane.xlu1 %1562  ;;  %2658 = vperm.xlu1 %3102, %v2160_v57   ;;  %v2019_v57 = vmul.f32 %v3166_v28, %v1875_v31  ;;  %v1853_v31 = vld [vmem:[%s4650_s30 + $0x48] sm:$0xff] }
 0x357   : > { %2543 = vperm.xlu0 %3101, %v2137_v35   ;;  %v2091_v35 = vmul.f32 %v1995_v46, %v4746_v13  ;;  %v1687_v13 = vmul.f32 0.0051020407, %v4777_v7  ;;  %v1996_v7 = vmul.f32 %v3168_v56, %v1852_v30  ;;  %3175 = vrsqrt.f32 %v1902_v20  ;;  %v2068_v30 = vld [vmem:[%s4679_s8 + $0x100] sm:$0xff] }
 0x358   : > { %v2115_v17 = vmul.f32 %v2019_v57, %v4763_v33  ;;  %v3170_v33 = vpop.eup %3169  ;;  %v1926_v12 = vadd.f32 1e-05, %v1830_v36  ;;  %v1688_v52 = vmul.f32 0.0051020407, %v4827_v9 }
 0x359   : > { %v2139_v23 = vsub.f32 %v2043_v50, %v2091_v35  ;;  %v2092_v4 = vmul.f32 %v1996_v7, %v4781_v11  ;;  %v4902_v35 = vmul.f32 0.0051020407, %v4787_v14  ;;  %v1877_v50 = vld [vmem:[%s4650_s30 + $0x108] sm:$0xff] }
 0x35a   : > { %v4837_v42 = vpop.xlane.xlu0 %1182  ;;  %v4839_v21 = vpop.xlane.xlu1 %1186  ;;  %2212 = vperm.xlu1 %3102, %v1994_v2   ;;  %v1759_v2 = vsub.f32 %v1663_v34, %v1711_v45  ;;  %v2163_v62 = vsub.f32 %v2067_v49, %v2115_v17  ;;  %v1712_v34 = vmul.f32 %v4885_v3, %v4885_v3  ;;  %3177 = vrsqrt.f32 %v1926_v12 }
 0x35b   : > { %2663 = vperm.xlu0 %3101, %v2161_v59   ;;  %v1735_v59 = vmul.f32 %v4867_v38, %v4867_v38  ;;  %v1713_v9 = vmul.f32 %v4902_v35, %v4902_v35  ;;  %v4919_v17 = vmul.f32 0.0051020407, %v4802_v48 }
 0x35c   : > { %v1807_v53 = vmax.f32 %v1759_v2, 0.0  ;;  %v1665_v2 = vmul.f32 0.0051020407, %v4819_v47 }
 0x35d   : > { %v1783_v8 = vsub.f32 %v1687_v13, %v1735_v59 }
 0x35e   : > { %v4852_v22 = vpop.xlane.xlu0 %1278  ;;  %v4854_v60 = vpop.xlane.xlu1 %1282  ;;  %2332 = vperm.xlu1 %3102, %v2018_v10   ;;  %v1876_v10 = vld [vmem:[%s4650_s30 + $0x100] sm:$0xff] }
 0x35f   : > { %2217 = vperm.xlu0 %3101, %v1995_v46   ;;  %v3172_v55 = vpop.eup %3171  ;;  %v1664_v46 = vmul.f32 0.0051020407, %v4817_v51  ;;  %v1831_v24 = vmax.f32 %v1783_v8, 0.0  ;;  %v2020_v16 = vmul.f32 %v3170_v33, %v1876_v10  ;;  %v4899_v51 = vmul.f32 0.0051020407, %v4800_v6  ;;  %v1854_v8 = vld [vmem:[%s4650_s30 + $0x50] sm:$0xff] }
 0x360   : > { %v3174_v32 = vpop.eup %3173  ;;  %v2140_v6 = vsub.f32 %v2044_v1, %v2092_v4 }
 0x361   : > { %v1760_v45 = vsub.f32 %v1664_v46, %v1712_v34  ;;  %v1927_v56 = vadd.f32 1e-05, %v1831_v24  ;;  %v2116_v14 = vmul.f32 %v2020_v16, %v4795_v43  ;;  %v1736_v13 = vmul.f32 %v4899_v51, %v4899_v51  ;;  %v2045_v43 = vld [vmem:[%s4679_s8 + $0x48] sm:$0xff]  ;;  %v3176_v36 = vpop.eup %3175 }
 0x362   : > { %v4869_v61 = vpop.xlane.xlu0 %1470  ;;  %v4871_v19 = vpop.xlane.xlu1 %1474  ;;  %2548 = vperm.xlu1 %3102, %v2138_v58   ;;  %v1903_v58 = vadd.f32 1e-05, %v1807_v53  ;;  %v4937_v34 = vmul.f32 0.0051020407, %v4837_v42 }
 0x363   : > { %2337 = vperm.xlu0 %3101, %v2019_v57   ;;  %v1997_v57 = vmul.f32 %v3172_v55, %v1853_v31  ;;  %v1808_v59 = vmax.f32 %v1760_v45, 0.0  ;;  %v1784_v49 = vsub.f32 %v1688_v52, %v1736_v13  ;;  %v2164_v53 = vsub.f32 %v2068_v30, %v2116_v14  ;;  %v2069_v31 = vld [vmem:[%s4679_s8 + $0x108] sm:$0xff]  ;;  %v1855_v45 = vld [vmem:[%s4650_s30 + $0x58] sm:$0xff]  ;;  %v2046_v13 = vld [vmem:[%s4679_s8 + $0x50] sm:$0xff] }
 0x364   : > { %3179 = vrsqrt.f32 %v1903_v58  ;;  %v3178_v24 = vpop.eup %3177  ;;  %v1666_v52 = vmul.f32 0.0051020407, %v4869_v61  ;;  %v4954_v30 = vmul.f32 0.0051020407, %v4852_v22  ;;  %v1667_v61 = vmul.f32 0.0051020407, %v4871_v19 }
 0x365   : > { %3181 = vrsqrt.f32 %v1927_v56  ;;  %v1904_v10 = vadd.f32 1e-05, %v1808_v59  ;;  %v1832_v12 = vmax.f32 %v1784_v49, 0.0 }
 0x366   : > { %v4879_v18 = vpop.xlane.xlu0 %1566  ;;  %v4881_v15 = vpop.xlane.xlu1 %1570  ;;  %2668 = vperm.xlu1 %3102, %v2162_v5   ;;  %v2021_v5 = vmul.f32 %v3174_v32, %v1877_v50 }
 0x367   : > { %2553 = vperm.xlu0 %3101, %v2139_v23   ;;  %v2093_v23 = vmul.f32 %v1997_v57, %v4798_v27  ;;  %v1689_v27 = vmul.f32 0.0051020407, %v4829_v26  ;;  %v1998_v26 = vmul.f32 %v3176_v36, %v1854_v8  ;;  %3183 = vrsqrt.f32 %v1904_v10  ;;  %v2070_v8 = vld [vmem:[%s4679_s8 + $0x110] sm:$0xff] }
 0x368   : > { %v2117_v48 = vmul.f32 %v2021_v5, %v4815_v39  ;;  %v1928_v50 = vadd.f32 1e-05, %v1832_v12  ;;  %v1690_v49 = vmul.f32 0.0051020407, %v4879_v18  ;;  %v4971_v18 = vmul.f32 0.0051020407, %v4854_v60 }
 0x369   : > { %v2141_v33 = vsub.f32 %v2045_v43, %v2093_v23 }
 0x36a   : > { %v4889_v28 = vpop.xlane.xlu0 %1190  ;;  %v4891_v29 = vpop.xlane.xlu1 %1194  ;;  %2222 = vperm.xlu1 %3102, %v1996_v7   ;;  %v1761_v7 = vsub.f32 %v1665_v2, %v1713_v9  ;;  %v2165_v39 = vsub.f32 %v2069_v31, %v2117_v48  ;;  %v4948_v2 = vmul.f32 0.0051020407, %v4839_v21  ;;  %v1879_v21 = vld [vmem:[%s4650_s30 + $0x118] sm:$0xff]  ;;  %3185 = vrsqrt.f32 %v1928_v50 }
 0x36b   : > { %2673 = vperm.xlu0 %3101, %v2163_v62   ;;  %v1737_v62 = vmul.f32 %v4919_v17, %v4919_v17  ;;  %v2047_v31 = vld [vmem:[%s4679_s8 + $0x58] sm:$0xff] }
 0x36c   : > { %v1809_v4 = vmax.f32 %v1761_v7, 0.0  ;;  %v1715_v7 = vmul.f32 %v4948_v2, %v4948_v2  ;;  %v2071_v50 = vld [vmem:[%s4679_s8 + $0x118] sm:$0xff] }
 0x36d   : > { %v1785_v58 = vsub.f32 %v1689_v27, %v1737_v62  ;;  %v1738_v27 = vmul.f32 %v4954_v30, %v4954_v30 }
 0x36e   : > { %v4904_v63 = vpop.xlane.xlu0 %1286  ;;  %v4906_v11 = vpop.xlane.xlu1 %1290  ;;  %2342 = vperm.xlu1 %3102, %v2020_v16   ;;  %v1878_v16 = vld [vmem:[%s4650_s30 + $0x110] sm:$0xff]  ;;  %v1905_v42 = vadd.f32 1e-05, %v1809_v4  ;;  %v1763_v48 = vsub.f32 %v1667_v61, %v1715_v7  ;;  %v1691_v4 = vmul.f32 0.0051020407, %v4881_v15 }
 0x36f   : > { %2227 = vperm.xlu0 %3101, %v1997_v57   ;;  %v3180_v1 = vpop.eup %3179  ;;  %v1833_v56 = vmax.f32 %v1785_v58, 0.0  ;;  %v2022_v14 = vmul.f32 %v3178_v24, %v1878_v16  ;;  %v1786_v12 = vsub.f32 %v1690_v49, %v1738_v27  ;;  %v5002_v7 = vmul.f32 0.0051020407, %v4891_v29 }
 0x370   : > { %v1999_v23 = vmul.f32 %v3180_v1, %v1855_v45  ;;  %v3182_v9 = vpop.eup %3181  ;;  %3187 = vrsqrt.f32 %v1905_v42  ;;  %v1811_v16 = vmax.f32 %v1763_v48, 0.0  ;;  %v5006_v27 = vmul.f32 0.0051020407, %v4904_v63 }
 0x371   : > { %v1929_v22 = vadd.f32 1e-05, %v1833_v56  ;;  %v2118_v19 = vmul.f32 %v2022_v14, %v4847_v54  ;;  %v4989_v56 = vmul.f32 0.0051020407, %v4889_v28 }
 0x372   : > { %v4921_v20 = vpop.xlane.xlu0 %1478  ;;  %v4923_v47 = vpop.xlane.xlu1 %1482  ;;  %2558 = vperm.xlu1 %3102, %v2140_v6   ;;  %v2094_v6 = vmul.f32 %v1998_v26, %v4833_v25 }
 0x373   : > { %2347 = vperm.xlu0 %3101, %v2021_v5   ;;  %v1714_v5 = vmul.f32 %v4937_v34, %v4937_v34  ;;  %3189 = vrsqrt.f32 %v1929_v22  ;;  %v2166_v58 = vsub.f32 %v2070_v8, %v2118_v19  ;;  %v1716_v22 = vmul.f32 %v4989_v56, %v4989_v56  ;;  %v2048_v19 = vld [vmem:[%s4679_s8 + $0x60] sm:$0xff] }
 0x374   : > { %v2142_v36 = vsub.f32 %v2046_v13, %v2094_v6  ;;  %v1834_v6 = vmax.f32 %v1786_v12, 0.0  ;;  %v1880_v13 = vld [vmem:[%s4650_s30 + $0x120] sm:$0xff]  ;;  %v1669_v48 = vmul.f32 0.0051020407, %v4923_v47 }
 0x375   : > { %v1762_v43 = vsub.f32 %v1666_v52, %v1714_v5 }
 0x376   : > { %v4931_v55 = vpop.xlane.xlu0 %1574  ;;  %v4933_v46 = vpop.xlane.xlu1 %1578  ;;  %2678 = vperm.xlu1 %3102, %v2164_v53   ;;  %v2023_v53 = vmul.f32 %v3182_v9, %v1879_v21  ;;  %v1668_v9 = vmul.f32 0.0051020407, %v4921_v20  ;;  %v1930_v49 = vadd.f32 1e-05, %v1834_v6 }
 0x377   : > { %2563 = vperm.xlu0 %3101, %v2141_v33   ;;  %v2095_v33 = vmul.f32 %v1999_v23, %v4850_v40  ;;  %v1810_v54 = vmax.f32 %v1762_v43, 0.0  ;;  %v1856_v40 = vld [vmem:[%s4650_s30 + $0x60] sm:$0xff]  ;;  %v1857_v43 = vld [vmem:[%s4650_s30 + $0x68] sm:$0xff]  ;;  %v1692_v29 = vmul.f32 0.0051020407, %v4931_v55 }
 0x378   : > { %v2119_v60 = vmul.f32 %v2023_v53, %v4867_v38 }
 0x379   : > { %v2143_v24 = vsub.f32 %v2047_v31, %v2095_v33  ;;  %v1906_v52 = vadd.f32 1e-05, %v1810_v54  ;;  %v1764_v33 = vsub.f32 %v1668_v9, %v1716_v22  ;;  %v1881_v54 = vld [vmem:[%s4650_s30 + $0x128] sm:$0xff] }
 0x37a   : > { %v4940_v57 = vpop.xlane.xlu0 %1198  ;;  %v4942_v32 = vpop.xlane.xlu1 %1202  ;;  %2232 = vperm.xlu1 %3102, %v1998_v26  }
 0x37b   : > { %2683 = vperm.xlu0 %3101, %v2165_v39   ;;  %v3184_v26 = vpop.eup %3183  ;;  %v1739_v39 = vmul.f32 %v4971_v18, %v4971_v18  ;;  %3191 = vrsqrt.f32 %v1906_v52  ;;  %v1812_v55 = vmax.f32 %v1764_v33, 0.0 }
 0x37c   : > { %v2000_v15 = vmul.f32 %v3184_v26, %v1856_v40  ;;  %v3186_v38 = vpop.eup %3185  ;;  %v1717_v26 = vmul.f32 %v5002_v7, %v5002_v7 }
 0x37d   : > { %v1787_v42 = vsub.f32 %v1691_v4, %v1739_v39  ;;  %v3188_v5 = vpop.eup %3187  ;;  %v2024_v20 = vmul.f32 %v3186_v38, %v1880_v13  ;;  %v5018_v4 = vmul.f32 0.0051020407, %v4906_v11  ;;  %v2049_v11 = vld [vmem:[%s4679_s8 + $0x68] sm:$0xff]  ;;  %v1908_v13 = vadd.f32 1e-05, %v1812_v55 }
 0x37e   : > { %v4957_v59 = vpop.xlane.xlu0 %1294  ;;  %v4959_v25 = vpop.xlane.xlu1 %1298  ;;  %2352 = vperm.xlu1 %3102, %v2022_v14   ;;  %v2167_v14 = vsub.f32 %v2071_v50, %v2119_v60  ;;  %v2096_v28 = vmul.f32 %v2000_v15, %v4885_v3  ;;  %v1765_v39 = vsub.f32 %v1669_v48, %v1717_v26 }
 0x37f   : > { %2237 = vperm.xlu0 %3101, %v1999_v23   ;;  %v1907_v23 = vadd.f32 1e-05, %v1811_v16  ;;  %v3190_v8 = vpop.eup %3189  ;;  %v2120_v47 = vmul.f32 %v2024_v20, %v4899_v51  ;;  %v1693_v16 = vmul.f32 0.0051020407, %v4933_v46  ;;  %v1741_v51 = vmul.f32 %v5018_v4, %v5018_v4  ;;  %v1858_v46 = vld [vmem:[%s4650_s30 + $0x70] sm:$0xff] }
 0x380   : > { %v2144_v63 = vsub.f32 %v2048_v19, %v2096_v28  ;;  %v2025_v40 = vmul.f32 %v3190_v8, %v1881_v54  ;;  %v1859_v8 = vld [vmem:[%s4650_s30 + $0x78] sm:$0xff]  ;;  %v5049_v54 = vmul.f32 0.0051020407, %v4942_v32  ;;  %v2050_v32 = vld [vmem:[%s4679_s8 + $0x70] sm:$0xff] }
 0x381   : > { %3193 = vrsqrt.f32 %v1907_v23  ;;  %v1789_v23 = vsub.f32 %v1693_v16, %v1741_v51 }
 0x382   : > { %v4973_v62 = vpop.xlane.xlu0 %1486  ;;  %v4975_v10 = vpop.xlane.xlu1 %1490  ;;  %2568 = vperm.xlu1 %3102, %v2142_v36   ;;  %v1835_v36 = vmax.f32 %v1787_v42, 0.0  ;;  %3195 = vrsqrt.f32 %v1930_v49  ;;  %v5034_v42 = vmul.f32 0.0051020407, %v4940_v57  ;;  %v2073_v49 = vld [vmem:[%s4679_s8 + $0x128] sm:$0xff] }
 0x383   : > { %2357 = vperm.xlu0 %3101, %v2023_v53   ;;  %v2001_v53 = vmul.f32 %v3188_v5, %v1857_v43  ;;  %v1813_v5 = vmax.f32 %v1765_v39, 0.0  ;;  %v1837_v48 = vmax.f32 %v1789_v23, 0.0  ;;  %v1719_v39 = vmul.f32 %v5049_v54, %v5049_v54 }
 0x384   : > { %v1931_v12 = vadd.f32 1e-05, %v1835_v36  ;;  %v1670_v36 = vmul.f32 0.0051020407, %v4973_v62 }
 0x385   : > { %v2097_v60 = vmul.f32 %v2001_v53, %v4902_v35  ;;  %v3192_v35 = vpop.eup %3191  ;;  %v1909_v33 = vadd.f32 1e-05, %v1813_v5  ;;  %v1933_v55 = vadd.f32 1e-05, %v1837_v48  ;;  %v2074_v5 = vld [vmem:[%s4679_s8 + $0x130] sm:$0xff] }
 0x386   : > { %v4983_v1 = vpop.xlane.xlu0 %1582  ;;  %v4985_v45 = vpop.xlane.xlu1 %1586  ;;  %2688 = vperm.xlu1 %3102, %v2166_v58   ;;  %v1740_v58 = vmul.f32 %v5006_v27, %v5006_v27  ;;  %3197 = vrsqrt.f32 %v1931_v12  ;;  %v2002_v22 = vmul.f32 %v3192_v35, %v1858_v46 }
 0x387   : > { %2573 = vperm.xlu0 %3101, %v2143_v24   ;;  %v2072_v24 = vld [vmem:[%s4679_s8 + $0x120] sm:$0xff]  ;;  %v2145_v38 = vsub.f32 %v2049_v11, %v2097_v60  ;;  %3199 = vrsqrt.f32 %v1908_v13 }
 0x388   : > { %v1788_v6 = vsub.f32 %v1692_v29, %v1740_v58  ;;  %v2098_v58 = vmul.f32 %v2002_v22, %v4937_v34  ;;  %3201 = vrsqrt.f32 %v1909_v33  ;;  %v5069_v34 = vmul.f32 0.0051020407, %v4959_v25 }
 0x38a   : > { %v4993_v61 = vpop.xlane.xlu0 %1206  ;;  %v4995_v21 = vpop.xlane.xlu1 %1210  ;;  %2242 = vperm.xlu1 %3102, %v2000_v15   ;;  %v2168_v15 = vsub.f32 %v2072_v24, %v2120_v47  ;;  %v1836_v28 = vmax.f32 %v1788_v6, 0.0  ;;  %v1671_v24 = vmul.f32 0.0051020407, %v4975_v10  ;;  %v1883_v6 = vld [vmem:[%s4650_s30 + $0x138] sm:$0xff]  ;;  %v1694_v10 = vmul.f32 0.0051020407, %v4983_v1 }
 0x38b   : > { %2693 = vperm.xlu0 %3101, %v2167_v14   ;;  %v2121_v14 = vmul.f32 %v2025_v40, %v4919_v17  ;;  %v3194_v57 = vpop.eup %3193  ;;  %v1718_v17 = vmul.f32 %v5034_v42, %v5034_v42  ;;  %v2146_v51 = vsub.f32 %v2050_v32, %v2098_v58  ;;  %v2051_v1 = vld [vmem:[%s4679_s8 + $0x78] sm:$0xff] }
 0x38c   : > { %v2003_v47 = vmul.f32 %v3194_v57, %v1859_v8  ;;  %v1767_v46 = vsub.f32 %v1671_v24, %v1719_v39 }
 0x38d   : > { %v2169_v19 = vsub.f32 %v2073_v49, %v2121_v14  ;;  %v1766_v12 = vsub.f32 %v1670_v36, %v1718_v17  ;;  %v1695_v14 = vmul.f32 0.0051020407, %v4985_v45  ;;  %v1860_v45 = vld [vmem:[%s4650_s30 + $0x80] sm:$0xff] }
 0x38e   : > { %v5009_v3 = vpop.xlane.xlu0 %1302  ;;  %v5011_v31 = vpop.xlane.xlu1 %1306  ;;  %2362 = vperm.xlu1 %3102, %v2024_v20   ;;  %v2099_v35 = vmul.f32 %v2003_v47, %v4948_v2  ;;  %v1815_v57 = vmax.f32 %v1767_v46, 0.0 }
 0x38f   : > { %2247 = vperm.xlu0 %3101, %v2001_v53   ;;  %v3196_v20 = vpop.eup %3195  ;;  %v1882_v53 = vld [vmem:[%s4650_s30 + $0x130] sm:$0xff] }
 0x390   : > { %v2026_v26 = vmul.f32 %v3196_v20, %v1882_v53  ;;  %v3198_v60 = vpop.eup %3197  ;;  %v2147_v20 = vsub.f32 %v2051_v1, %v2099_v35  ;;  %v2075_v53 = vld [vmem:[%s4679_s8 + $0x138] sm:$0xff]  ;;  %v2052_v35 = vld [vmem:[%s4679_s8 + $0x80] sm:$0xff] }
 0x391   : > { %v2027_v13 = vmul.f32 %v3198_v60, %v1883_v6  ;;  %v3200_v49 = vpop.eup %3199 }
 0x392   : > { %v5026_v50 = vpop.xlane.xlu0 %1494  ;;  %v5028_v52 = vpop.xlane.xlu1 %1498  ;;  %2578 = vperm.xlu1 %3102, %v2144_v63   ;;  %v1932_v63 = vadd.f32 1e-05, %v1836_v28  ;;  %v2004_v33 = vmul.f32 %v3200_v49, %v1860_v45  ;;  %v2053_v49 = vld [vmem:[%s4679_s8 + $0x88] sm:$0xff] }
 0x393   : > { %2367 = vperm.xlu0 %3101, %v2025_v40   ;;  %v5057_v40 = vmul.f32 0.0051020407, %v4957_v59  ;;  %v1814_v59 = vmax.f32 %v1766_v12, 0.0  ;;  %v2123_v17 = vmul.f32 %v2027_v13, %v4971_v18  ;;  %v3202_v48 = vpop.eup %3201  ;;  %v1861_v12 = vld [vmem:[%s4650_s30 + $0x88] sm:$0xff]  ;;  %v1884_v18 = vld [vmem:[%s4650_s30 + $0x140] sm:$0xff] }
 0x394   : > { %3203 = vrsqrt.f32 %v1932_v63  ;;  %v5091_v63 = vmul.f32 0.0051020407, %v4993_v61  ;;  %v1672_v32 = vmul.f32 0.0051020407, %v5026_v50  ;;  %v2005_v6 = vmul.f32 %v3202_v48, %v1861_v12 }
 0x395   : > { %3205 = vrsqrt.f32 %v1933_v55  ;;  %v1910_v23 = vadd.f32 1e-05, %v1814_v59  ;;  %v2171_v24 = vsub.f32 %v2075_v53, %v2123_v17  ;;  %v2100_v61 = vmul.f32 %v2004_v33, %v4989_v56 }
 0x396   : > { %v5038_v9 = vpop.xlane.xlu0 %1590  ;;  %v5040_v43 = vpop.xlane.xlu1 %1594  ;;  %2698 = vperm.xlu1 %3102, %v2168_v15   ;;  %v2122_v15 = vmul.f32 %v2026_v26, %v4954_v30  ;;  %v1743_v30 = vmul.f32 %v5069_v34, %v5069_v34  ;;  %v1673_v56 = vmul.f32 0.0051020407, %v5028_v52 }
 0x397   : > { %2583 = vperm.xlu0 %3101, %v2145_v38   ;;  %v1742_v38 = vmul.f32 %v5057_v40, %v5057_v40  ;;  %3207 = vrsqrt.f32 %v1910_v23 }
 0x398   : > { %v2170_v36 = vsub.f32 %v2074_v5, %v2122_v15  ;;  %v5105_v15 = vmul.f32 0.0051020407, %v5009_v3 }
 0x399   : > { %v1790_v2 = vsub.f32 %v1694_v10, %v1742_v38  ;;  %v1720_v10 = vmul.f32 %v5091_v63, %v5091_v63  ;;  %v1885_v38 = vld [vmem:[%s4650_s30 + $0x148] sm:$0xff] }
 0x39a   : > { %v5051_v29 = vpop.xlane.xlu0 %1214  ;;  %2252 = vperm.xlu1 %3102, %v2002_v22   ;;  %v5053_v62 = vpop.xlane.xlu1 %1218  ;;  %v1791_v22 = vsub.f32 %v1695_v14, %v1743_v30  ;;  %v2101_v30 = vmul.f32 %v2005_v6, %v5002_v7  ;;  %v1744_v52 = vmul.f32 %v5105_v15, %v5105_v15  ;;  %v1862_v7 = vld [vmem:[%s4650_s30 + $0x90] sm:$0xff] }
 0x39b   : > { %2703 = vperm.xlu0 %3101, %v2169_v19   ;;  %v1838_v8 = vmax.f32 %v1790_v2, 0.0  ;;  %v1768_v14 = vsub.f32 %v1672_v32, %v1720_v10 }
 0x39c   : > { %v1839_v58 = vmax.f32 %v1791_v22, 0.0  ;;  %v2149_v12 = vsub.f32 %v2053_v49, %v2101_v30  ;;  %v5145_v30 = vmul.f32 0.0051020407, %v5051_v29  ;;  %v5650_v49 = vld [vmem:[#allocation5_spill] sm:$0xff] }
 0x39d   : > { %v1934_v39 = vadd.f32 1e-05, %v1838_v8  ;;  %v1816_v17 = vmax.f32 %v1768_v14, 0.0  ;;  %v1697_v8 = vmul.f32 0.0051020407, %v5040_v43  ;;  %v5646_v43 = vld [vmem:[#allocation6_spill] sm:$0xff] }
 0x39e   : > { %v5063_v16 = vpop.xlane.xlu0 %1310  ;;  %2372 = vperm.xlu1 %3102, %v2026_v26   ;;  %v5065_v11 = vpop.xlane.xlu1 %1314  ;;  %v1935_v46 = vadd.f32 1e-05, %v1839_v58 }
 0x39f   : > { %2257 = vperm.xlu0 %3101, %v2003_v47   ;;  %v3204_v26 = vpop.eup %3203  ;;  %v1911_v47 = vadd.f32 1e-05, %v1815_v57  ;;  %v5644_v57 = vld [vmem:[#allocation2_spill] sm:$0xff] }
 0x3a0   : > { %v3206_v59 = vpop.eup %3205  ;;  %v2028_v50 = vmul.f32 %v3204_v26, %v1884_v18  ;;  %v5645_v18 = vld [vmem:[#allocation3_spill] sm:$0xff] }
 0x3a1   : > { %3209 = vrsqrt.f32 %v1911_v47  ;;  %v2029_v3 = vmul.f32 %v3206_v59, %v1885_v38  ;;  %v5648_v59 = vld [vmem:[#allocation8_spill] sm:$0xff] }
 0x3a2   : > { %2588 = vperm.xlu1 %3102, %v2146_v51   ;;  %v5078_v25 = vpop.xlane.xlu1 %1506  ;;  %v5083_v28 = vpop.xlane.xlu0 %1502  ;;  %v5102_v51 = vmul.f32 0.0051020407, %v4995_v21  ;;  %3211 = vrsqrt.f32 %v1934_v39  ;;  %v2148_v21 = vsub.f32 %v2052_v35, %v2100_v61  ;;  %v2124_v2 = vmul.f32 %v2028_v50, %v5006_v27 }
 0x3a3   : > { %2377 = vperm.xlu0 %3101, %v2027_v13   ;;  %v1696_v13 = vmul.f32 0.0051020407, %v5038_v9  ;;  %v5118_v9 = vmul.f32 0.0051020407, %v5011_v31  ;;  %3213 = vrsqrt.f32 %v1935_v46  ;;  %v1674_v29 = vmul.f32 0.0051020407, %v5083_v28 }
 0x3a4   : > { %v1721_v23 = vmul.f32 %v5102_v51, %v5102_v51  ;;  %v5165_v28 = vmul.f32 0.0051020407, %v5063_v16 }
 0x3a5   : > { %v1792_v31 = vsub.f32 %v1696_v13, %v1744_v52  ;;  %v1745_v26 = vmul.f32 %v5118_v9, %v5118_v9  ;;  %v5649_v52 = vld [vmem:[#allocation4_spill] sm:$0xff] }
 0x3a6   : > { %2708 = vperm.xlu1 %3102, %v2170_v36   ;;  %v5087_v19 = vpop.xlane.xlu1 %1602  ;;  %v5096_v60 = vpop.xlane.xlu0 %1598  ;;  %v1769_v53 = vsub.f32 %v1673_v56, %v1721_v23 }
 0x3a7   : > { %2593 = vperm.xlu0 %3101, %v2147_v20   ;;  %v3208_v36 = vpop.eup %3207  ;;  %v2076_v20 = vld [vmem:[%s4679_s8 + $0x140] sm:$0xff]  ;;  %v1840_v38 = vmax.f32 %v1792_v31, 0.0  ;;  %v1793_v46 = vsub.f32 %v1697_v8, %v1745_v26  ;;  %v2054_v31 = vld [vmem:[%s4679_s8 + $0x90] sm:$0xff] }
 0x3a8   : > { %v2172_v47 = vsub.f32 %v2076_v20, %v2124_v2  ;;  %v2006_v58 = vmul.f32 %v3208_v36, %v1862_v7  ;;  %v1817_v35 = vmax.f32 %v1769_v53, 0.0 }
 0x3aa   : > { %2262 = vperm.xlu1 %3102, %v2004_v33   ;;  %v2303_v55 = vpop.permute.xlu1 %2302  ;;  %v1913_v20 = vadd.f32 1e-05, %v1817_v35  ;;  %v5652_v35 = vld [vmem:[#allocation11_spill] sm:$0xff] }
 0x3ab   : > { %2713 = vperm.xlu0 %3101, %v2171_v24   ;;  %v2125_v24 = vmul.f32 %v2029_v3, %v5018_v4  ;;  %v2468_v32 = vmul.f32 %v2303_v55, %v5645_v18  ;;  %v2469_v39 = vmul.f32 %v2303_v55, %v5646_v43  ;;  %v2077_v55 = vld [vmem:[%s4679_s8 + $0x148] sm:$0xff]  ;;  %v3210_v56 = vpop.eup %3209  ;;  %v1675_v18 = vmul.f32 0.0051020407, %v5078_v25 }
 0x3ac   : > { %v3212_v23 = vpop.eup %3211  ;;  %v5179_v25 = vmul.f32 0.0051020407, %v5065_v11 }
 0x3ad   : > { %v3214_v8 = vpop.eup %3213 }
 0x3ae   : > { %v2183_v5 = vpop.permute.xlu0 %2182  ;;  %2382 = vperm.xlu1 %3102, %v2028_v50   ;;  %v2188_v1 = vpop.permute.xlu1 %2187  ;;  %v1912_v50 = vadd.f32 1e-05, %v1816_v17 }
 0x3af   : > { %2267 = vperm.xlu0 %3101, %v2005_v6   ;;  %v2420_v45 = vmul.f32 %v2183_v5, %v3774_v44  ;;  %v2421_v22 = vmul.f32 %v2183_v5, %v5644_v57  ;;  %v5647_v6 = vld [vmem:[#allocation7_spill] sm:$0xff]  ;;  %v2423_v10 = vmul.f32 %v2188_v1, %v5648_v59  ;;  %v1886_v57 = vld [vmem:[%s4650_s30 + $0x150] sm:$0xff]  ;;  %v1746_v59 = vmul.f32 %v5165_v28, %v5165_v28 }
 0x3b0   : > { %v2422_v61 = vmul.f32 %v2188_v1, %v5647_v6  ;;  %3215 = vrsqrt.f32 %v1912_v50  ;;  %v2030_v26 = vmul.f32 %v3212_v23, %v1886_v57 }
 0x3b1   : > { %3217 = vrsqrt.f32 %v1913_v20 }
 0x3b2   : > { %v2308_v27 = vpop.permute.xlu0 %2307  ;;  %2598 = vperm.xlu1 %3102, %v2148_v21   ;;  %v2519_v33 = vpop.permute.xlu1 %2518 }
 0x3b3   : > { %v2756_v44 = vadd.f32 %v2519_v33, %v2420_v45  ;;  %v2757_v48 = vadd.f32 %v2519_v33, %v2421_v22  ;;  %2387 = vperm.xlu0 %3101, %v2029_v3   ;;  %v1863_v3 = vld [vmem:[%s4650_s30 + $0x98] sm:$0xff]  ;;  %v2470_v2 = vmul.f32 %v2308_v27, %v5649_v52  ;;  %v2471_v36 = vmul.f32 %v2308_v27, %v5650_v49  ;;  %v5654_v49 = vld [vmem:[#allocation15_spill] sm:$0xff] }
 0x3b4   : > { %v2173_v45 = vsub.f32 %v2077_v55, %v2125_v24  ;;  %v2102_v22 = vmul.f32 %v2006_v58, %v5034_v42  ;;  %v2007_v53 = vmul.f32 %v3210_v56, %v1863_v3  ;;  %v1936_v27 = vadd.f32 1e-05, %v1840_v38 }
 0x3b5   : > { %2852 = vst [vmem:[%s5129_s12] sm:$0xff] %v2756_v44  ;;  %2853 = vst.msk [vmem:[%s5129_s12 + $0x8] sm:$0xff] %vm306_vm0, %v2757_v48  ;;  %v1841_v33 = vmax.f32 %v1793_v46, 0.0  ;;  %v1722_v42 = vmul.f32 %v5145_v30, %v5145_v30  ;;  %v2078_v46 = vld [vmem:[%s4679_s8 + $0x150] sm:$0xff]  ;;  %v1699_v56 = vmul.f32 0.0051020407, %v5087_v19  ;;  %v5653_v19 = vld [vmem:[#allocation13_spill] sm:$0xff] }
 0x3b6   : > { %v2524_v14 = vpop.permute.xlu0 %2523  ;;  %2718 = vperm.xlu1 %3102, %v2172_v47   ;;  %v2639_v4 = vpop.permute.xlu1 %2638  ;;  %v1887_v47 = vld [vmem:[%s4650_s30 + $0x158] sm:$0xff]  ;;  %3219 = vrsqrt.f32 %v1936_v27  ;;  %v2103_v6 = vmul.f32 %v2007_v53, %v5049_v54 }
 0x3b7   : > { %v2758_v13 = vadd.f32 %v2524_v14, %v2422_v61  ;;  %v2759_v5 = vadd.f32 %v2524_v14, %v2423_v10  ;;  %v2804_v1 = vadd.f32 %v2639_v4, %v2468_v32  ;;  %v2805_v21 = vadd.f32 %v2639_v4, %v2469_v39  ;;  %2603 = vperm.xlu0 %3101, %v2149_v12   ;;  %v5651_v10 = vld [vmem:[#allocation9_spill] sm:$0xff] }
 0x3b8   : > { %v5162_v12 = vmul.f32 0.0051020407, %v5053_v62  ;;  %v1770_v24 = vsub.f32 %v1674_v29, %v1722_v42  ;;  %v1698_v32 = vmul.f32 0.0051020407, %v5096_v60  ;;  %v1937_v16 = vadd.f32 1e-05, %v1841_v33 }
 0x3b9   : > { %2854 = vst [vmem:[%s5129_s12 + $0x10] sm:$0xff] %v2758_v13  ;;  %2855 = vst.msk [vmem:[%s5129_s12 + $0x18] sm:$0xff] %vm306_vm0, %v2759_v5  ;;  %v2031_v39 = vmul.f32 %v3214_v8, %v1887_v47  ;;  %v2126_v60 = vmul.f32 %v2030_v26, %v5057_v40  ;;  %v2055_v14 = vld [vmem:[%s4679_s8 + $0x98] sm:$0xff]  ;;  %v1864_v29 = vld [vmem:[%s4650_s30 + $0xa0] sm:$0xff] }
 0x3ba   : > { %2900 = vst [vmem:[%s5129_s12 + $0x180] sm:$0xff] %v2804_v1  ;;  %2901 = vst.msk [vmem:[%s5129_s12 + $0x188] sm:$0xff] %vm306_vm0, %v2805_v21  ;;  %v2644_v7 = vpop.permute.xlu0 %2643  ;;  %2272 = vperm.xlu1 %3102, %v2006_v58   ;;  %v2193_v17 = vpop.permute.xlu1 %2192  ;;  %v2150_v58 = vsub.f32 %v2054_v31, %v2102_v22  ;;  %v1723_v61 = vmul.f32 %v5162_v12, %v5162_v12  ;;  %v1818_v4 = vmax.f32 %v1770_v24, 0.0  ;;  %3221 = vrsqrt.f32 %v1937_v16  ;;  %v5656_v22 = vld [vmem:[#allocation12_spill] sm:$0xff]  ;;  %v2079_v27 = vld [vmem:[%s4679_s8 + $0x158] sm:$0xff] }
 0x3bb   : > { %v2806_v44 = vadd.f32 %v2644_v7, %v2470_v2  ;;  %v2807_v48 = vadd.f32 %v2644_v7, %v2471_v36  ;;  %2723 = vperm.xlu0 %3101, %v2173_v45   ;;  %v2424_v50 = vmul.f32 %v2193_v17, %v5651_v10  ;;  %v2425_v38 = vmul.f32 %v2193_v17, %v5652_v35  ;;  %v3216_v1 = vpop.eup %3215  ;;  %v5655_v45 = vld [vmem:[#allocation10_spill] sm:$0xff] }
 0x3bc   : > { %v1771_v55 = vsub.f32 %v1675_v18, %v1723_v61  ;;  %v1794_v54 = vsub.f32 %v1698_v32, %v1746_v59  ;;  %v1747_v21 = vmul.f32 %v5179_v25, %v5179_v25  ;;  %v2174_v3 = vsub.f32 %v2078_v46, %v2126_v60  ;;  %v5657_v24 = vld [vmem:[#allocation14_spill] sm:$0xff]  ;;  %v5658_v32 = vld [vmem:[#allocation16_spill] sm:$0xff] }
 0x3bd   : > { %2902 = vst [vmem:[%s5129_s12 + $0x190] sm:$0xff] %v2806_v44  ;;  %2903 = vst.msk [vmem:[%s5129_s12 + $0x198] sm:$0xff] %vm306_vm0, %v2807_v48  ;;  %v2151_v23 = vsub.f32 %v2055_v14, %v2103_v6  ;;  %v2127_v52 = vmul.f32 %v2031_v39, %v5069_v34  ;;  %v1914_v7 = vadd.f32 1e-05, %v1818_v4  ;;  %v2008_v47 = vmul.f32 %v3216_v1, %v1864_v29  ;;  %v1888_v16 = vld [vmem:[%s4650_s30 + $0x160] sm:$0xff]  ;;  %v5661_v29 = vld [vmem:[#allocation21_spill] sm:$0xff] }
 0x3be   : > { %v2198_v43 = vpop.permute.xlu0 %2197  ;;  %2392 = vperm.xlu1 %3102, %v2030_v26   ;;  %v2313_v62 = vpop.permute.xlu1 %2312  ;;  %v1819_v17 = vmax.f32 %v1771_v55, 0.0  ;;  %v1795_v31 = vsub.f32 %v1699_v56, %v1747_v21  ;;  %v2056_v55 = vld [vmem:[%s4679_s8 + $0xa0] sm:$0xff]  ;;  %v5659_v21 = vld [vmem:[#allocation17_spill] sm:$0xff] }
 0x3bf   : > { %2277 = vperm.xlu0 %3101, %v2007_v53   ;;  %v2426_v2 = vmul.f32 %v2198_v43, %v5653_v19  ;;  %v2427_v36 = vmul.f32 %v2198_v43, %v5654_v49  ;;  %v2472_v57 = vmul.f32 %v2313_v62, %v5655_v45  ;;  %v2473_v20 = vmul.f32 %v2313_v62, %v5656_v22  ;;  %v3218_v26 = vpop.eup %3217  ;;  %v2080_v19 = vld [vmem:[%s4679_s8 + $0x160] sm:$0xff] }
 0x3c0   : > { %v1842_v53 = vmax.f32 %v1794_v54, 0.0  ;;  %v2175_v62 = vsub.f32 %v2079_v27, %v2127_v52  ;;  %3223 = vrsqrt.f32 %v1914_v7  ;;  %v1915_v6 = vadd.f32 1e-05, %v1819_v17  ;;  %v1889_v54 = vld [vmem:[%s4650_s30 + $0x168] sm:$0xff] }
 0x3c1   : > { %v1843_v10 = vmax.f32 %v1795_v31, 0.0  ;;  %v2104_v14 = vmul.f32 %v2008_v47, %v5091_v63  ;;  %v5662_v17 = vld [vmem:[#allocation23_spill] sm:$0xff]  ;;  %v5663_v31 = vld [vmem:[#allocation18_spill] sm:$0xff] }
 0x3c2   : > { %v2318_v13 = vpop.permute.xlu0 %2317  ;;  %2608 = vperm.xlu1 %3102, %v2150_v58   ;;  %v2529_v5 = vpop.permute.xlu1 %2528  ;;  %v1938_v60 = vadd.f32 1e-05, %v1842_v53  ;;  %3225 = vrsqrt.f32 %v1915_v6 }
 0x3c3   : > { %v2760_v11 = vadd.f32 %v2529_v5, %v2424_v50  ;;  %v2761_v40 = vadd.f32 %v2529_v5, %v2425_v38  ;;  %2397 = vperm.xlu0 %3101, %v2031_v39   ;;  %v3220_v58 = vpop.eup %3219  ;;  %v2474_v18 = vmul.f32 %v2318_v13, %v5657_v24  ;;  %v2475_v43 = vmul.f32 %v2318_v13, %v5658_v32  ;;  %v1865_v39 = vld [vmem:[%s4650_s30 + $0xa8] sm:$0xff] }
 0x3c4   : > { %v2032_v38 = vmul.f32 %v3220_v58, %v1888_v16  ;;  %v2009_v46 = vmul.f32 %v3218_v26, %v1865_v39  ;;  %v3222_v4 = vpop.eup %3221  ;;  %3227 = vrsqrt.f32 %v1938_v60  ;;  %v1939_v5 = vadd.f32 1e-05, %v1843_v10  ;;  %v5666_v16 = vld [vmem:[#allocation24_spill] sm:$0xff] }
 0x3c5   : > { %2856 = vst [vmem:[%s5129_s12 + $0x20] sm:$0xff] %v2760_v11  ;;  %2857 = vst.msk [vmem:[%s5129_s12 + $0x28] sm:$0xff] %vm306_vm0, %v2761_v40  ;;  %v2152_v11 = vsub.f32 %v2056_v55, %v2104_v14  ;;  %v2033_v40 = vmul.f32 %v3222_v4, %v1889_v54  ;;  %v2058_v55 = vld [vmem:[%s4679_s8 + $0xb0] sm:$0xff]  ;;  %v1891_v54 = vld [vmem:[%s4650_s30 + $0x178] sm:$0xff] }
 0x3c6   : > { %v2534_v8 = vpop.permute.xlu0 %2533  ;;  %2728 = vperm.xlu1 %3102, %v2174_v3   ;;  %v2649_v34 = vpop.permute.xlu1 %2648  ;;  %v2128_v1 = vmul.f32 %v2032_v38, %v5105_v15  ;;  %v2105_v63 = vmul.f32 %v2009_v46, %v5102_v51  ;;  %3229 = vrsqrt.f32 %v1939_v5 }
 0x3c7   : > { %v2762_v33 = vadd.f32 %v2534_v8, %v2426_v2  ;;  %v2763_v44 = vadd.f32 %v2534_v8, %v2427_v36  ;;  %v2808_v48 = vadd.f32 %v2649_v34, %v2472_v57  ;;  %v2809_v42 = vadd.f32 %v2649_v34, %v2473_v20  ;;  %2613 = vperm.xlu0 %3101, %v2151_v23   ;;  %v5660_v23 = vld [vmem:[#allocation19_spill] sm:$0xff]  ;;  %v5664_v34 = vld [vmem:[#allocation20_spill] sm:$0xff] }
 0x3c8   : > { %v2057_v2 = vld [vmem:[%s4679_s8 + $0xa8] sm:$0xff]  ;;  %v2176_v22 = vsub.f32 %v2080_v19, %v2128_v1  ;;  %v2129_v20 = vmul.f32 %v2033_v40, %v5118_v9 }
 0x3c9   : > { %2858 = vst [vmem:[%s5129_s12 + $0x30] sm:$0xff] %v2762_v33  ;;  %2859 = vst.msk [vmem:[%s5129_s12 + $0x38] sm:$0xff] %vm306_vm0, %v2763_v44  ;;  %v2153_v51 = vsub.f32 %v2057_v2, %v2105_v63  ;;  %v1866_v33 = vld [vmem:[%s4650_s30 + $0xb0] sm:$0xff]  ;;  %v2081_v9 = vld [vmem:[%s4679_s8 + $0x168] sm:$0xff] }
 0x3ca   : > { %2904 = vst [vmem:[%s5129_s12 + $0x1a0] sm:$0xff] %v2808_v48  ;;  %2905 = vst.msk [vmem:[%s5129_s12 + $0x1a8] sm:$0xff] %vm306_vm0, %v2809_v42  ;;  %v2654_v61 = vpop.permute.xlu0 %2653  ;;  %2282 = vperm.xlu1 %3102, %v2008_v47   ;;  %v2203_v59 = vpop.permute.xlu1 %2202  ;;  %v2177_v6 = vsub.f32 %v2081_v9, %v2129_v20  ;;  %v5667_v63 = vld [vmem:[#allocation25_spill] sm:$0xff]  ;;  %v5671_v20 = vld [vmem:[#allocation26_spill] sm:$0xff] }
 0x3cb   : > { %v2810_v50 = vadd.f32 %v2654_v61, %v2474_v18  ;;  %v2811_v35 = vadd.f32 %v2654_v61, %v2475_v43  ;;  %2733 = vperm.xlu0 %3101, %v2175_v62   ;;  %v2428_v3 = vmul.f32 %v2203_v59, %v5659_v21  ;;  %v2429_v52 = vmul.f32 %v2203_v59, %v5660_v23  ;;  %v3224_v15 = vpop.eup %3223  ;;  %v5665_v43 = vld [vmem:[#allocation22_spill] sm:$0xff]  ;;  %v1890_v61 = vld [vmem:[%s4650_s30 + $0x170] sm:$0xff]  ;;  %v1867_v59 = vld [vmem:[%s4650_s30 + $0xb8] sm:$0xff] }
 0x3cc   : > { %v3226_v24 = vpop.eup %3225  ;;  %v2010_v18 = vmul.f32 %v3224_v15, %v1866_v33  ;;  %v5668_v21 = vld [vmem:[#allocation27_spill] sm:$0xff]  ;;  %v2082_v23 = vld [vmem:[%s4679_s8 + $0x170] sm:$0xff] }
 0x3cd   : > { %2906 = vst [vmem:[%s5129_s12 + $0x1b0] sm:$0xff] %v2810_v50  ;;  %2907 = vst.msk [vmem:[%s5129_s12 + $0x1b8] sm:$0xff] %vm306_vm0, %v2811_v35  ;;  %v5674_v9 = vld [vmem:[#allocation32_spill] sm:$0xff] }
 0x3ce   : > { %v2208_v56 = vpop.permute.xlu0 %2207  ;;  %2402 = vperm.xlu1 %3102, %v2032_v38   ;;  %v2323_v13 = vpop.permute.xlu1 %2322  ;;  %v2106_v14 = vmul.f32 %v2010_v18, %v5145_v30 }
 0x3cf   : > { %2287 = vperm.xlu0 %3101, %v2009_v46   ;;  %v2430_v7 = vmul.f32 %v2208_v56, %v5661_v29  ;;  %v2431_v53 = vmul.f32 %v2208_v56, %v5662_v17  ;;  %v2476_v8 = vmul.f32 %v2323_v13, %v5663_v31  ;;  %v2477_v27 = vmul.f32 %v2323_v13, %v5664_v34  ;;  %v3228_v32 = vpop.eup %3227 }
 0x3d0   : > { %v2034_v38 = vmul.f32 %v3228_v32, %v1890_v61  ;;  %v2011_v46 = vmul.f32 %v3226_v24, %v1867_v59  ;;  %v3230_v4 = vpop.eup %3229  ;;  %v2154_v5 = vsub.f32 %v2058_v55, %v2106_v14  ;;  %v5679_v14 = vld [vmem:[#allocation34_spill] sm:$0xff]  ;;  %v5680_v55 = vld [vmem:[#allocation36_spill] sm:$0xff] }
 0x3d2   : > { %v2328_v49 = vpop.permute.xlu0 %2327  ;;  %2618 = vperm.xlu1 %3102, %v2152_v11   ;;  %v2539_v36 = vpop.permute.xlu1 %2538  ;;  %v2035_v11 = vmul.f32 %v3230_v4, %v1891_v54  ;;  %v2107_v1 = vmul.f32 %v2011_v46, %v5162_v12  ;;  %v5669_v12 = vld [vmem:[#allocation29_spill] sm:$0xff] }
 0x3d3   : > { %v2764_v45 = vadd.f32 %v2539_v36, %v2428_v3  ;;  %v2765_v57 = vadd.f32 %v2539_v36, %v2429_v52  ;;  %2407 = vperm.xlu0 %3101, %v2033_v40   ;;  %v2478_v62 = vmul.f32 %v2328_v49, %v5665_v43  ;;  %v2479_v39 = vmul.f32 %v2328_v49, %v5666_v16  ;;  %v2059_v52 = vld [vmem:[%s4679_s8 + $0xb8] sm:$0xff] }
 0x3d4   : > { %v2130_v40 = vmul.f32 %v2034_v38, %v5165_v28  ;;  %v2131_v28 = vmul.f32 %v2035_v11, %v5179_v25 }
 0x3d5   : > { %2860 = vst [vmem:[%s5129_s12 + $0x40] sm:$0xff] %v2764_v45  ;;  %2861 = vst.msk [vmem:[%s5129_s12 + $0x48] sm:$0xff] %vm306_vm0, %v2765_v57  ;;  %v2155_v57 = vsub.f32 %v2059_v52, %v2107_v1 }
 0x3d6   : > { %v2544_v44 = vpop.permute.xlu0 %2543  ;;  %2738 = vperm.xlu1 %3102, %v2176_v22   ;;  %v2659_v48 = vpop.permute.xlu1 %2658  ;;  %v2178_v45 = vsub.f32 %v2082_v23, %v2130_v40  ;;  %v5670_v22 = vld [vmem:[#allocation31_spill] sm:$0xff] }
 0x3d7   : > { %v2766_v42 = vadd.f32 %v2544_v44, %v2430_v7  ;;  %v2767_v26 = vadd.f32 %v2544_v44, %v2431_v53  ;;  %v2812_v47 = vadd.f32 %v2659_v48, %v2476_v8  ;;  %v2813_v58 = vadd.f32 %v2659_v48, %v2477_v27  ;;  %2623 = vperm.xlu0 %3101, %v2153_v51   ;;  %v5672_v7 = vld [vmem:[#allocation28_spill] sm:$0xff]  ;;  %v2083_v8 = vld [vmem:[%s4679_s8 + $0x178] sm:$0xff]  ;;  %v5673_v44 = vld [vmem:[#allocation30_spill] sm:$0xff] }
 0x3d9   : > { %2862 = vst [vmem:[%s5129_s12 + $0x50] sm:$0xff] %v2766_v42  ;;  %2863 = vst.msk [vmem:[%s5129_s12 + $0x58] sm:$0xff] %vm306_vm0, %v2767_v26  ;;  %v2179_v26 = vsub.f32 %v2083_v8, %v2131_v28  ;;  %v5684_v28 = vld [vmem:[#allocation43_spill] sm:$0xff] }
 0x3da   : > { %2908 = vst [vmem:[%s5129_s12 + $0x1c0] sm:$0xff] %v2812_v47  ;;  %2909 = vst.msk [vmem:[%s5129_s12 + $0x1c8] sm:$0xff] %vm306_vm0, %v2813_v58  ;;  %v2664_v60 = vpop.permute.xlu0 %2663  ;;  %2292 = vperm.xlu1 %3102, %v2010_v18   ;;  %v2213_v10 = vpop.permute.xlu1 %2212 }
 0x3db   : > { %v2814_v50 = vadd.f32 %v2664_v60, %v2478_v62  ;;  %v2815_v35 = vadd.f32 %v2664_v60, %v2479_v39  ;;  %2743 = vperm.xlu0 %3101, %v2177_v6   ;;  %v2432_v30 = vmul.f32 %v2213_v10, %v5667_v63  ;;  %v2433_v3 = vmul.f32 %v2213_v10, %v5668_v21  ;;  %v5675_v62 = vld [vmem:[#allocation33_spill] sm:$0xff]  ;;  %v5676_v39 = vld [vmem:[#allocation35_spill] sm:$0xff]  ;;  %v5681_v63 = vld [vmem:[#allocation38_spill] sm:$0xff] }
 0x3dc   : > { %v5682_v21 = vld [vmem:[#allocation40_spill] sm:$0xff] }
 0x3dd   : > { %2910 = vst [vmem:[%s5129_s12 + $0x1d0] sm:$0xff] %v2814_v50  ;;  %2911 = vst.msk [vmem:[%s5129_s12 + $0x1d8] sm:$0xff] %vm306_vm0, %v2815_v35  ;;  %v5677_v50 = vld [vmem:[#allocation37_spill] sm:$0xff] }
 0x3de   : > { %v2218_v56 = vpop.permute.xlu0 %2217  ;;  %2412 = vperm.xlu1 %3102, %v2034_v38   ;;  %v2333_v13 = vpop.permute.xlu1 %2332  ;;  %v5678_v38 = vld [vmem:[#allocation39_spill] sm:$0xff] }
 0x3df   : > { %2297 = vperm.xlu0 %3101, %v2011_v46   ;;  %v2434_v15 = vmul.f32 %v2218_v56, %v5669_v12  ;;  %v2435_v51 = vmul.f32 %v2218_v56, %v5670_v22  ;;  %v2480_v29 = vmul.f32 %v2333_v13, %v5671_v20  ;;  %v2481_v17 = vmul.f32 %v2333_v13, %v5672_v7 }
 0x3e2   : > { %v2338_v19 = vpop.permute.xlu0 %2337  ;;  %2628 = vperm.xlu1 %3102, %v2154_v5   ;;  %v2549_v2 = vpop.permute.xlu1 %2548 }
 0x3e3   : > { %v2768_v49 = vadd.f32 %v2549_v2, %v2432_v30  ;;  %v2769_v36 = vadd.f32 %v2549_v2, %v2433_v3  ;;  %2417 = vperm.xlu0 %3101, %v2035_v11   ;;  %v2482_v48 = vmul.f32 %v2338_v19, %v5673_v44  ;;  %v2483_v42 = vmul.f32 %v2338_v19, %v5674_v9 }
 0x3e5   : > { %2864 = vst [vmem:[%s5129_s12 + $0x60] sm:$0xff] %v2768_v49  ;;  %2865 = vst.msk [vmem:[%s5129_s12 + $0x68] sm:$0xff] %vm306_vm0, %v2769_v36 }
 0x3e6   : > { %v2554_v53 = vpop.permute.xlu0 %2553  ;;  %2748 = vperm.xlu1 %3102, %v2178_v45   ;;  %v2669_v31 = vpop.permute.xlu1 %2668  ;;  %v5683_v45 = vld [vmem:[#allocation41_spill] sm:$0xff] }
 0x3e7   : > { %v2770_v25 = vadd.f32 %v2554_v53, %v2434_v15  ;;  %v2771_v34 = vadd.f32 %v2554_v53, %v2435_v51  ;;  %v2816_v27 = vadd.f32 %v2669_v31, %v2480_v29  ;;  %v2817_v33 = vadd.f32 %v2669_v31, %v2481_v17  ;;  %2633 = vperm.xlu0 %3101, %v2155_v57   ;;  %v5685_v29 = vld [vmem:[#allocation45_spill] sm:$0xff]  ;;  %v5686_v17 = vld [vmem:[#allocation47_spill] sm:$0xff]  ;;  %v5687_v31 = vld [vmem:[#allocation42_spill] sm:$0xff] }
 0x3e9   : > { %2866 = vst [vmem:[%s5129_s12 + $0x70] sm:$0xff] %v2770_v25  ;;  %2867 = vst.msk [vmem:[%s5129_s12 + $0x78] sm:$0xff] %vm306_vm0, %v2771_v34  ;;  %v5688_v25 = vld [vmem:[#allocation44_spill] sm:$0xff] }
 0x3ea   : > { %2912 = vst [vmem:[%s5129_s12 + $0x1e0] sm:$0xff] %v2816_v27  ;;  %2913 = vst.msk [vmem:[%s5129_s12 + $0x1e8] sm:$0xff] %vm306_vm0, %v2817_v33  ;;  %v2674_v47 = vpop.permute.xlu0 %2673  ;;  %v2223_v58 = vpop.permute.xlu1 %2222 }
 0x3eb   : > { %v2818_v24 = vadd.f32 %v2674_v47, %v2482_v48  ;;  %v2819_v18 = vadd.f32 %v2674_v47, %v2483_v42  ;;  %2753 = vperm.xlu0 %3101, %v2179_v26   ;;  %v2436_v16 = vmul.f32 %v2223_v58, %v5675_v62  ;;  %v2437_v6 = vmul.f32 %v2223_v58, %v5676_v39  ;;  %v5689_v26 = vld [vmem:[#allocation46_spill] sm:$0xff]  ;;  %v5690_v58 = vld [vmem:[#allocation48_spill] sm:$0xff] }
 0x3ed   : > { %2914 = vst [vmem:[%s5129_s12 + $0x1f0] sm:$0xff] %v2818_v24  ;;  %2915 = vst.msk [vmem:[%s5129_s12 + $0x1f8] sm:$0xff] %vm306_vm0, %v2819_v18 }
 0x3ee   : > { %v2228_v32 = vpop.permute.xlu0 %2227  ;;  %v2343_v43 = vpop.permute.xlu1 %2342 }
 0x3ef   : > { %v2438_v35 = vmul.f32 %v2228_v32, %v5677_v50  ;;  %v2439_v46 = vmul.f32 %v2228_v32, %v5678_v38  ;;  %v2484_v4 = vmul.f32 %v2343_v43, %v5679_v14  ;;  %v2485_v54 = vmul.f32 %v2343_v43, %v5680_v55 }
 0x3f2   : > { %v2348_v61 = vpop.permute.xlu0 %2347  ;;  %v2559_v59 = vpop.permute.xlu1 %2558 }
 0x3f3   : > { %v2772_v60 = vadd.f32 %v2559_v59, %v2436_v16  ;;  %v2773_v10 = vadd.f32 %v2559_v59, %v2437_v6  ;;  %v2486_v30 = vmul.f32 %v2348_v61, %v5681_v63  ;;  %v2487_v3 = vmul.f32 %v2348_v61, %v5682_v21  ;;  %v5691_v6 = vld [vmem:[#allocation49_spill] sm:$0xff]  ;;  %v5692_v59 = vld [vmem:[#allocation51_spill] sm:$0xff] }
 0x3f5   : > { %2868 = vst [vmem:[%s5129_s12 + $0x80] sm:$0xff] %v2772_v60  ;;  %2869 = vst.msk [vmem:[%s5129_s12 + $0x88] sm:$0xff] %vm306_vm0, %v2773_v10 }
 0x3f6   : > { %v2564_v56 = vpop.permute.xlu0 %2563  ;;  %v2679_v13 = vpop.permute.xlu1 %2678 }
 0x3f7   : > { %v2774_v5 = vadd.f32 %v2564_v56, %v2438_v35  ;;  %v2775_v11 = vadd.f32 %v2564_v56, %v2439_v46  ;;  %v2820_v40 = vadd.f32 %v2679_v13, %v2484_v4  ;;  %v2821_v1 = vadd.f32 %v2679_v13, %v2485_v54  ;;  %v5693_v46 = vld [vmem:[#allocation53_spill] sm:$0xff]  ;;  %v5694_v4 = vld [vmem:[#allocation55_spill] sm:$0xff]  ;;  %v5695_v54 = vld [vmem:[#allocation50_spill] sm:$0xff] }
 0x3f8   : > { %v5696_v13 = vld [vmem:[#allocation52_spill] sm:$0xff] }
 0x3f9   : > { %2870 = vst [vmem:[%s5129_s12 + $0x90] sm:$0xff] %v2774_v5  ;;  %2871 = vst.msk [vmem:[%s5129_s12 + $0x98] sm:$0xff] %vm306_vm0, %v2775_v11 }
 0x3fa   : > { %2916 = vst [vmem:[%s5129_s12 + $0x200] sm:$0xff] %v2820_v40  ;;  %2917 = vst.msk [vmem:[%s5129_s12 + $0x208] sm:$0xff] %vm306_vm0, %v2821_v1  ;;  %v2684_v23 = vpop.permute.xlu0 %2683  ;;  %v2233_v52 = vpop.permute.xlu1 %2232 }
 0x3fb   : > { %v2822_v19 = vadd.f32 %v2684_v23, %v2486_v30  ;;  %v2823_v2 = vadd.f32 %v2684_v23, %v2487_v3  ;;  %v2440_v57 = vmul.f32 %v2233_v52, %v5683_v45  ;;  %v2441_v12 = vmul.f32 %v2233_v52, %v5684_v28  ;;  %v5697_v3 = vld [vmem:[#allocation54_spill] sm:$0xff]  ;;  %v5698_v52 = vld [vmem:[#allocation56_spill] sm:$0xff] }
 0x3fd   : > { %2918 = vst [vmem:[%s5129_s12 + $0x210] sm:$0xff] %v2822_v19  ;;  %2919 = vst.msk [vmem:[%s5129_s12 + $0x218] sm:$0xff] %vm306_vm0, %v2823_v2 }
 0x3fe   : > { %v2238_v49 = vpop.permute.xlu0 %2237  ;;  %v2353_v36 = vpop.permute.xlu1 %2352 }
 0x3ff   : > { %v2442_v7 = vmul.f32 %v2238_v49, %v5685_v29  ;;  %v2443_v53 = vmul.f32 %v2238_v49, %v5686_v17  ;;  %v2488_v8 = vmul.f32 %v2353_v36, %v5687_v31  ;;  %v2489_v34 = vmul.f32 %v2353_v36, %v5688_v25 }
 0x402   : > { %v2358_v15 = vpop.permute.xlu0 %2357  ;;  %v2569_v22 = vpop.permute.xlu1 %2568 }
 0x403   : > { %v2776_v51 = vadd.f32 %v2569_v22, %v2440_v57  ;;  %v2777_v20 = vadd.f32 %v2569_v22, %v2441_v12  ;;  %v2490_v47 = vmul.f32 %v2358_v15, %v5689_v26  ;;  %v2491_v24 = vmul.f32 %v2358_v15, %v5690_v58  ;;  %v5699_v12 = vld [vmem:[#allocation57_spill] sm:$0xff]  ;;  %v5700_v22 = vld [vmem:[#allocation59_spill] sm:$0xff] }
 0x405   : > { %2872 = vst [vmem:[%s5129_s12 + $0xa0] sm:$0xff] %v2776_v51  ;;  %2873 = vst.msk [vmem:[%s5129_s12 + $0xa8] sm:$0xff] %vm306_vm0, %v2777_v20 }
 0x406   : > { %v2574_v27 = vpop.permute.xlu0 %2573  ;;  %v2689_v33 = vpop.permute.xlu1 %2688 }
 0x407   : > { %v2778_v44 = vadd.f32 %v2574_v27, %v2442_v7  ;;  %v2779_v48 = vadd.f32 %v2574_v27, %v2443_v53  ;;  %v2824_v9 = vadd.f32 %v2689_v33, %v2488_v8  ;;  %v2825_v42 = vadd.f32 %v2689_v33, %v2489_v34  ;;  %v5701_v53 = vld [vmem:[#allocation61_spill] sm:$0xff]  ;;  %v5702_v8 = vld [vmem:[#allocation63_spill] sm:$0xff]  ;;  %v5703_v34 = vld [vmem:[#allocation58_spill] sm:$0xff] }
 0x408   : > { %v5704_v33 = vld [vmem:[#allocation60_spill] sm:$0xff] }
 0x409   : > { %2874 = vst [vmem:[%s5129_s12 + $0xb0] sm:$0xff] %v2778_v44  ;;  %2875 = vst.msk [vmem:[%s5129_s12 + $0xb8] sm:$0xff] %vm306_vm0, %v2779_v48 }
 0x40a   : > { %2920 = vst [vmem:[%s5129_s12 + $0x220] sm:$0xff] %v2824_v9  ;;  %2921 = vst.msk [vmem:[%s5129_s12 + $0x228] sm:$0xff] %vm306_vm0, %v2825_v42  ;;  %v2694_v18 = vpop.permute.xlu0 %2693  ;;  %v2243_v32 = vpop.permute.xlu1 %2242 }
 0x40b   : > { %v2826_v43 = vadd.f32 %v2694_v18, %v2490_v47  ;;  %v2827_v62 = vadd.f32 %v2694_v18, %v2491_v24  ;;  %v2444_v61 = vmul.f32 %v2243_v32, %v5691_v6  ;;  %v2445_v60 = vmul.f32 %v2243_v32, %v5692_v59  ;;  %v5705_v24 = vld [vmem:[#allocation62_spill] sm:$0xff]  ;;  %v5706_v32 = vld [vmem:[#allocation64_spill] sm:$0xff] }
 0x40d   : > { %2922 = vst [vmem:[%s5129_s12 + $0x230] sm:$0xff] %v2826_v43  ;;  %2923 = vst.msk [vmem:[%s5129_s12 + $0x238] sm:$0xff] %vm306_vm0, %v2827_v62 }
 0x40e   : > { %v2248_v16 = vpop.permute.xlu0 %2247  ;;  %v2363_v39 = vpop.permute.xlu1 %2362 }
 0x40f   : > { %v2446_v14 = vmul.f32 %v2248_v16, %v5693_v46  ;;  %v2447_v55 = vmul.f32 %v2248_v16, %v5694_v4  ;;  %v2492_v56 = vmul.f32 %v2363_v39, %v5695_v54  ;;  %v2493_v5 = vmul.f32 %v2363_v39, %v5696_v13 }
 0x412   : > { %v2368_v10 = vpop.permute.xlu0 %2367  ;;  %v2579_v50 = vpop.permute.xlu1 %2578 }
 0x413   : > { %v2780_v35 = vadd.f32 %v2579_v50, %v2444_v61  ;;  %v2781_v38 = vadd.f32 %v2579_v50, %v2445_v60  ;;  %v2494_v23 = vmul.f32 %v2368_v10, %v5697_v3  ;;  %v2495_v19 = vmul.f32 %v2368_v10, %v5698_v52  ;;  %v5707_v60 = vld [vmem:[#allocation65_spill] sm:$0xff]  ;;  %v5708_v50 = vld [vmem:[#allocation67_spill] sm:$0xff] }
 0x415   : > { %2876 = vst [vmem:[%s5129_s12 + $0xc0] sm:$0xff] %v2780_v35  ;;  %2877 = vst.msk [vmem:[%s5129_s12 + $0xc8] sm:$0xff] %vm306_vm0, %v2781_v38 }
 0x416   : > { %v2584_v11 = vpop.permute.xlu0 %2583  ;;  %v2699_v40 = vpop.permute.xlu1 %2698 }
 0x417   : > { %v2782_v1 = vadd.f32 %v2584_v11, %v2446_v14  ;;  %v2783_v63 = vadd.f32 %v2584_v11, %v2447_v55  ;;  %v2828_v30 = vadd.f32 %v2699_v40, %v2492_v56  ;;  %v2829_v21 = vadd.f32 %v2699_v40, %v2493_v5  ;;  %v5709_v55 = vld [vmem:[#allocation69_spill] sm:$0xff]  ;;  %v5710_v56 = vld [vmem:[#allocation71_spill] sm:$0xff]  ;;  %v5711_v5 = vld [vmem:[#allocation66_spill] sm:$0xff] }
 0x418   : > { %v5712_v40 = vld [vmem:[#allocation68_spill] sm:$0xff] }
 0x419   : > { %2878 = vst [vmem:[%s5129_s12 + $0xd0] sm:$0xff] %v2782_v1  ;;  %2879 = vst.msk [vmem:[%s5129_s12 + $0xd8] sm:$0xff] %vm306_vm0, %v2783_v63 }
 0x41a   : > { %2924 = vst [vmem:[%s5129_s12 + $0x240] sm:$0xff] %v2828_v30  ;;  %2925 = vst.msk [vmem:[%s5129_s12 + $0x248] sm:$0xff] %vm306_vm0, %v2829_v21  ;;  %v2704_v2 = vpop.permute.xlu0 %2703  ;;  %v2253_v49 = vpop.permute.xlu1 %2252 }
 0x41b   : > { %v2830_v36 = vadd.f32 %v2704_v2, %v2494_v23  ;;  %v2831_v45 = vadd.f32 %v2704_v2, %v2495_v19  ;;  %v2448_v15 = vmul.f32 %v2253_v49, %v5699_v12  ;;  %v2449_v51 = vmul.f32 %v2253_v49, %v5700_v22  ;;  %v5713_v19 = vld [vmem:[#allocation70_spill] sm:$0xff]  ;;  %v5714_v49 = vld [vmem:[#allocation72_spill] sm:$0xff] }
 0x41d   : > { %2926 = vst [vmem:[%s5129_s12 + $0x250] sm:$0xff] %v2830_v36  ;;  %2927 = vst.msk [vmem:[%s5129_s12 + $0x258] sm:$0xff] %vm306_vm0, %v2831_v45 }
 0x41e   : > { %v2258_v57 = vpop.permute.xlu0 %2257  ;;  %v2373_v28 = vpop.permute.xlu1 %2372 }
 0x41f   : > { %v2450_v31 = vmul.f32 %v2258_v57, %v5701_v53  ;;  %v2451_v25 = vmul.f32 %v2258_v57, %v5702_v8  ;;  %v2496_v27 = vmul.f32 %v2373_v28, %v5703_v34  ;;  %v2497_v44 = vmul.f32 %v2373_v28, %v5704_v33 }
 0x422   : > { %v2378_v20 = vpop.permute.xlu0 %2377  ;;  %v2589_v29 = vpop.permute.xlu1 %2588 }
 0x423   : > { %v2784_v7 = vadd.f32 %v2589_v29, %v2448_v15  ;;  %v2785_v17 = vadd.f32 %v2589_v29, %v2449_v51  ;;  %v2498_v18 = vmul.f32 %v2378_v20, %v5705_v24  ;;  %v2499_v43 = vmul.f32 %v2378_v20, %v5706_v32  ;;  %v5715_v51 = vld [vmem:[#allocation73_spill] sm:$0xff]  ;;  %v5716_v29 = vld [vmem:[#allocation75_spill] sm:$0xff] }
 0x425   : > { %2880 = vst [vmem:[%s5129_s12 + $0xe0] sm:$0xff] %v2784_v7  ;;  %2881 = vst.msk [vmem:[%s5129_s12 + $0xe8] sm:$0xff] %vm306_vm0, %v2785_v17 }
 0x426   : > { %v2594_v48 = vpop.permute.xlu0 %2593  ;;  %v2709_v9 = vpop.permute.xlu1 %2708 }
 0x427   : > { %v2786_v42 = vadd.f32 %v2594_v48, %v2450_v31  ;;  %v2787_v26 = vadd.f32 %v2594_v48, %v2451_v25  ;;  %v2832_v47 = vadd.f32 %v2709_v9, %v2496_v27  ;;  %v2833_v58 = vadd.f32 %v2709_v9, %v2497_v44  ;;  %v5717_v25 = vld [vmem:[#allocation77_spill] sm:$0xff]  ;;  %v5718_v27 = vld [vmem:[#allocation79_spill] sm:$0xff]  ;;  %v5719_v44 = vld [vmem:[#allocation74_spill] sm:$0xff] }
 0x428   : > { %v5720_v9 = vld [vmem:[#allocation76_spill] sm:$0xff] }
 0x429   : > { %2882 = vst [vmem:[%s5129_s12 + $0xf0] sm:$0xff] %v2786_v42  ;;  %2883 = vst.msk [vmem:[%s5129_s12 + $0xf8] sm:$0xff] %vm306_vm0, %v2787_v26 }
 0x42a   : > { %2928 = vst [vmem:[%s5129_s12 + $0x260] sm:$0xff] %v2832_v47  ;;  %2929 = vst.msk [vmem:[%s5129_s12 + $0x268] sm:$0xff] %vm306_vm0, %v2833_v58  ;;  %v2714_v62 = vpop.permute.xlu0 %2713  ;;  %v2263_v16 = vpop.permute.xlu1 %2262 }
 0x42b   : > { %v2834_v39 = vadd.f32 %v2714_v62, %v2498_v18  ;;  %v2835_v6 = vadd.f32 %v2714_v62, %v2499_v43  ;;  %v2452_v10 = vmul.f32 %v2263_v16, %v5707_v60  ;;  %v2453_v35 = vmul.f32 %v2263_v16, %v5708_v50  ;;  %v5721_v43 = vld [vmem:[#allocation78_spill] sm:$0xff]  ;;  %v5722_v16 = vld [vmem:[#allocation80_spill] sm:$0xff] }
 0x42d   : > { %2930 = vst [vmem:[%s5129_s12 + $0x270] sm:$0xff] %v2834_v39  ;;  %2931 = vst.msk [vmem:[%s5129_s12 + $0x278] sm:$0xff] %vm306_vm0, %v2835_v6 }
 0x42e   : > { %v2268_v61 = vpop.permute.xlu0 %2267  ;;  %v2383_v59 = vpop.permute.xlu1 %2382 }
 0x42f   : > { %v2454_v54 = vmul.f32 %v2268_v61, %v5709_v55  ;;  %v2455_v13 = vmul.f32 %v2268_v61, %v5710_v56  ;;  %v2500_v11 = vmul.f32 %v2383_v59, %v5711_v5  ;;  %v2501_v1 = vmul.f32 %v2383_v59, %v5712_v40 }
 0x432   : > { %v2388_v38 = vpop.permute.xlu0 %2387  ;;  %v2599_v46 = vpop.permute.xlu1 %2598 }
 0x433   : > { %v2788_v14 = vadd.f32 %v2599_v46, %v2452_v10  ;;  %v2789_v4 = vadd.f32 %v2599_v46, %v2453_v35  ;;  %v2502_v2 = vmul.f32 %v2388_v38, %v5713_v19  ;;  %v2503_v36 = vmul.f32 %v2388_v38, %v5714_v49  ;;  %v5723_v35 = vld [vmem:[#allocation81_spill] sm:$0xff]  ;;  %v5724_v46 = vld [vmem:[#allocation83_spill] sm:$0xff] }
 0x435   : > { %2884 = vst [vmem:[%s5129_s12 + $0x100] sm:$0xff] %v2788_v14  ;;  %2885 = vst.msk [vmem:[%s5129_s12 + $0x108] sm:$0xff] %vm306_vm0, %v2789_v4 }
 0x436   : > { %v2604_v63 = vpop.permute.xlu0 %2603  ;;  %v2719_v30 = vpop.permute.xlu1 %2718 }
 0x437   : > { %v2790_v21 = vadd.f32 %v2604_v63, %v2454_v54  ;;  %v2791_v3 = vadd.f32 %v2604_v63, %v2455_v13  ;;  %v2836_v23 = vadd.f32 %v2719_v30, %v2500_v11  ;;  %v2837_v52 = vadd.f32 %v2719_v30, %v2501_v1  ;;  %v5725_v13 = vld [vmem:[#allocation85_spill] sm:$0xff]  ;;  %v5726_v11 = vld [vmem:[#allocation87_spill] sm:$0xff]  ;;  %v5727_v1 = vld [vmem:[#allocation82_spill] sm:$0xff] }
 0x438   : > { %v5728_v30 = vld [vmem:[#allocation84_spill] sm:$0xff] }
 0x439   : > { %2886 = vst [vmem:[%s5129_s12 + $0x110] sm:$0xff] %v2790_v21  ;;  %2887 = vst.msk [vmem:[%s5129_s12 + $0x118] sm:$0xff] %vm306_vm0, %v2791_v3 }
 0x43a   : > { %2932 = vst [vmem:[%s5129_s12 + $0x280] sm:$0xff] %v2836_v23  ;;  %2933 = vst.msk [vmem:[%s5129_s12 + $0x288] sm:$0xff] %vm306_vm0, %v2837_v52  ;;  %v2724_v45 = vpop.permute.xlu0 %2723  ;;  %v2273_v57 = vpop.permute.xlu1 %2272 }
 0x43b   : > { %v2838_v28 = vadd.f32 %v2724_v45, %v2502_v2  ;;  %v2839_v12 = vadd.f32 %v2724_v45, %v2503_v36  ;;  %v2456_v20 = vmul.f32 %v2273_v57, %v5715_v51  ;;  %v2457_v7 = vmul.f32 %v2273_v57, %v5716_v29  ;;  %v5729_v36 = vld [vmem:[#allocation86_spill] sm:$0xff]  ;;  %v5730_v57 = vld [vmem:[#allocation88_spill] sm:$0xff] }
 0x43d   : > { %2934 = vst [vmem:[%s5129_s12 + $0x290] sm:$0xff] %v2838_v28  ;;  %2935 = vst.msk [vmem:[%s5129_s12 + $0x298] sm:$0xff] %vm306_vm0, %v2839_v12 }
 0x43e   : > { %v2278_v15 = vpop.permute.xlu0 %2277  ;;  %v2393_v22 = vpop.permute.xlu1 %2392 }
 0x43f   : > { %v2458_v34 = vmul.f32 %v2278_v15, %v5717_v25  ;;  %v2459_v33 = vmul.f32 %v2278_v15, %v5718_v27  ;;  %v2504_v48 = vmul.f32 %v2393_v22, %v5719_v44  ;;  %v2505_v42 = vmul.f32 %v2393_v22, %v5720_v9  ;;  %v5733_v44 = vld [vmem:[#allocation93_spill] sm:$0xff]  ;;  %v5734_v9 = vld [vmem:[#allocation90_spill] sm:$0xff] }
 0x442   : > { %v2398_v17 = vpop.permute.xlu0 %2397  ;;  %v2609_v53 = vpop.permute.xlu1 %2608 }
 0x443   : > { %v2792_v31 = vadd.f32 %v2609_v53, %v2456_v20  ;;  %v2793_v8 = vadd.f32 %v2609_v53, %v2457_v7  ;;  %v2506_v62 = vmul.f32 %v2398_v17, %v5721_v43  ;;  %v2507_v39 = vmul.f32 %v2398_v17, %v5722_v16  ;;  %v5731_v7 = vld [vmem:[#allocation89_spill] sm:$0xff]  ;;  %v5732_v53 = vld [vmem:[#allocation91_spill] sm:$0xff] }
 0x445   : > { %2888 = vst [vmem:[%s5129_s12 + $0x120] sm:$0xff] %v2792_v31  ;;  %2889 = vst.msk [vmem:[%s5129_s12 + $0x128] sm:$0xff] %vm306_vm0, %v2793_v8 }
 0x446   : > { %v2614_v26 = vpop.permute.xlu0 %2613  ;;  %v2729_v47 = vpop.permute.xlu1 %2728 }
 0x447   : > { %v2794_v58 = vadd.f32 %v2614_v26, %v2458_v34  ;;  %v2795_v24 = vadd.f32 %v2614_v26, %v2459_v33  ;;  %v2840_v18 = vadd.f32 %v2729_v47, %v2504_v48  ;;  %v2841_v32 = vadd.f32 %v2729_v47, %v2505_v42  ;;  %v5735_v26 = vld [vmem:[#allocation92_spill] sm:$0xff] }
 0x449   : > { %2890 = vst [vmem:[%s5129_s12 + $0x130] sm:$0xff] %v2794_v58  ;;  %2891 = vst.msk [vmem:[%s5129_s12 + $0x138] sm:$0xff] %vm306_vm0, %v2795_v24 }
 0x44a   : > { %2936 = vst [vmem:[%s5129_s12 + $0x2a0] sm:$0xff] %v2840_v18  ;;  %2937 = vst.msk [vmem:[%s5129_s12 + $0x2a8] sm:$0xff] %vm306_vm0, %v2841_v32  ;;  %v2734_v6 = vpop.permute.xlu0 %2733  ;;  %v2283_v61 = vpop.permute.xlu1 %2282 }
 0x44b   : > { %v2842_v59 = vadd.f32 %v2734_v6, %v2506_v62  ;;  %v2843_v60 = vadd.f32 %v2734_v6, %v2507_v39  ;;  %v2460_v38 = vmul.f32 %v2283_v61, %v5723_v35  ;;  %v2461_v14 = vmul.f32 %v2283_v61, %v5724_v46 }
 0x44d   : > { %2938 = vst [vmem:[%s5129_s12 + $0x2b0] sm:$0xff] %v2842_v59  ;;  %2939 = vst.msk [vmem:[%s5129_s12 + $0x2b8] sm:$0xff] %vm306_vm0, %v2843_v60 }
 0x44e   : > { %v2288_v10 = vpop.permute.xlu0 %2287  ;;  %v2403_v50 = vpop.permute.xlu1 %2402 }
 0x44f   : > { %v2462_v5 = vmul.f32 %v2288_v10, %v5725_v13  ;;  %v2463_v40 = vmul.f32 %v2288_v10, %v5726_v11  ;;  %v2508_v63 = vmul.f32 %v2403_v50, %v5727_v1  ;;  %v2509_v21 = vmul.f32 %v2403_v50, %v5728_v30 }
 0x452   : > { %v2408_v4 = vpop.permute.xlu0 %2407  ;;  %v2619_v55 = vpop.permute.xlu1 %2618 }
 0x453   : > { %v2796_v54 = vadd.f32 %v2619_v55, %v2460_v38  ;;  %v2797_v56 = vadd.f32 %v2619_v55, %v2461_v14  ;;  %v2510_v45 = vmul.f32 %v2408_v4, %v5729_v36  ;;  %v2511_v28 = vmul.f32 %v2408_v4, %v5730_v57 }
 0x455   : > { %2892 = vst [vmem:[%s5129_s12 + $0x140] sm:$0xff] %v2796_v54  ;;  %2893 = vst.msk [vmem:[%s5129_s12 + $0x148] sm:$0xff] %vm306_vm0, %v2797_v56 }
 0x456   : > { %v2624_v3 = vpop.permute.xlu0 %2623  ;;  %v2739_v23 = vpop.permute.xlu1 %2738 }
 0x457   : > { %v2798_v52 = vadd.f32 %v2624_v3, %v2462_v5  ;;  %v2799_v19 = vadd.f32 %v2624_v3, %v2463_v40  ;;  %v2844_v2 = vadd.f32 %v2739_v23, %v2508_v63  ;;  %v2845_v49 = vadd.f32 %v2739_v23, %v2509_v21 }
 0x459   : > { %2894 = vst [vmem:[%s5129_s12 + $0x150] sm:$0xff] %v2798_v52  ;;  %2895 = vst.msk [vmem:[%s5129_s12 + $0x158] sm:$0xff] %vm306_vm0, %v2799_v19 }
 0x45a   : > { %2940 = vst [vmem:[%s5129_s12 + $0x2c0] sm:$0xff] %v2844_v2  ;;  %2941 = vst.msk [vmem:[%s5129_s12 + $0x2c8] sm:$0xff] %vm306_vm0, %v2845_v49  ;;  %v2744_v12 = vpop.permute.xlu0 %2743  ;;  %v2293_v15 = vpop.permute.xlu1 %2292 }
 0x45b   : > { %v2846_v22 = vadd.f32 %v2744_v12, %v2510_v45  ;;  %v2847_v51 = vadd.f32 %v2744_v12, %v2511_v28  ;;  %v2464_v17 = vmul.f32 %v2293_v15, %v5731_v7  ;;  %v2465_v31 = vmul.f32 %v2293_v15, %v5732_v53 }
 0x45d   : > { %2942 = vst [vmem:[%s5129_s12 + $0x2d0] sm:$0xff] %v2846_v22  ;;  %2943 = vst.msk [vmem:[%s5129_s12 + $0x2d8] sm:$0xff] %vm306_vm0, %v2847_v51 }
 0x45e   : > { %v2298_v20 = vpop.permute.xlu0 %2297  ;;  %v2413_v29 = vpop.permute.xlu1 %2412 }
 0x45f   : > { %v2466_v33 = vmul.f32 %v2298_v20, %v4506_v0  ;;  %v2467_v48 = vmul.f32 %v2298_v20, %v5733_v44  ;;  %v2512_v42 = vmul.f32 %v2413_v29, %v5734_v9  ;;  %v2513_v47 = vmul.f32 %v2413_v29, %v5735_v26 }
 0x462   : > { %v2418_v8 = vpop.permute.xlu0 %2417  ;;  %v2629_v25 = vpop.permute.xlu1 %2628 }
 0x463   : > { %v2800_v34 = vadd.f32 %v2629_v25, %v2464_v17  ;;  %v2801_v27 = vadd.f32 %v2629_v25, %v2465_v31  ;;  %v2514_v0 = vmul.f32 %v2418_v8, %v4508_v37  ;;  %v2515_v16 = vmul.f32 %v2418_v8, %v4519_v41 }
 0x465   : > { %2896 = vst [vmem:[%s5129_s12 + $0x160] sm:$0xff] %v2800_v34  ;;  %2897 = vst.msk [vmem:[%s5129_s12 + $0x168] sm:$0xff] %vm306_vm0, %v2801_v27 }
 0x466   : > { %v2634_v58 = vpop.permute.xlu0 %2633  ;;  %v2749_v24 = vpop.permute.xlu1 %2748 }
 0x467   : > { %v2802_v18 = vadd.f32 %v2634_v58, %v2466_v33  ;;  %v2803_v32 = vadd.f32 %v2634_v58, %v2467_v48  ;;  %v2848_v43 = vadd.f32 %v2749_v24, %v2512_v42  ;;  %v2849_v62 = vadd.f32 %v2749_v24, %v2513_v47 }
 0x469   : > { %2898 = vst [vmem:[%s5129_s12 + $0x170] sm:$0xff] %v2802_v18  ;;  %2899 = vst.msk [vmem:[%s5129_s12 + $0x178] sm:$0xff] %vm306_vm0, %v2803_v32 }
 0x46a   : > { %2944 = vst [vmem:[%s5129_s12 + $0x2e0] sm:$0xff] %v2848_v43  ;;  %2945 = vst.msk [vmem:[%s5129_s12 + $0x2e8] sm:$0xff] %vm306_vm0, %v2849_v62  ;;  %v2754_v39 = vpop.permute.xlu0 %2753 }
 0x46b   : > { %v2850_v6 = vadd.f32 %v2754_v39, %v2514_v0  ;;  %v2851_v61 = vadd.f32 %v2754_v39, %v2515_v16 }
 0x46d   : > { %2946 = vst [vmem:[%s5129_s12 + $0x2f0] sm:$0xff] %v2850_v6  ;;  %2947 = vst.msk [vmem:[%s5129_s12 + $0x2f8] sm:$0xff] %vm306_vm0, %v2851_v61 }
 0x46e PF: > { %s15_s18 = sadd.s32 1, %s3237_s18  }
 0x46f   : > { %p12_p4 = scmp.ge.s32.totalorder %s15_s18, 4  }
 0x471   :  { %14 = sbr.rel (!%p12_p4) target bundleno = 1 (0x1), region = 76 }

</bundles_post_ra>
